<compile_context>
chip_gen: v7x
topology: tpu7x:2x2x1
jax: 0.10.0
libtpu: 0.0.40
codegen_flags: <defaults>
</compile_context>

<pallas_src>
import functools

import jax
import jax.numpy as jnp
from jax.experimental import pallas as pl
from jax.experimental.pallas import tpu as pltpu


def _conv_bn_lrelu_pool_kernel(x_ref, w_ref, s_ref, b_ref, o_ref, acc_ref,
                               *, M, Wi2, neg_slope):
    """Fused Conv3x3 + BN(affine) + LeakyReLU + MaxPool2x2 for one (batch, Cout-tile).

    x_ref:   (1, 4, Sf, Cin) bf16  phase-split, spatially-flattened padded input
    w_ref:   (9, Cin, TC)    bf16  conv weights per tap, Cout tile on lanes
    s_ref:   (1, TC)  f32          folded BN scale
    b_ref:   (1, TC)  f32          folded conv-bias + BN bias
    o_ref:   (1, M, TC)            pooled output (flat (Hp, Wi2) rows x Cout tile)
    acc_ref: (M, TC)  f32          conv accumulator (VMEM scratch)
    """
    tc = s_ref.shape[-1]
    # Hoist the per-channel affine broadcast out of the phase loop (no CSE in JAX).
    scale = jnp.broadcast_to(s_ref[...], (M, tc))
    bias = jnp.broadcast_to(b_ref[...], (M, tc))

    res = None
    for di in range(2):                      # output-row parity   } 2x2 max-pool phases
        for dj in range(2):                  # output-column parity}
            acc_ref[...] = jnp.zeros_like(acc_ref)
            for kh in range(3):              # 9 shifted matmuls, Cin contraction
                for kw in range(3):
                    a = di + kh
                    b = dj + kw
                    p = 2 * (a % 2) + (b % 2)          # which input phase
                    off = (a // 2) * Wi2 + (b // 2)    # flat row shift (contiguous slice)
                    lhs = x_ref[0, p, pl.ds(off, M), :]            # (M, Cin) bf16
                    acc_ref[...] += jnp.dot(lhs, w_ref[kh * 3 + kw],
                                            preferred_element_type=jnp.float32)
            y = acc_ref[...] * scale + bias            # conv bias + BatchNorm (folded), f32
            y = jnp.maximum(y, neg_slope * y)          # LeakyReLU (single VALU max)
            res = y if res is None else jnp.maximum(res, y)   # MaxPool2d(2, 2) over phases
    o_ref[0] = res.astype(o_ref.dtype)


def conv_block(x_nchw, weight, conv_bias, gamma, beta, run_mean, run_var,
               *, eps=1e-5, neg_slope=0.01):
    """Forward pass of the PyTorch `Conv` module (inference-mode BN)."""
    N, Cin, H, W = x_nchw.shape
    Cout = weight.shape[0]
    assert H % 2 == 0 and W % 2 == 0
    Hp, Wp = H // 2, W // 2
    Hi2, Wi2 = Hp + 1, Wp + 1                 # phase-split extents of the padded image
    M = Hp * Wi2                              # rows per phase accumulator (1 garbage col/row)
    Sf = ((Hi2 * Wi2 + 1 + 7) // 8) * 8       # flat phase rows, +1 halo, padded to mult of 8
    TC = 128                                  # lane-dense Cout tile
    Coutp = ((Cout + TC - 1) // TC) * TC

    # --- glue: fold BN into per-channel scale/bias (padded to Coutp) -------------------
    scale = gamma / jnp.sqrt(run_var + eps)                       # (Cout,)
    bias = (conv_bias - run_mean) * scale + beta                  # (Cout,)
    scale_p = jnp.pad(scale, (0, Coutp - Cout), constant_values=1.0)
    scale_p = scale_p.reshape(1, Coutp).astype(jnp.float32)
    bias_p = jnp.pad(bias, (0, Coutp - Cout)).reshape(1, Coutp).astype(jnp.float32)

    # --- glue: NCHW -> padded NHWC -> 2x2 phase split -> flatten spatial (1x volume) ----
    x = jnp.transpose(x_nchw, (0, 2, 3, 1))                       # (N, H, W, Cin)
    xp = jnp.pad(x, ((0, 0), (1, 1), (1, 1), (0, 0)))             # zero pad = 1
    xq = xp.reshape(N, Hi2, 2, Wi2, 2, Cin)
    xq = jnp.transpose(xq, (0, 2, 4, 1, 3, 5)).reshape(N, 4, Hi2 * Wi2, Cin)
    xq = jnp.pad(xq, ((0, 0), (0, 0), (0, Sf - Hi2 * Wi2), (0, 0)))
    xq = xq.astype(jnp.bfloat16)                                  # bf16 MXU inputs

    # weight (Cout, Cin, 3, 3) -> (9, Cin, Coutp), tap-major, lane-dense Cout, bf16
    wmat = jnp.transpose(weight, (2, 3, 1, 0)).reshape(9, Cin, Cout)
    wmat = jnp.pad(wmat, ((0, 0), (0, 0), (0, Coutp - Cout))).astype(jnp.bfloat16)

    # --- Pallas kernel: grid over (batch, Cout tiles), both parallel --------------------
    out = pl.pallas_call(
        functools.partial(_conv_bn_lrelu_pool_kernel,
                          M=M, Wi2=Wi2, neg_slope=neg_slope),
        out_shape=jax.ShapeDtypeStruct((N, M, Coutp), x_nchw.dtype),
        grid=(N, Coutp // TC),
        in_specs=[
            pl.BlockSpec((1, 4, Sf, Cin), lambda n, c: (n, 0, 0, 0)),
            pl.BlockSpec((9, Cin, TC), lambda n, c: (0, 0, c)),
            pl.BlockSpec((1, TC), lambda n, c: (0, c)),
            pl.BlockSpec((1, TC), lambda n, c: (0, c)),
        ],
        out_specs=pl.BlockSpec((1, M, TC), lambda n, c: (n, 0, c)),
        scratch_shapes=[pltpu.VMEM((M, TC), jnp.float32)],
        compiler_params=pltpu.CompilerParams(
            dimension_semantics=("parallel", "parallel")),
    )(xq, wmat, scale_p, bias_p)

    # --- glue: drop per-row garbage column + Cout padding; back to NCHW -----------------
    out = out.reshape(N, Hp, Wi2, Coutp)[:, :, :Wp, :Cout]
    return jnp.transpose(out, (0, 3, 1, 2))                       # (N, Cout, H/2, W/2)


if __name__ == "__main__":
    N, Cin, Cout, H, W = 2, 4, 8, 16, 16
    key = jax.random.PRNGKey(0)
    ks = jax.random.split(key, 7)
    x = jax.random.normal(ks[0], (N, Cin, H, W), jnp.float32)
    weight = jax.random.normal(ks[1], (Cout, Cin, 3, 3), jnp.float32) * 0.1
    conv_bias = jax.random.normal(ks[2], (Cout,), jnp.float32) * 0.1
    gamma = jax.random.uniform(ks[3], (Cout,), jnp.float32, 0.5, 1.5)
    beta = jax.random.normal(ks[4], (Cout,), jnp.float32) * 0.1
    run_mean = jax.random.normal(ks[5], (Cout,), jnp.float32) * 0.1
    run_var = jax.random.uniform(ks[6], (Cout,), jnp.float32, 0.5, 1.5)

    out = conv_block(x, weight, conv_bias, gamma, beta, run_mean, run_var)
    out = jax.block_until_ready(out)

    # pure-JAX f32 reference (same inference-mode semantics).  The kernel feeds the MXU
    # bf16 operands (f32 accumulation), hence the bf16-appropriate tolerance.
    ref = jax.lax.conv_general_dilated(
        x, weight, (1, 1), ((1, 1), (1, 1)),
        dimension_numbers=("NCHW", "OIHW", "NCHW")) + conv_bias[None, :, None, None]
    ref = (ref - run_mean[None, :, None, None]) / jnp.sqrt(
        run_var[None, :, None, None] + 1e-5) * gamma[None, :, None, None] \
        + beta[None, :, None, None]
    ref = jnp.where(ref >= 0, ref, 0.01 * ref)
    ref = jax.lax.reduce_window(ref, -jnp.inf, jax.lax.max,
                                (1, 1, 2, 2), (1, 1, 2, 2), "VALID")

    assert out.shape == (N, Cout, H // 2, W // 2), out.shape
    max_err = float(jnp.max(jnp.abs(out - ref)))
    assert jnp.allclose(out, ref, atol=5e-2, rtol=5e-2), f"mismatch, max abs err={max_err}"
    print("KERNEL_OK")
</pallas_src>

<mosaic_0001>
module attributes {stable_mosaic.version = 11 : i64} {
  func.func @_conv_bn_lrelu_pool_kernel(%arg0: i32, %arg1: i32, %arg2: memref<1x4x88x4xbf16, #tpu.memory_space<vmem>>, %arg3: memref<9x4x128xbf16, #tpu.memory_space<vmem>>, %arg4: memref<1x128xf32, #tpu.memory_space<vmem>>, %arg5: memref<1x128xf32, #tpu.memory_space<vmem>>, %arg6: memref<1x72x128xf32, #tpu.memory_space<vmem>>, %arg7: memref<72x128xf32, #tpu.memory_space<vmem>>) attributes {dimension_semantics = [#tpu.dimension_semantics<parallel>, #tpu.dimension_semantics<parallel>], iteration_bounds = array<i64: 2, 1>, scalar_prefetch = 0 : i64, scratch_operands = 1 : i64, tpu.core_type = #tpu.core_type<tc>, window_params = [{transform_indices = @transform_0, window_bounds = array<i64: 1, 4, 88, 4>}, {transform_indices = @transform_1, window_bounds = array<i64: 9, 4, 128>}, {transform_indices = @transform_2, window_bounds = array<i64: 1, 128>}, {transform_indices = @transform_3, window_bounds = array<i64: 1, 128>}, {transform_indices = @transform_4, window_bounds = array<i64: 1, 72, 128>}]} {
    %c0 = arith.constant 0 : index
    %c0_0 = arith.constant 0 : index
    %0 = vector.load %arg4[%c0, %c0_0] : memref<1x128xf32, #tpu.memory_space<vmem>>, vector<1x128xf32>
    %1 = vector.shape_cast %0 : vector<1x128xf32> to vector<1x128xf32>
    %2 = vector.broadcast %1 : vector<1x128xf32> to vector<72x128xf32>
    %c0_1 = arith.constant 0 : index
    %c0_2 = arith.constant 0 : index
    %3 = vector.load %arg5[%c0_1, %c0_2] : memref<1x128xf32, #tpu.memory_space<vmem>>, vector<1x128xf32>
    %4 = vector.shape_cast %3 : vector<1x128xf32> to vector<1x128xf32>
    %5 = vector.broadcast %4 : vector<1x128xf32> to vector<72x128xf32>
    %cst = arith.constant 0.000000e+00 : f32
    %6 = vector.broadcast %cst : f32 to vector<72x128xf32>
    %c0_3 = arith.constant 0 : index
    %c0_4 = arith.constant 0 : index
    %7 = vector.load %arg7[%c0_3, %c0_4] : memref<72x128xf32, #tpu.memory_space<vmem>>, vector<72x128xf32>
    tpu.vector_store %arg7[%c0_3, %c0_4], %6 {strides = array<i32>} : memref<72x128xf32, #tpu.memory_space<vmem>>, vector<72x128xf32>,
    %c0_5 = arith.constant 0 : index
    %c0_6 = arith.constant 0 : index
    %c0_7 = arith.constant 0 : index
    %c0_8 = arith.constant 0 : index
    %8 = vector.load %arg2[%c0_5, %c0_6, %c0_7, %c0_8] : memref<1x4x88x4xbf16, #tpu.memory_space<vmem>>, vector<1x1x72x4xbf16>
    %9 = vector.shape_cast %8 : vector<1x1x72x4xbf16> to vector<72x4xbf16>
    %c0_9 = arith.constant 0 : index
    %c0_10 = arith.constant 0 : index
    %10 = vector.load %arg7[%c0_9, %c0_10] : memref<72x128xf32, #tpu.memory_space<vmem>>, vector<72x128xf32>
    %c0_11 = arith.constant 0 : index
    %c0_12 = arith.constant 0 : index
    %c0_13 = arith.constant 0 : index
    %11 = vector.load %arg3[%c0_11, %c0_12, %c0_13] : memref<9x4x128xbf16, #tpu.memory_space<vmem>>, vector<1x4x128xbf16>
    %12 = vector.shape_cast %11 : vector<1x4x128xbf16> to vector<4x128xbf16>
    %cst_14 = arith.constant dense<0.000000e+00> : vector<72x128xf32>
    %13 = tpu.matmul %9, %12, %cst_14 {dimension_numbers = #tpu.dot_dimension_numbers<[1], [0], [0], [1], [0, 0, 1, 1], [], []>} : vector<72x4xbf16>, vector<4x128xbf16>, vector<72x128xf32> -> vector<72x128xf32>
    %14 = arith.addf %10, %13 : vector<72x128xf32>
    %c0_15 = arith.constant 0 : index
    %c0_16 = arith.constant 0 : index
    %15 = vector.load %arg7[%c0_15, %c0_16] : memref<72x128xf32, #tpu.memory_space<vmem>>, vector<72x128xf32>
    tpu.vector_store %arg7[%c0_15, %c0_16], %14 {strides = array<i32>} : memref<72x128xf32, #tpu.memory_space<vmem>>, vector<72x128xf32>,
    %c0_17 = arith.constant 0 : index
    %c1 = arith.constant 1 : index
    %c0_18 = arith.constant 0 : index
    %c0_19 = arith.constant 0 : index
    %16 = vector.load %arg2[%c0_17, %c1, %c0_18, %c0_19] : memref<1x4x88x4xbf16, #tpu.memory_space<vmem>>, vector<1x1x72x4xbf16>
    %17 = vector.shape_cast %16 : vector<1x1x72x4xbf16> to vector<72x4xbf16>
    %c0_20 = arith.constant 0 : index
    %c0_21 = arith.constant 0 : index
    %18 = vector.load %arg7[%c0_20, %c0_21] : memref<72x128xf32, #tpu.memory_space<vmem>>, vector<72x128xf32>
    %c1_22 = arith.constant 1 : index
    %c0_23 = arith.constant 0 : index
    %c0_24 = arith.constant 0 : index
    %19 = vector.load %arg3[%c1_22, %c0_23, %c0_24] : memref<9x4x128xbf16, #tpu.memory_space<vmem>>, vector<1x4x128xbf16>
    %20 = vector.shape_cast %19 : vector<1x4x128xbf16> to vector<4x128xbf16>
    %cst_25 = arith.constant dense<0.000000e+00> : vector<72x128xf32>
    %21 = tpu.matmul %17, %20, %cst_25 {dimension_numbers = #tpu.dot_dimension_numbers<[1], [0], [0], [1], [0, 0, 1, 1], [], []>} : vector<72x4xbf16>, vector<4x128xbf16>, vector<72x128xf32> -> vector<72x128xf32>
    %22 = arith.addf %18, %21 : vector<72x128xf32>
    %c0_26 = arith.constant 0 : index
    %c0_27 = arith.constant 0 : index
    %23 = vector.load %arg7[%c0_26, %c0_27] : memref<72x128xf32, #tpu.memory_space<vmem>>, vector<72x128xf32>
    tpu.vector_store %arg7[%c0_26, %c0_27], %22 {strides = array<i32>} : memref<72x128xf32, #tpu.memory_space<vmem>>, vector<72x128xf32>,
    %c0_28 = arith.constant 0 : index
    %c0_29 = arith.constant 0 : index
    %c1_30 = arith.constant 1 : index
    %c0_31 = arith.constant 0 : index
    %24 = vector.load %arg2[%c0_28, %c0_29, %c1_30, %c0_31] : memref<1x4x88x4xbf16, #tpu.memory_space<vmem>>, vector<1x1x72x4xbf16>
    %25 = vector.shape_cast %24 : vector<1x1x72x4xbf16> to vector<72x4xbf16>
    %c0_32 = arith.constant 0 : index
    %c0_33 = arith.constant 0 : index
    %26 = vector.load %arg7[%c0_32, %c0_33] : memref<72x128xf32, #tpu.memory_space<vmem>>, vector<72x128xf32>
    %c2 = arith.constant 2 : index
    %c0_34 = arith.constant 0 : index
    %c0_35 = arith.constant 0 : index
    %27 = vector.load %arg3[%c2, %c0_34, %c0_35] : memref<9x4x128xbf16, #tpu.memory_space<vmem>>, vector<1x4x128xbf16>
    %28 = vector.shape_cast %27 : vector<1x4x128xbf16> to vector<4x128xbf16>
    %cst_36 = arith.constant dense<0.000000e+00> : vector<72x128xf32>
    %29 = tpu.matmul %25, %28, %cst_36 {dimension_numbers = #tpu.dot_dimension_numbers<[1], [0], [0], [1], [0, 0, 1, 1], [], []>} : vector<72x4xbf16>, vector<4x128xbf16>, vector<72x128xf32> -> vector<72x128xf32>
    %30 = arith.addf %26, %29 : vector<72x128xf32>
    %c0_37 = arith.constant 0 : index
    %c0_38 = arith.constant 0 : index
    %31 = vector.load %arg7[%c0_37, %c0_38] : memref<72x128xf32, #tpu.memory_space<vmem>>, vector<72x128xf32>
    tpu.vector_store %arg7[%c0_37, %c0_38], %30 {strides = array<i32>} : memref<72x128xf32, #tpu.memory_space<vmem>>, vector<72x128xf32>,
    %c0_39 = arith.constant 0 : index
    %c2_40 = arith.constant 2 : index
    %c0_41 = arith.constant 0 : index
    %c0_42 = arith.constant 0 : index
    %32 = vector.load %arg2[%c0_39, %c2_40, %c0_41, %c0_42] : memref<1x4x88x4xbf16, #tpu.memory_space<vmem>>, vector<1x1x72x4xbf16>
    %33 = vector.shape_cast %32 : vector<1x1x72x4xbf16> to vector<72x4xbf16>
    %c0_43 = arith.constant 0 : index
    %c0_44 = arith.constant 0 : index
    %34 = vector.load %arg7[%c0_43, %c0_44] : memref<72x128xf32, #tpu.memory_space<vmem>>, vector<72x128xf32>
    %c3 = arith.constant 3 : index
    %c0_45 = arith.constant 0 : index
    %c0_46 = arith.constant 0 : index
    %35 = vector.load %arg3[%c3, %c0_45, %c0_46] : memref<9x4x128xbf16, #tpu.memory_space<vmem>>, vector<1x4x128xbf16>
    %36 = vector.shape_cast %35 : vector<1x4x128xbf16> to vector<4x128xbf16>
    %cst_47 = arith.constant dense<0.000000e+00> : vector<72x128xf32>
    %37 = tpu.matmul %33, %36, %cst_47 {dimension_numbers = #tpu.dot_dimension_numbers<[1], [0], [0], [1], [0, 0, 1, 1], [], []>} : vector<72x4xbf16>, vector<4x128xbf16>, vector<72x128xf32> -> vector<72x128xf32>
    %38 = arith.addf %34, %37 : vector<72x128xf32>
    %c0_48 = arith.constant 0 : index
    %c0_49 = arith.constant 0 : index
    %39 = vector.load %arg7[%c0_48, %c0_49] : memref<72x128xf32, #tpu.memory_space<vmem>>, vector<72x128xf32>
    tpu.vector_store %arg7[%c0_48, %c0_49], %38 {strides = array<i32>} : memref<72x128xf32, #tpu.memory_space<vmem>>, vector<72x128xf32>,
    %c0_50 = arith.constant 0 : index
    %c3_51 = arith.constant 3 : index
    %c0_52 = arith.constant 0 : index
    %c0_53 = arith.constant 0 : index
    %40 = vector.load %arg2[%c0_50, %c3_51, %c0_52, %c0_53] : memref<1x4x88x4xbf16, #tpu.memory_space<vmem>>, vector<1x1x72x4xbf16>
    %41 = vector.shape_cast %40 : vector<1x1x72x4xbf16> to vector<72x4xbf16>
    %c0_54 = arith.constant 0 : index
    %c0_55 = arith.constant 0 : index
    %42 = vector.load %arg7[%c0_54, %c0_55] : memref<72x128xf32, #tpu.memory_space<vmem>>, vector<72x128xf32>
    %c4 = arith.constant 4 : index
    %c0_56 = arith.constant 0 : index
    %c0_57 = arith.constant 0 : index
    %43 = vector.load %arg3[%c4, %c0_56, %c0_57] : memref<9x4x128xbf16, #tpu.memory_space<vmem>>, vector<1x4x128xbf16>
    %44 = vector.shape_cast %43 : vector<1x4x128xbf16> to vector<4x128xbf16>
    %cst_58 = arith.constant dense<0.000000e+00> : vector<72x128xf32>
    %45 = tpu.matmul %41, %44, %cst_58 {dimension_numbers = #tpu.dot_dimension_numbers<[1], [0], [0], [1], [0, 0, 1, 1], [], []>} : vector<72x4xbf16>, vector<4x128xbf16>, vector<72x128xf32> -> vector<72x128xf32>
    %46 = arith.addf %42, %45 : vector<72x128xf32>
    %c0_59 = arith.constant 0 : index
    %c0_60 = arith.constant 0 : index
    %47 = vector.load %arg7[%c0_59, %c0_60] : memref<72x128xf32, #tpu.memory_space<vmem>>, vector<72x128xf32>
    tpu.vector_store %arg7[%c0_59, %c0_60], %46 {strides = array<i32>} : memref<72x128xf32, #tpu.memory_space<vmem>>, vector<72x128xf32>,
    %c0_61 = arith.constant 0 : index
    %c2_62 = arith.constant 2 : index
    %c1_63 = arith.constant 1 : index
    %c0_64 = arith.constant 0 : index
    %48 = vector.load %arg2[%c0_61, %c2_62, %c1_63, %c0_64] : memref<1x4x88x4xbf16, #tpu.memory_space<vmem>>, vector<1x1x72x4xbf16>
    %49 = vector.shape_cast %48 : vector<1x1x72x4xbf16> to vector<72x4xbf16>
    %c0_65 = arith.constant 0 : index
    %c0_66 = arith.constant 0 : index
    %50 = vector.load %arg7[%c0_65, %c0_66] : memref<72x128xf32, #tpu.memory_space<vmem>>, vector<72x128xf32>
    %c5 = arith.constant 5 : index
    %c0_67 = arith.constant 0 : index
    %c0_68 = arith.constant 0 : index
    %51 = vector.load %arg3[%c5, %c0_67, %c0_68] : memref<9x4x128xbf16, #tpu.memory_space<vmem>>, vector<1x4x128xbf16>
    %52 = vector.shape_cast %51 : vector<1x4x128xbf16> to vector<4x128xbf16>
    %cst_69 = arith.constant dense<0.000000e+00> : vector<72x128xf32>
    %53 = tpu.matmul %49, %52, %cst_69 {dimension_numbers = #tpu.dot_dimension_numbers<[1], [0], [0], [1], [0, 0, 1, 1], [], []>} : vector<72x4xbf16>, vector<4x128xbf16>, vector<72x128xf32> -> vector<72x128xf32>
    %54 = arith.addf %50, %53 : vector<72x128xf32>
    %c0_70 = arith.constant 0 : index
    %c0_71 = arith.constant 0 : index
    %55 = vector.load %arg7[%c0_70, %c0_71] : memref<72x128xf32, #tpu.memory_space<vmem>>, vector<72x128xf32>
    tpu.vector_store %arg7[%c0_70, %c0_71], %54 {strides = array<i32>} : memref<72x128xf32, #tpu.memory_space<vmem>>, vector<72x128xf32>,
    %c0_72 = arith.constant 0 : index
    %c0_73 = arith.constant 0 : index
    %c9 = arith.constant 9 : index
    %c0_74 = arith.constant 0 : index
    %56 = vector.load %arg2[%c0_72, %c0_73, %c9, %c0_74] : memref<1x4x88x4xbf16, #tpu.memory_space<vmem>>, vector<1x1x72x4xbf16>
    %57 = vector.shape_cast %56 : vector<1x1x72x4xbf16> to vector<72x4xbf16>
    %c0_75 = arith.constant 0 : index
    %c0_76 = arith.constant 0 : index
    %58 = vector.load %arg7[%c0_75, %c0_76] : memref<72x128xf32, #tpu.memory_space<vmem>>, vector<72x128xf32>
    %c6 = arith.constant 6 : index
    %c0_77 = arith.constant 0 : index
    %c0_78 = arith.constant 0 : index
    %59 = vector.load %arg3[%c6, %c0_77, %c0_78] : memref<9x4x128xbf16, #tpu.memory_space<vmem>>, vector<1x4x128xbf16>
    %60 = vector.shape_cast %59 : vector<1x4x128xbf16> to vector<4x128xbf16>
    %cst_79 = arith.constant dense<0.000000e+00> : vector<72x128xf32>
    %61 = tpu.matmul %57, %60, %cst_79 {dimension_numbers = #tpu.dot_dimension_numbers<[1], [0], [0], [1], [0, 0, 1, 1], [], []>} : vector<72x4xbf16>, vector<4x128xbf16>, vector<72x128xf32> -> vector<72x128xf32>
    %62 = arith.addf %58, %61 : vector<72x128xf32>
    %c0_80 = arith.constant 0 : index
    %c0_81 = arith.constant 0 : index
    %63 = vector.load %arg7[%c0_80, %c0_81] : memref<72x128xf32, #tpu.memory_space<vmem>>, vector<72x128xf32>
    tpu.vector_store %arg7[%c0_80, %c0_81], %62 {strides = array<i32>} : memref<72x128xf32, #tpu.memory_space<vmem>>, vector<72x128xf32>,
    %c0_82 = arith.constant 0 : index
    %c1_83 = arith.constant 1 : index
    %c9_84 = arith.constant 9 : index
    %c0_85 = arith.constant 0 : index
    %64 = vector.load %arg2[%c0_82, %c1_83, %c9_84, %c0_85] : memref<1x4x88x4xbf16, #tpu.memory_space<vmem>>, vector<1x1x72x4xbf16>
    %65 = vector.shape_cast %64 : vector<1x1x72x4xbf16> to vector<72x4xbf16>
    %c0_86 = arith.constant 0 : index
    %c0_87 = arith.constant 0 : index
    %66 = vector.load %arg7[%c0_86, %c0_87] : memref<72x128xf32, #tpu.memory_space<vmem>>, vector<72x128xf32>
    %c7 = arith.constant 7 : index
    %c0_88 = arith.constant 0 : index
    %c0_89 = arith.constant 0 : index
    %67 = vector.load %arg3[%c7, %c0_88, %c0_89] : memref<9x4x128xbf16, #tpu.memory_space<vmem>>, vector<1x4x128xbf16>
    %68 = vector.shape_cast %67 : vector<1x4x128xbf16> to vector<4x128xbf16>
    %cst_90 = arith.constant dense<0.000000e+00> : vector<72x128xf32>
    %69 = tpu.matmul %65, %68, %cst_90 {dimension_numbers = #tpu.dot_dimension_numbers<[1], [0], [0], [1], [0, 0, 1, 1], [], []>} : vector<72x4xbf16>, vector<4x128xbf16>, vector<72x128xf32> -> vector<72x128xf32>
    %70 = arith.addf %66, %69 : vector<72x128xf32>
    %c0_91 = arith.constant 0 : index
    %c0_92 = arith.constant 0 : index
    %71 = vector.load %arg7[%c0_91, %c0_92] : memref<72x128xf32, #tpu.memory_space<vmem>>, vector<72x128xf32>
    tpu.vector_store %arg7[%c0_91, %c0_92], %70 {strides = array<i32>} : memref<72x128xf32, #tpu.memory_space<vmem>>, vector<72x128xf32>,
    %c0_93 = arith.constant 0 : index
    %c0_94 = arith.constant 0 : index
    %c10 = arith.constant 10 : index
    %c0_95 = arith.constant 0 : index
    %72 = vector.load %arg2[%c0_93, %c0_94, %c10, %c0_95] : memref<1x4x88x4xbf16, #tpu.memory_space<vmem>>, vector<1x1x72x4xbf16>
    %73 = vector.shape_cast %72 : vector<1x1x72x4xbf16> to vector<72x4xbf16>
    %c0_96 = arith.constant 0 : index
    %c0_97 = arith.constant 0 : index
    %74 = vector.load %arg7[%c0_96, %c0_97] : memref<72x128xf32, #tpu.memory_space<vmem>>, vector<72x128xf32>
    %c8 = arith.constant 8 : index
    %c0_98 = arith.constant 0 : index
    %c0_99 = arith.constant 0 : index
    %75 = vector.load %arg3[%c8, %c0_98, %c0_99] : memref<9x4x128xbf16, #tpu.memory_space<vmem>>, vector<1x4x128xbf16>
    %76 = vector.shape_cast %75 : vector<1x4x128xbf16> to vector<4x128xbf16>
    %cst_100 = arith.constant dense<0.000000e+00> : vector<72x128xf32>
    %77 = tpu.matmul %73, %76, %cst_100 {dimension_numbers = #tpu.dot_dimension_numbers<[1], [0], [0], [1], [0, 0, 1, 1], [], []>} : vector<72x4xbf16>, vector<4x128xbf16>, vector<72x128xf32> -> vector<72x128xf32>
    %78 = arith.addf %74, %77 : vector<72x128xf32>
    %c0_101 = arith.constant 0 : index
    %c0_102 = arith.constant 0 : index
    %79 = vector.load %arg7[%c0_101, %c0_102] : memref<72x128xf32, #tpu.memory_space<vmem>>, vector<72x128xf32>
    tpu.vector_store %arg7[%c0_101, %c0_102], %78 {strides = array<i32>} : memref<72x128xf32, #tpu.memory_space<vmem>>, vector<72x128xf32>,
    %c0_103 = arith.constant 0 : index
    %c0_104 = arith.constant 0 : index
    %80 = vector.load %arg7[%c0_103, %c0_104] : memref<72x128xf32, #tpu.memory_space<vmem>>, vector<72x128xf32>
    %81 = arith.mulf %80, %2 : vector<72x128xf32>
    %82 = arith.addf %81, %5 : vector<72x128xf32>
    %cst_105 = arith.constant 0.00999999977 : f32
    %83 = vector.broadcast %cst_105 : f32 to vector<72x128xf32>
    %84 = arith.mulf %83, %82 : vector<72x128xf32>
    %85 = arith.maximumf %82, %84 : vector<72x128xf32>
    %cst_106 = arith.constant 0.000000e+00 : f32
    %86 = vector.broadcast %cst_106 : f32 to vector<72x128xf32>
    %c0_107 = arith.constant 0 : index
    %c0_108 = arith.constant 0 : index
    %87 = vector.load %arg7[%c0_107, %c0_108] : memref<72x128xf32, #tpu.memory_space<vmem>>, vector<72x128xf32>
    tpu.vector_store %arg7[%c0_107, %c0_108], %86 {strides = array<i32>} : memref<72x128xf32, #tpu.memory_space<vmem>>, vector<72x128xf32>,
    %c0_109 = arith.constant 0 : index
    %c1_110 = arith.constant 1 : index
    %c0_111 = arith.constant 0 : index
    %c0_112 = arith.constant 0 : index
    %88 = vector.load %arg2[%c0_109, %c1_110, %c0_111, %c0_112] : memref<1x4x88x4xbf16, #tpu.memory_space<vmem>>, vector<1x1x72x4xbf16>
    %89 = vector.shape_cast %88 : vector<1x1x72x4xbf16> to vector<72x4xbf16>
    %c0_113 = arith.constant 0 : index
    %c0_114 = arith.constant 0 : index
    %90 = vector.load %arg7[%c0_113, %c0_114] : memref<72x128xf32, #tpu.memory_space<vmem>>, vector<72x128xf32>
    %c0_115 = arith.constant 0 : index
    %c0_116 = arith.constant 0 : index
    %c0_117 = arith.constant 0 : index
    %91 = vector.load %arg3[%c0_115, %c0_116, %c0_117] : memref<9x4x128xbf16, #tpu.memory_space<vmem>>, vector<1x4x128xbf16>
    %92 = vector.shape_cast %91 : vector<1x4x128xbf16> to vector<4x128xbf16>
    %cst_118 = arith.constant dense<0.000000e+00> : vector<72x128xf32>
    %93 = tpu.matmul %89, %92, %cst_118 {dimension_numbers = #tpu.dot_dimension_numbers<[1], [0], [0], [1], [0, 0, 1, 1], [], []>} : vector<72x4xbf16>, vector<4x128xbf16>, vector<72x128xf32> -> vector<72x128xf32>
    %94 = arith.addf %90, %93 : vector<72x128xf32>
    %c0_119 = arith.constant 0 : index
    %c0_120 = arith.constant 0 : index
    %95 = vector.load %arg7[%c0_119, %c0_120] : memref<72x128xf32, #tpu.memory_space<vmem>>, vector<72x128xf32>
    tpu.vector_store %arg7[%c0_119, %c0_120], %94 {strides = array<i32>} : memref<72x128xf32, #tpu.memory_space<vmem>>, vector<72x128xf32>,
    %c0_121 = arith.constant 0 : index
    %c0_122 = arith.constant 0 : index
    %c1_123 = arith.constant 1 : index
    %c0_124 = arith.constant 0 : index
    %96 = vector.load %arg2[%c0_121, %c0_122, %c1_123, %c0_124] : memref<1x4x88x4xbf16, #tpu.memory_space<vmem>>, vector<1x1x72x4xbf16>
    %97 = vector.shape_cast %96 : vector<1x1x72x4xbf16> to vector<72x4xbf16>
    %c0_125 = arith.constant 0 : index
    %c0_126 = arith.constant 0 : index
    %98 = vector.load %arg7[%c0_125, %c0_126] : memref<72x128xf32, #tpu.memory_space<vmem>>, vector<72x128xf32>
    %c1_127 = arith.constant 1 : index
    %c0_128 = arith.constant 0 : index
    %c0_129 = arith.constant 0 : index
    %99 = vector.load %arg3[%c1_127, %c0_128, %c0_129] : memref<9x4x128xbf16, #tpu.memory_space<vmem>>, vector<1x4x128xbf16>
    %100 = vector.shape_cast %99 : vector<1x4x128xbf16> to vector<4x128xbf16>
    %cst_130 = arith.constant dense<0.000000e+00> : vector<72x128xf32>
    %101 = tpu.matmul %97, %100, %cst_130 {dimension_numbers = #tpu.dot_dimension_numbers<[1], [0], [0], [1], [0, 0, 1, 1], [], []>} : vector<72x4xbf16>, vector<4x128xbf16>, vector<72x128xf32> -> vector<72x128xf32>
    %102 = arith.addf %98, %101 : vector<72x128xf32>
    %c0_131 = arith.constant 0 : index
    %c0_132 = arith.constant 0 : index
    %103 = vector.load %arg7[%c0_131, %c0_132] : memref<72x128xf32, #tpu.memory_space<vmem>>, vector<72x128xf32>
    tpu.vector_store %arg7[%c0_131, %c0_132], %102 {strides = array<i32>} : memref<72x128xf32, #tpu.memory_space<vmem>>, vector<72x128xf32>,
    %c0_133 = arith.constant 0 : index
    %c1_134 = arith.constant 1 : index
    %c1_135 = arith.constant 1 : index
    %c0_136 = arith.constant 0 : index
    %104 = vector.load %arg2[%c0_133, %c1_134, %c1_135, %c0_136] : memref<1x4x88x4xbf16, #tpu.memory_space<vmem>>, vector<1x1x72x4xbf16>
    %105 = vector.shape_cast %104 : vector<1x1x72x4xbf16> to vector<72x4xbf16>
    %c0_137 = arith.constant 0 : index
    %c0_138 = arith.constant 0 : index
    %106 = vector.load %arg7[%c0_137, %c0_138] : memref<72x128xf32, #tpu.memory_space<vmem>>, vector<72x128xf32>
    %c2_139 = arith.constant 2 : index
    %c0_140 = arith.constant 0 : index
    %c0_141 = arith.constant 0 : index
    %107 = vector.load %arg3[%c2_139, %c0_140, %c0_141] : memref<9x4x128xbf16, #tpu.memory_space<vmem>>, vector<1x4x128xbf16>
    %108 = vector.shape_cast %107 : vector<1x4x128xbf16> to vector<4x128xbf16>
    %cst_142 = arith.constant dense<0.000000e+00> : vector<72x128xf32>
    %109 = tpu.matmul %105, %108, %cst_142 {dimension_numbers = #tpu.dot_dimension_numbers<[1], [0], [0], [1], [0, 0, 1, 1], [], []>} : vector<72x4xbf16>, vector<4x128xbf16>, vector<72x128xf32> -> vector<72x128xf32>
    %110 = arith.addf %106, %109 : vector<72x128xf32>
    %c0_143 = arith.constant 0 : index
    %c0_144 = arith.constant 0 : index
    %111 = vector.load %arg7[%c0_143, %c0_144] : memref<72x128xf32, #tpu.memory_space<vmem>>, vector<72x128xf32>
    tpu.vector_store %arg7[%c0_143, %c0_144], %110 {strides = array<i32>} : memref<72x128xf32, #tpu.memory_space<vmem>>, vector<72x128xf32>,
    %c0_145 = arith.constant 0 : index
    %c3_146 = arith.constant 3 : index
    %c0_147 = arith.constant 0 : index
    %c0_148 = arith.constant 0 : index
    %112 = vector.load %arg2[%c0_145, %c3_146, %c0_147, %c0_148] : memref<1x4x88x4xbf16, #tpu.memory_space<vmem>>, vector<1x1x72x4xbf16>
    %113 = vector.shape_cast %112 : vector<1x1x72x4xbf16> to vector<72x4xbf16>
    %c0_149 = arith.constant 0 : index
    %c0_150 = arith.constant 0 : index
    %114 = vector.load %arg7[%c0_149, %c0_150] : memref<72x128xf32, #tpu.memory_space<vmem>>, vector<72x128xf32>
    %c3_151 = arith.constant 3 : index
    %c0_152 = arith.constant 0 : index
    %c0_153 = arith.constant 0 : index
    %115 = vector.load %arg3[%c3_151, %c0_152, %c0_153] : memref<9x4x128xbf16, #tpu.memory_space<vmem>>, vector<1x4x128xbf16>
    %116 = vector.shape_cast %115 : vector<1x4x128xbf16> to vector<4x128xbf16>
    %cst_154 = arith.constant dense<0.000000e+00> : vector<72x128xf32>
    %117 = tpu.matmul %113, %116, %cst_154 {dimension_numbers = #tpu.dot_dimension_numbers<[1], [0], [0], [1], [0, 0, 1, 1], [], []>} : vector<72x4xbf16>, vector<4x128xbf16>, vector<72x128xf32> -> vector<72x128xf32>
    %118 = arith.addf %114, %117 : vector<72x128xf32>
    %c0_155 = arith.constant 0 : index
    %c0_156 = arith.constant 0 : index
    %119 = vector.load %arg7[%c0_155, %c0_156] : memref<72x128xf32, #tpu.memory_space<vmem>>, vector<72x128xf32>
    tpu.vector_store %arg7[%c0_155, %c0_156], %118 {strides = array<i32>} : memref<72x128xf32, #tpu.memory_space<vmem>>, vector<72x128xf32>,
    %c0_157 = arith.constant 0 : index
    %c2_158 = arith.constant 2 : index
    %c1_159 = arith.constant 1 : index
    %c0_160 = arith.constant 0 : index
    %120 = vector.load %arg2[%c0_157, %c2_158, %c1_159, %c0_160] : memref<1x4x88x4xbf16, #tpu.memory_space<vmem>>, vector<1x1x72x4xbf16>
    %121 = vector.shape_cast %120 : vector<1x1x72x4xbf16> to vector<72x4xbf16>
    %c0_161 = arith.constant 0 : index
    %c0_162 = arith.constant 0 : index
    %122 = vector.load %arg7[%c0_161, %c0_162] : memref<72x128xf32, #tpu.memory_space<vmem>>, vector<72x128xf32>
    %c4_163 = arith.constant 4 : index
    %c0_164 = arith.constant 0 : index
    %c0_165 = arith.constant 0 : index
    %123 = vector.load %arg3[%c4_163, %c0_164, %c0_165] : memref<9x4x128xbf16, #tpu.memory_space<vmem>>, vector<1x4x128xbf16>
    %124 = vector.shape_cast %123 : vector<1x4x128xbf16> to vector<4x128xbf16>
    %cst_166 = arith.constant dense<0.000000e+00> : vector<72x128xf32>
    %125 = tpu.matmul %121, %124, %cst_166 {dimension_numbers = #tpu.dot_dimension_numbers<[1], [0], [0], [1], [0, 0, 1, 1], [], []>} : vector<72x4xbf16>, vector<4x128xbf16>, vector<72x128xf32> -> vector<72x128xf32>
    %126 = arith.addf %122, %125 : vector<72x128xf32>
    %c0_167 = arith.constant 0 : index
    %c0_168 = arith.constant 0 : index
    %127 = vector.load %arg7[%c0_167, %c0_168] : memref<72x128xf32, #tpu.memory_space<vmem>>, vector<72x128xf32>
    tpu.vector_store %arg7[%c0_167, %c0_168], %126 {strides = array<i32>} : memref<72x128xf32, #tpu.memory_space<vmem>>, vector<72x128xf32>,
    %c0_169 = arith.constant 0 : index
    %c3_170 = arith.constant 3 : index
    %c1_171 = arith.constant 1 : index
    %c0_172 = arith.constant 0 : index
    %128 = vector.load %arg2[%c0_169, %c3_170, %c1_171, %c0_172] : memref<1x4x88x4xbf16, #tpu.memory_space<vmem>>, vector<1x1x72x4xbf16>
    %129 = vector.shape_cast %128 : vector<1x1x72x4xbf16> to vector<72x4xbf16>
    %c0_173 = arith.constant 0 : index
    %c0_174 = arith.constant 0 : index
    %130 = vector.load %arg7[%c0_173, %c0_174] : memref<72x128xf32, #tpu.memory_space<vmem>>, vector<72x128xf32>
    %c5_175 = arith.constant 5 : index
    %c0_176 = arith.constant 0 : index
    %c0_177 = arith.constant 0 : index
    %131 = vector.load %arg3[%c5_175, %c0_176, %c0_177] : memref<9x4x128xbf16, #tpu.memory_space<vmem>>, vector<1x4x128xbf16>
    %132 = vector.shape_cast %131 : vector<1x4x128xbf16> to vector<4x128xbf16>
    %cst_178 = arith.constant dense<0.000000e+00> : vector<72x128xf32>
    %133 = tpu.matmul %129, %132, %cst_178 {dimension_numbers = #tpu.dot_dimension_numbers<[1], [0], [0], [1], [0, 0, 1, 1], [], []>} : vector<72x4xbf16>, vector<4x128xbf16>, vector<72x128xf32> -> vector<72x128xf32>
    %134 = arith.addf %130, %133 : vector<72x128xf32>
    %c0_179 = arith.constant 0 : index
    %c0_180 = arith.constant 0 : index
    %135 = vector.load %arg7[%c0_179, %c0_180] : memref<72x128xf32, #tpu.memory_space<vmem>>, vector<72x128xf32>
    tpu.vector_store %arg7[%c0_179, %c0_180], %134 {strides = array<i32>} : memref<72x128xf32, #tpu.memory_space<vmem>>, vector<72x128xf32>,
    %c0_181 = arith.constant 0 : index
    %c1_182 = arith.constant 1 : index
    %c9_183 = arith.constant 9 : index
    %c0_184 = arith.constant 0 : index
    %136 = vector.load %arg2[%c0_181, %c1_182, %c9_183, %c0_184] : memref<1x4x88x4xbf16, #tpu.memory_space<vmem>>, vector<1x1x72x4xbf16>
    %137 = vector.shape_cast %136 : vector<1x1x72x4xbf16> to vector<72x4xbf16>
    %c0_185 = arith.constant 0 : index
    %c0_186 = arith.constant 0 : index
    %138 = vector.load %arg7[%c0_185, %c0_186] : memref<72x128xf32, #tpu.memory_space<vmem>>, vector<72x128xf32>
    %c6_187 = arith.constant 6 : index
    %c0_188 = arith.constant 0 : index
    %c0_189 = arith.constant 0 : index
    %139 = vector.load %arg3[%c6_187, %c0_188, %c0_189] : memref<9x4x128xbf16, #tpu.memory_space<vmem>>, vector<1x4x128xbf16>
    %140 = vector.shape_cast %139 : vector<1x4x128xbf16> to vector<4x128xbf16>
    %cst_190 = arith.constant dense<0.000000e+00> : vector<72x128xf32>
    %141 = tpu.matmul %137, %140, %cst_190 {dimension_numbers = #tpu.dot_dimension_numbers<[1], [0], [0], [1], [0, 0, 1, 1], [], []>} : vector<72x4xbf16>, vector<4x128xbf16>, vector<72x128xf32> -> vector<72x128xf32>
    %142 = arith.addf %138, %141 : vector<72x128xf32>
    %c0_191 = arith.constant 0 : index
    %c0_192 = arith.constant 0 : index
    %143 = vector.load %arg7[%c0_191, %c0_192] : memref<72x128xf32, #tpu.memory_space<vmem>>, vector<72x128xf32>
    tpu.vector_store %arg7[%c0_191, %c0_192], %142 {strides = array<i32>} : memref<72x128xf32, #tpu.memory_space<vmem>>, vector<72x128xf32>,
    %c0_193 = arith.constant 0 : index
    %c0_194 = arith.constant 0 : index
    %c10_195 = arith.constant 10 : index
    %c0_196 = arith.constant 0 : index
    %144 = vector.load %arg2[%c0_193, %c0_194, %c10_195, %c0_196] : memref<1x4x88x4xbf16, #tpu.memory_space<vmem>>, vector<1x1x72x4xbf16>
    %145 = vector.shape_cast %144 : vector<1x1x72x4xbf16> to vector<72x4xbf16>
    %c0_197 = arith.constant 0 : index
    %c0_198 = arith.constant 0 : index
    %146 = vector.load %arg7[%c0_197, %c0_198] : memref<72x128xf32, #tpu.memory_space<vmem>>, vector<72x128xf32>
    %c7_199 = arith.constant 7 : index
    %c0_200 = arith.constant 0 : index
    %c0_201 = arith.constant 0 : index
    %147 = vector.load %arg3[%c7_199, %c0_200, %c0_201] : memref<9x4x128xbf16, #tpu.memory_space<vmem>>, vector<1x4x128xbf16>
    %148 = vector.shape_cast %147 : vector<1x4x128xbf16> to vector<4x128xbf16>
    %cst_202 = arith.constant dense<0.000000e+00> : vector<72x128xf32>
    %149 = tpu.matmul %145, %148, %cst_202 {dimension_numbers = #tpu.dot_dimension_numbers<[1], [0], [0], [1], [0, 0, 1, 1], [], []>} : vector<72x4xbf16>, vector<4x128xbf16>, vector<72x128xf32> -> vector<72x128xf32>
    %150 = arith.addf %146, %149 : vector<72x128xf32>
    %c0_203 = arith.constant 0 : index
    %c0_204 = arith.constant 0 : index
    %151 = vector.load %arg7[%c0_203, %c0_204] : memref<72x128xf32, #tpu.memory_space<vmem>>, vector<72x128xf32>
    tpu.vector_store %arg7[%c0_203, %c0_204], %150 {strides = array<i32>} : memref<72x128xf32, #tpu.memory_space<vmem>>, vector<72x128xf32>,
    %c0_205 = arith.constant 0 : index
    %c1_206 = arith.constant 1 : index
    %c10_207 = arith.constant 10 : index
    %c0_208 = arith.constant 0 : index
    %152 = vector.load %arg2[%c0_205, %c1_206, %c10_207, %c0_208] : memref<1x4x88x4xbf16, #tpu.memory_space<vmem>>, vector<1x1x72x4xbf16>
    %153 = vector.shape_cast %152 : vector<1x1x72x4xbf16> to vector<72x4xbf16>
    %c0_209 = arith.constant 0 : index
    %c0_210 = arith.constant 0 : index
    %154 = vector.load %arg7[%c0_209, %c0_210] : memref<72x128xf32, #tpu.memory_space<vmem>>, vector<72x128xf32>
    %c8_211 = arith.constant 8 : index
    %c0_212 = arith.constant 0 : index
    %c0_213 = arith.constant 0 : index
    %155 = vector.load %arg3[%c8_211, %c0_212, %c0_213] : memref<9x4x128xbf16, #tpu.memory_space<vmem>>, vector<1x4x128xbf16>
    %156 = vector.shape_cast %155 : vector<1x4x128xbf16> to vector<4x128xbf16>
    %cst_214 = arith.constant dense<0.000000e+00> : vector<72x128xf32>
    %157 = tpu.matmul %153, %156, %cst_214 {dimension_numbers = #tpu.dot_dimension_numbers<[1], [0], [0], [1], [0, 0, 1, 1], [], []>} : vector<72x4xbf16>, vector<4x128xbf16>, vector<72x128xf32> -> vector<72x128xf32>
    %158 = arith.addf %154, %157 : vector<72x128xf32>
    %c0_215 = arith.constant 0 : index
    %c0_216 = arith.constant 0 : index
    %159 = vector.load %arg7[%c0_215, %c0_216] : memref<72x128xf32, #tpu.memory_space<vmem>>, vector<72x128xf32>
    tpu.vector_store %arg7[%c0_215, %c0_216], %158 {strides = array<i32>} : memref<72x128xf32, #tpu.memory_space<vmem>>, vector<72x128xf32>,
    %c0_217 = arith.constant 0 : index
    %c0_218 = arith.constant 0 : index
    %160 = vector.load %arg7[%c0_217, %c0_218] : memref<72x128xf32, #tpu.memory_space<vmem>>, vector<72x128xf32>
    %161 = arith.mulf %160, %2 : vector<72x128xf32>
    %162 = arith.addf %161, %5 : vector<72x128xf32>
    %cst_219 = arith.constant 0.00999999977 : f32
    %163 = vector.broadcast %cst_219 : f32 to vector<72x128xf32>
    %164 = arith.mulf %163, %162 : vector<72x128xf32>
    %165 = arith.maximumf %162, %164 : vector<72x128xf32>
    %166 = arith.maximumf %85, %165 : vector<72x128xf32>
    %cst_220 = arith.constant 0.000000e+00 : f32
    %167 = vector.broadcast %cst_220 : f32 to vector<72x128xf32>
    %c0_221 = arith.constant 0 : index
    %c0_222 = arith.constant 0 : index
    %168 = vector.load %arg7[%c0_221, %c0_222] : memref<72x128xf32, #tpu.memory_space<vmem>>, vector<72x128xf32>
    tpu.vector_store %arg7[%c0_221, %c0_222], %167 {strides = array<i32>} : memref<72x128xf32, #tpu.memory_space<vmem>>, vector<72x128xf32>,
    %c0_223 = arith.constant 0 : index
    %c2_224 = arith.constant 2 : index
    %c0_225 = arith.constant 0 : index
    %c0_226 = arith.constant 0 : index
    %169 = vector.load %arg2[%c0_223, %c2_224, %c0_225, %c0_226] : memref<1x4x88x4xbf16, #tpu.memory_space<vmem>>, vector<1x1x72x4xbf16>
    %170 = vector.shape_cast %169 : vector<1x1x72x4xbf16> to vector<72x4xbf16>
    %c0_227 = arith.constant 0 : index
    %c0_228 = arith.constant 0 : index
    %171 = vector.load %arg7[%c0_227, %c0_228] : memref<72x128xf32, #tpu.memory_space<vmem>>, vector<72x128xf32>
    %c0_229 = arith.constant 0 : index
    %c0_230 = arith.constant 0 : index
    %c0_231 = arith.constant 0 : index
    %172 = vector.load %arg3[%c0_229, %c0_230, %c0_231] : memref<9x4x128xbf16, #tpu.memory_space<vmem>>, vector<1x4x128xbf16>
    %173 = vector.shape_cast %172 : vector<1x4x128xbf16> to vector<4x128xbf16>
    %cst_232 = arith.constant dense<0.000000e+00> : vector<72x128xf32>
    %174 = tpu.matmul %170, %173, %cst_232 {dimension_numbers = #tpu.dot_dimension_numbers<[1], [0], [0], [1], [0, 0, 1, 1], [], []>} : vector<72x4xbf16>, vector<4x128xbf16>, vector<72x128xf32> -> vector<72x128xf32>
    %175 = arith.addf %171, %174 : vector<72x128xf32>
    %c0_233 = arith.constant 0 : index
    %c0_234 = arith.constant 0 : index
    %176 = vector.load %arg7[%c0_233, %c0_234] : memref<72x128xf32, #tpu.memory_space<vmem>>, vector<72x128xf32>
    tpu.vector_store %arg7[%c0_233, %c0_234], %175 {strides = array<i32>} : memref<72x128xf32, #tpu.memory_space<vmem>>, vector<72x128xf32>,
    %c0_235 = arith.constant 0 : index
    %c3_236 = arith.constant 3 : index
    %c0_237 = arith.constant 0 : index
    %c0_238 = arith.constant 0 : index
    %177 = vector.load %arg2[%c0_235, %c3_236, %c0_237, %c0_238] : memref<1x4x88x4xbf16, #tpu.memory_space<vmem>>, vector<1x1x72x4xbf16>
    %178 = vector.shape_cast %177 : vector<1x1x72x4xbf16> to vector<72x4xbf16>
    %c0_239 = arith.constant 0 : index
    %c0_240 = arith.constant 0 : index
    %179 = vector.load %arg7[%c0_239, %c0_240] : memref<72x128xf32, #tpu.memory_space<vmem>>, vector<72x128xf32>
    %c1_241 = arith.constant 1 : index
    %c0_242 = arith.constant 0 : index
    %c0_243 = arith.constant 0 : index
    %180 = vector.load %arg3[%c1_241, %c0_242, %c0_243] : memref<9x4x128xbf16, #tpu.memory_space<vmem>>, vector<1x4x128xbf16>
    %181 = vector.shape_cast %180 : vector<1x4x128xbf16> to vector<4x128xbf16>
    %cst_244 = arith.constant dense<0.000000e+00> : vector<72x128xf32>
    %182 = tpu.matmul %178, %181, %cst_244 {dimension_numbers = #tpu.dot_dimension_numbers<[1], [0], [0], [1], [0, 0, 1, 1], [], []>} : vector<72x4xbf16>, vector<4x128xbf16>, vector<72x128xf32> -> vector<72x128xf32>
    %183 = arith.addf %179, %182 : vector<72x128xf32>
    %c0_245 = arith.constant 0 : index
    %c0_246 = arith.constant 0 : index
    %184 = vector.load %arg7[%c0_245, %c0_246] : memref<72x128xf32, #tpu.memory_space<vmem>>, vector<72x128xf32>
    tpu.vector_store %arg7[%c0_245, %c0_246], %183 {strides = array<i32>} : memref<72x128xf32, #tpu.memory_space<vmem>>, vector<72x128xf32>,
    %c0_247 = arith.constant 0 : index
    %c2_248 = arith.constant 2 : index
    %c1_249 = arith.constant 1 : index
    %c0_250 = arith.constant 0 : index
    %185 = vector.load %arg2[%c0_247, %c2_248, %c1_249, %c0_250] : memref<1x4x88x4xbf16, #tpu.memory_space<vmem>>, vector<1x1x72x4xbf16>
    %186 = vector.shape_cast %185 : vector<1x1x72x4xbf16> to vector<72x4xbf16>
    %c0_251 = arith.constant 0 : index
    %c0_252 = arith.constant 0 : index
    %187 = vector.load %arg7[%c0_251, %c0_252] : memref<72x128xf32, #tpu.memory_space<vmem>>, vector<72x128xf32>
    %c2_253 = arith.constant 2 : index
    %c0_254 = arith.constant 0 : index
    %c0_255 = arith.constant 0 : index
    %188 = vector.load %arg3[%c2_253, %c0_254, %c0_255] : memref<9x4x128xbf16, #tpu.memory_space<vmem>>, vector<1x4x128xbf16>
    %189 = vector.shape_cast %188 : vector<1x4x128xbf16> to vector<4x128xbf16>
    %cst_256 = arith.constant dense<0.000000e+00> : vector<72x128xf32>
    %190 = tpu.matmul %186, %189, %cst_256 {dimension_numbers = #tpu.dot_dimension_numbers<[1], [0], [0], [1], [0, 0, 1, 1], [], []>} : vector<72x4xbf16>, vector<4x128xbf16>, vector<72x128xf32> -> vector<72x128xf32>
    %191 = arith.addf %187, %190 : vector<72x128xf32>
    %c0_257 = arith.constant 0 : index
    %c0_258 = arith.constant 0 : index
    %192 = vector.load %arg7[%c0_257, %c0_258] : memref<72x128xf32, #tpu.memory_space<vmem>>, vector<72x128xf32>
    tpu.vector_store %arg7[%c0_257, %c0_258], %191 {strides = array<i32>} : memref<72x128xf32, #tpu.memory_space<vmem>>, vector<72x128xf32>,
    %c0_259 = arith.constant 0 : index
    %c0_260 = arith.constant 0 : index
    %c9_261 = arith.constant 9 : index
    %c0_262 = arith.constant 0 : index
    %193 = vector.load %arg2[%c0_259, %c0_260, %c9_261, %c0_262] : memref<1x4x88x4xbf16, #tpu.memory_space<vmem>>, vector<1x1x72x4xbf16>
    %194 = vector.shape_cast %193 : vector<1x1x72x4xbf16> to vector<72x4xbf16>
    %c0_263 = arith.constant 0 : index
    %c0_264 = arith.constant 0 : index
    %195 = vector.load %arg7[%c0_263, %c0_264] : memref<72x128xf32, #tpu.memory_space<vmem>>, vector<72x128xf32>
    %c3_265 = arith.constant 3 : index
    %c0_266 = arith.constant 0 : index
    %c0_267 = arith.constant 0 : index
    %196 = vector.load %arg3[%c3_265, %c0_266, %c0_267] : memref<9x4x128xbf16, #tpu.memory_space<vmem>>, vector<1x4x128xbf16>
    %197 = vector.shape_cast %196 : vector<1x4x128xbf16> to vector<4x128xbf16>
    %cst_268 = arith.constant dense<0.000000e+00> : vector<72x128xf32>
    %198 = tpu.matmul %194, %197, %cst_268 {dimension_numbers = #tpu.dot_dimension_numbers<[1], [0], [0], [1], [0, 0, 1, 1], [], []>} : vector<72x4xbf16>, vector<4x128xbf16>, vector<72x128xf32> -> vector<72x128xf32>
    %199 = arith.addf %195, %198 : vector<72x128xf32>
    %c0_269 = arith.constant 0 : index
    %c0_270 = arith.constant 0 : index
    %200 = vector.load %arg7[%c0_269, %c0_270] : memref<72x128xf32, #tpu.memory_space<vmem>>, vector<72x128xf32>
    tpu.vector_store %arg7[%c0_269, %c0_270], %199 {strides = array<i32>} : memref<72x128xf32, #tpu.memory_space<vmem>>, vector<72x128xf32>,
    %c0_271 = arith.constant 0 : index
    %c1_272 = arith.constant 1 : index
    %c9_273 = arith.constant 9 : index
    %c0_274 = arith.constant 0 : index
    %201 = vector.load %arg2[%c0_271, %c1_272, %c9_273, %c0_274] : memref<1x4x88x4xbf16, #tpu.memory_space<vmem>>, vector<1x1x72x4xbf16>
    %202 = vector.shape_cast %201 : vector<1x1x72x4xbf16> to vector<72x4xbf16>
    %c0_275 = arith.constant 0 : index
    %c0_276 = arith.constant 0 : index
    %203 = vector.load %arg7[%c0_275, %c0_276] : memref<72x128xf32, #tpu.memory_space<vmem>>, vector<72x128xf32>
    %c4_277 = arith.constant 4 : index
    %c0_278 = arith.constant 0 : index
    %c0_279 = arith.constant 0 : index
    %204 = vector.load %arg3[%c4_277, %c0_278, %c0_279] : memref<9x4x128xbf16, #tpu.memory_space<vmem>>, vector<1x4x128xbf16>
    %205 = vector.shape_cast %204 : vector<1x4x128xbf16> to vector<4x128xbf16>
    %cst_280 = arith.constant dense<0.000000e+00> : vector<72x128xf32>
    %206 = tpu.matmul %202, %205, %cst_280 {dimension_numbers = #tpu.dot_dimension_numbers<[1], [0], [0], [1], [0, 0, 1, 1], [], []>} : vector<72x4xbf16>, vector<4x128xbf16>, vector<72x128xf32> -> vector<72x128xf32>
    %207 = arith.addf %203, %206 : vector<72x128xf32>
    %c0_281 = arith.constant 0 : index
    %c0_282 = arith.constant 0 : index
    %208 = vector.load %arg7[%c0_281, %c0_282] : memref<72x128xf32, #tpu.memory_space<vmem>>, vector<72x128xf32>
    tpu.vector_store %arg7[%c0_281, %c0_282], %207 {strides = array<i32>} : memref<72x128xf32, #tpu.memory_space<vmem>>, vector<72x128xf32>,
    %c0_283 = arith.constant 0 : index
    %c0_284 = arith.constant 0 : index
    %c10_285 = arith.constant 10 : index
    %c0_286 = arith.constant 0 : index
    %209 = vector.load %arg2[%c0_283, %c0_284, %c10_285, %c0_286] : memref<1x4x88x4xbf16, #tpu.memory_space<vmem>>, vector<1x1x72x4xbf16>
    %210 = vector.shape_cast %209 : vector<1x1x72x4xbf16> to vector<72x4xbf16>
    %c0_287 = arith.constant 0 : index
    %c0_288 = arith.constant 0 : index
    %211 = vector.load %arg7[%c0_287, %c0_288] : memref<72x128xf32, #tpu.memory_space<vmem>>, vector<72x128xf32>
    %c5_289 = arith.constant 5 : index
    %c0_290 = arith.constant 0 : index
    %c0_291 = arith.constant 0 : index
    %212 = vector.load %arg3[%c5_289, %c0_290, %c0_291] : memref<9x4x128xbf16, #tpu.memory_space<vmem>>, vector<1x4x128xbf16>
    %213 = vector.shape_cast %212 : vector<1x4x128xbf16> to vector<4x128xbf16>
    %cst_292 = arith.constant dense<0.000000e+00> : vector<72x128xf32>
    %214 = tpu.matmul %210, %213, %cst_292 {dimension_numbers = #tpu.dot_dimension_numbers<[1], [0], [0], [1], [0, 0, 1, 1], [], []>} : vector<72x4xbf16>, vector<4x128xbf16>, vector<72x128xf32> -> vector<72x128xf32>
    %215 = arith.addf %211, %214 : vector<72x128xf32>
    %c0_293 = arith.constant 0 : index
    %c0_294 = arith.constant 0 : index
    %216 = vector.load %arg7[%c0_293, %c0_294] : memref<72x128xf32, #tpu.memory_space<vmem>>, vector<72x128xf32>
    tpu.vector_store %arg7[%c0_293, %c0_294], %215 {strides = array<i32>} : memref<72x128xf32, #tpu.memory_space<vmem>>, vector<72x128xf32>,
    %c0_295 = arith.constant 0 : index
    %c2_296 = arith.constant 2 : index
    %c9_297 = arith.constant 9 : index
    %c0_298 = arith.constant 0 : index
    %217 = vector.load %arg2[%c0_295, %c2_296, %c9_297, %c0_298] : memref<1x4x88x4xbf16, #tpu.memory_space<vmem>>, vector<1x1x72x4xbf16>
    %218 = vector.shape_cast %217 : vector<1x1x72x4xbf16> to vector<72x4xbf16>
    %c0_299 = arith.constant 0 : index
    %c0_300 = arith.constant 0 : index
    %219 = vector.load %arg7[%c0_299, %c0_300] : memref<72x128xf32, #tpu.memory_space<vmem>>, vector<72x128xf32>
    %c6_301 = arith.constant 6 : index
    %c0_302 = arith.constant 0 : index
    %c0_303 = arith.constant 0 : index
    %220 = vector.load %arg3[%c6_301, %c0_302, %c0_303] : memref<9x4x128xbf16, #tpu.memory_space<vmem>>, vector<1x4x128xbf16>
    %221 = vector.shape_cast %220 : vector<1x4x128xbf16> to vector<4x128xbf16>
    %cst_304 = arith.constant dense<0.000000e+00> : vector<72x128xf32>
    %222 = tpu.matmul %218, %221, %cst_304 {dimension_numbers = #tpu.dot_dimension_numbers<[1], [0], [0], [1], [0, 0, 1, 1], [], []>} : vector<72x4xbf16>, vector<4x128xbf16>, vector<72x128xf32> -> vector<72x128xf32>
    %223 = arith.addf %219, %222 : vector<72x128xf32>
    %c0_305 = arith.constant 0 : index
    %c0_306 = arith.constant 0 : index
    %224 = vector.load %arg7[%c0_305, %c0_306] : memref<72x128xf32, #tpu.memory_space<vmem>>, vector<72x128xf32>
    tpu.vector_store %arg7[%c0_305, %c0_306], %223 {strides = array<i32>} : memref<72x128xf32, #tpu.memory_space<vmem>>, vector<72x128xf32>,
    %c0_307 = arith.constant 0 : index
    %c3_308 = arith.constant 3 : index
    %c9_309 = arith.constant 9 : index
    %c0_310 = arith.constant 0 : index
    %225 = vector.load %arg2[%c0_307, %c3_308, %c9_309, %c0_310] : memref<1x4x88x4xbf16, #tpu.memory_space<vmem>>, vector<1x1x72x4xbf16>
    %226 = vector.shape_cast %225 : vector<1x1x72x4xbf16> to vector<72x4xbf16>
    %c0_311 = arith.constant 0 : index
    %c0_312 = arith.constant 0 : index
    %227 = vector.load %arg7[%c0_311, %c0_312] : memref<72x128xf32, #tpu.memory_space<vmem>>, vector<72x128xf32>
    %c7_313 = arith.constant 7 : index
    %c0_314 = arith.constant 0 : index
    %c0_315 = arith.constant 0 : index
    %228 = vector.load %arg3[%c7_313, %c0_314, %c0_315] : memref<9x4x128xbf16, #tpu.memory_space<vmem>>, vector<1x4x128xbf16>
    %229 = vector.shape_cast %228 : vector<1x4x128xbf16> to vector<4x128xbf16>
    %cst_316 = arith.constant dense<0.000000e+00> : vector<72x128xf32>
    %230 = tpu.matmul %226, %229, %cst_316 {dimension_numbers = #tpu.dot_dimension_numbers<[1], [0], [0], [1], [0, 0, 1, 1], [], []>} : vector<72x4xbf16>, vector<4x128xbf16>, vector<72x128xf32> -> vector<72x128xf32>
    %231 = arith.addf %227, %230 : vector<72x128xf32>
    %c0_317 = arith.constant 0 : index
    %c0_318 = arith.constant 0 : index
    %232 = vector.load %arg7[%c0_317, %c0_318] : memref<72x128xf32, #tpu.memory_space<vmem>>, vector<72x128xf32>
    tpu.vector_store %arg7[%c0_317, %c0_318], %231 {strides = array<i32>} : memref<72x128xf32, #tpu.memory_space<vmem>>, vector<72x128xf32>,
    %c0_319 = arith.constant 0 : index
    %c2_320 = arith.constant 2 : index
    %c10_321 = arith.constant 10 : index
    %c0_322 = arith.constant 0 : index
    %233 = vector.load %arg2[%c0_319, %c2_320, %c10_321, %c0_322] : memref<1x4x88x4xbf16, #tpu.memory_space<vmem>>, vector<1x1x72x4xbf16>
    %234 = vector.shape_cast %233 : vector<1x1x72x4xbf16> to vector<72x4xbf16>
    %c0_323 = arith.constant 0 : index
    %c0_324 = arith.constant 0 : index
    %235 = vector.load %arg7[%c0_323, %c0_324] : memref<72x128xf32, #tpu.memory_space<vmem>>, vector<72x128xf32>
    %c8_325 = arith.constant 8 : index
    %c0_326 = arith.constant 0 : index
    %c0_327 = arith.constant 0 : index
    %236 = vector.load %arg3[%c8_325, %c0_326, %c0_327] : memref<9x4x128xbf16, #tpu.memory_space<vmem>>, vector<1x4x128xbf16>
    %237 = vector.shape_cast %236 : vector<1x4x128xbf16> to vector<4x128xbf16>
    %cst_328 = arith.constant dense<0.000000e+00> : vector<72x128xf32>
    %238 = tpu.matmul %234, %237, %cst_328 {dimension_numbers = #tpu.dot_dimension_numbers<[1], [0], [0], [1], [0, 0, 1, 1], [], []>} : vector<72x4xbf16>, vector<4x128xbf16>, vector<72x128xf32> -> vector<72x128xf32>
    %239 = arith.addf %235, %238 : vector<72x128xf32>
    %c0_329 = arith.constant 0 : index
    %c0_330 = arith.constant 0 : index
    %240 = vector.load %arg7[%c0_329, %c0_330] : memref<72x128xf32, #tpu.memory_space<vmem>>, vector<72x128xf32>
    tpu.vector_store %arg7[%c0_329, %c0_330], %239 {strides = array<i32>} : memref<72x128xf32, #tpu.memory_space<vmem>>, vector<72x128xf32>,
    %c0_331 = arith.constant 0 : index
    %c0_332 = arith.constant 0 : index
    %241 = vector.load %arg7[%c0_331, %c0_332] : memref<72x128xf32, #tpu.memory_space<vmem>>, vector<72x128xf32>
    %242 = arith.mulf %241, %2 : vector<72x128xf32>
    %243 = arith.addf %242, %5 : vector<72x128xf32>
    %cst_333 = arith.constant 0.00999999977 : f32
    %244 = vector.broadcast %cst_333 : f32 to vector<72x128xf32>
    %245 = arith.mulf %244, %243 : vector<72x128xf32>
    %246 = arith.maximumf %243, %245 : vector<72x128xf32>
    %247 = arith.maximumf %166, %246 : vector<72x128xf32>
    %cst_334 = arith.constant 0.000000e+00 : f32
    %248 = vector.broadcast %cst_334 : f32 to vector<72x128xf32>
    %c0_335 = arith.constant 0 : index
    %c0_336 = arith.constant 0 : index
    %249 = vector.load %arg7[%c0_335, %c0_336] : memref<72x128xf32, #tpu.memory_space<vmem>>, vector<72x128xf32>
    tpu.vector_store %arg7[%c0_335, %c0_336], %248 {strides = array<i32>} : memref<72x128xf32, #tpu.memory_space<vmem>>, vector<72x128xf32>,
    %c0_337 = arith.constant 0 : index
    %c3_338 = arith.constant 3 : index
    %c0_339 = arith.constant 0 : index
    %c0_340 = arith.constant 0 : index
    %250 = vector.load %arg2[%c0_337, %c3_338, %c0_339, %c0_340] : memref<1x4x88x4xbf16, #tpu.memory_space<vmem>>, vector<1x1x72x4xbf16>
    %251 = vector.shape_cast %250 : vector<1x1x72x4xbf16> to vector<72x4xbf16>
    %c0_341 = arith.constant 0 : index
    %c0_342 = arith.constant 0 : index
    %252 = vector.load %arg7[%c0_341, %c0_342] : memref<72x128xf32, #tpu.memory_space<vmem>>, vector<72x128xf32>
    %c0_343 = arith.constant 0 : index
    %c0_344 = arith.constant 0 : index
    %c0_345 = arith.constant 0 : index
    %253 = vector.load %arg3[%c0_343, %c0_344, %c0_345] : memref<9x4x128xbf16, #tpu.memory_space<vmem>>, vector<1x4x128xbf16>
    %254 = vector.shape_cast %253 : vector<1x4x128xbf16> to vector<4x128xbf16>
    %cst_346 = arith.constant dense<0.000000e+00> : vector<72x128xf32>
    %255 = tpu.matmul %251, %254, %cst_346 {dimension_numbers = #tpu.dot_dimension_numbers<[1], [0], [0], [1], [0, 0, 1, 1], [], []>} : vector<72x4xbf16>, vector<4x128xbf16>, vector<72x128xf32> -> vector<72x128xf32>
    %256 = arith.addf %252, %255 : vector<72x128xf32>
    %c0_347 = arith.constant 0 : index
    %c0_348 = arith.constant 0 : index
    %257 = vector.load %arg7[%c0_347, %c0_348] : memref<72x128xf32, #tpu.memory_space<vmem>>, vector<72x128xf32>
    tpu.vector_store %arg7[%c0_347, %c0_348], %256 {strides = array<i32>} : memref<72x128xf32, #tpu.memory_space<vmem>>, vector<72x128xf32>,
    %c0_349 = arith.constant 0 : index
    %c2_350 = arith.constant 2 : index
    %c1_351 = arith.constant 1 : index
    %c0_352 = arith.constant 0 : index
    %258 = vector.load %arg2[%c0_349, %c2_350, %c1_351, %c0_352] : memref<1x4x88x4xbf16, #tpu.memory_space<vmem>>, vector<1x1x72x4xbf16>
    %259 = vector.shape_cast %258 : vector<1x1x72x4xbf16> to vector<72x4xbf16>
    %c0_353 = arith.constant 0 : index
    %c0_354 = arith.constant 0 : index
    %260 = vector.load %arg7[%c0_353, %c0_354] : memref<72x128xf32, #tpu.memory_space<vmem>>, vector<72x128xf32>
    %c1_355 = arith.constant 1 : index
    %c0_356 = arith.constant 0 : index
    %c0_357 = arith.constant 0 : index
    %261 = vector.load %arg3[%c1_355, %c0_356, %c0_357] : memref<9x4x128xbf16, #tpu.memory_space<vmem>>, vector<1x4x128xbf16>
    %262 = vector.shape_cast %261 : vector<1x4x128xbf16> to vector<4x128xbf16>
    %cst_358 = arith.constant dense<0.000000e+00> : vector<72x128xf32>
    %263 = tpu.matmul %259, %262, %cst_358 {dimension_numbers = #tpu.dot_dimension_numbers<[1], [0], [0], [1], [0, 0, 1, 1], [], []>} : vector<72x4xbf16>, vector<4x128xbf16>, vector<72x128xf32> -> vector<72x128xf32>
    %264 = arith.addf %260, %263 : vector<72x128xf32>
    %c0_359 = arith.constant 0 : index
    %c0_360 = arith.constant 0 : index
    %265 = vector.load %arg7[%c0_359, %c0_360] : memref<72x128xf32, #tpu.memory_space<vmem>>, vector<72x128xf32>
    tpu.vector_store %arg7[%c0_359, %c0_360], %264 {strides = array<i32>} : memref<72x128xf32, #tpu.memory_space<vmem>>, vector<72x128xf32>,
    %c0_361 = arith.constant 0 : index
    %c3_362 = arith.constant 3 : index
    %c1_363 = arith.constant 1 : index
    %c0_364 = arith.constant 0 : index
    %266 = vector.load %arg2[%c0_361, %c3_362, %c1_363, %c0_364] : memref<1x4x88x4xbf16, #tpu.memory_space<vmem>>, vector<1x1x72x4xbf16>
    %267 = vector.shape_cast %266 : vector<1x1x72x4xbf16> to vector<72x4xbf16>
    %c0_365 = arith.constant 0 : index
    %c0_366 = arith.constant 0 : index
    %268 = vector.load %arg7[%c0_365, %c0_366] : memref<72x128xf32, #tpu.memory_space<vmem>>, vector<72x128xf32>
    %c2_367 = arith.constant 2 : index
    %c0_368 = arith.constant 0 : index
    %c0_369 = arith.constant 0 : index
    %269 = vector.load %arg3[%c2_367, %c0_368, %c0_369] : memref<9x4x128xbf16, #tpu.memory_space<vmem>>, vector<1x4x128xbf16>
    %270 = vector.shape_cast %269 : vector<1x4x128xbf16> to vector<4x128xbf16>
    %cst_370 = arith.constant dense<0.000000e+00> : vector<72x128xf32>
    %271 = tpu.matmul %267, %270, %cst_370 {dimension_numbers = #tpu.dot_dimension_numbers<[1], [0], [0], [1], [0, 0, 1, 1], [], []>} : vector<72x4xbf16>, vector<4x128xbf16>, vector<72x128xf32> -> vector<72x128xf32>
    %272 = arith.addf %268, %271 : vector<72x128xf32>
    %c0_371 = arith.constant 0 : index
    %c0_372 = arith.constant 0 : index
    %273 = vector.load %arg7[%c0_371, %c0_372] : memref<72x128xf32, #tpu.memory_space<vmem>>, vector<72x128xf32>
    tpu.vector_store %arg7[%c0_371, %c0_372], %272 {strides = array<i32>} : memref<72x128xf32, #tpu.memory_space<vmem>>, vector<72x128xf32>,
    %c0_373 = arith.constant 0 : index
    %c1_374 = arith.constant 1 : index
    %c9_375 = arith.constant 9 : index
    %c0_376 = arith.constant 0 : index
    %274 = vector.load %arg2[%c0_373, %c1_374, %c9_375, %c0_376] : memref<1x4x88x4xbf16, #tpu.memory_space<vmem>>, vector<1x1x72x4xbf16>
    %275 = vector.shape_cast %274 : vector<1x1x72x4xbf16> to vector<72x4xbf16>
    %c0_377 = arith.constant 0 : index
    %c0_378 = arith.constant 0 : index
    %276 = vector.load %arg7[%c0_377, %c0_378] : memref<72x128xf32, #tpu.memory_space<vmem>>, vector<72x128xf32>
    %c3_379 = arith.constant 3 : index
    %c0_380 = arith.constant 0 : index
    %c0_381 = arith.constant 0 : index
    %277 = vector.load %arg3[%c3_379, %c0_380, %c0_381] : memref<9x4x128xbf16, #tpu.memory_space<vmem>>, vector<1x4x128xbf16>
    %278 = vector.shape_cast %277 : vector<1x4x128xbf16> to vector<4x128xbf16>
    %cst_382 = arith.constant dense<0.000000e+00> : vector<72x128xf32>
    %279 = tpu.matmul %275, %278, %cst_382 {dimension_numbers = #tpu.dot_dimension_numbers<[1], [0], [0], [1], [0, 0, 1, 1], [], []>} : vector<72x4xbf16>, vector<4x128xbf16>, vector<72x128xf32> -> vector<72x128xf32>
    %280 = arith.addf %276, %279 : vector<72x128xf32>
    %c0_383 = arith.constant 0 : index
    %c0_384 = arith.constant 0 : index
    %281 = vector.load %arg7[%c0_383, %c0_384] : memref<72x128xf32, #tpu.memory_space<vmem>>, vector<72x128xf32>
    tpu.vector_store %arg7[%c0_383, %c0_384], %280 {strides = array<i32>} : memref<72x128xf32, #tpu.memory_space<vmem>>, vector<72x128xf32>,
    %c0_385 = arith.constant 0 : index
    %c0_386 = arith.constant 0 : index
    %c10_387 = arith.constant 10 : index
    %c0_388 = arith.constant 0 : index
    %282 = vector.load %arg2[%c0_385, %c0_386, %c10_387, %c0_388] : memref<1x4x88x4xbf16, #tpu.memory_space<vmem>>, vector<1x1x72x4xbf16>
    %283 = vector.shape_cast %282 : vector<1x1x72x4xbf16> to vector<72x4xbf16>
    %c0_389 = arith.constant 0 : index
    %c0_390 = arith.constant 0 : index
    %284 = vector.load %arg7[%c0_389, %c0_390] : memref<72x128xf32, #tpu.memory_space<vmem>>, vector<72x128xf32>
    %c4_391 = arith.constant 4 : index
    %c0_392 = arith.constant 0 : index
    %c0_393 = arith.constant 0 : index
    %285 = vector.load %arg3[%c4_391, %c0_392, %c0_393] : memref<9x4x128xbf16, #tpu.memory_space<vmem>>, vector<1x4x128xbf16>
    %286 = vector.shape_cast %285 : vector<1x4x128xbf16> to vector<4x128xbf16>
    %cst_394 = arith.constant dense<0.000000e+00> : vector<72x128xf32>
    %287 = tpu.matmul %283, %286, %cst_394 {dimension_numbers = #tpu.dot_dimension_numbers<[1], [0], [0], [1], [0, 0, 1, 1], [], []>} : vector<72x4xbf16>, vector<4x128xbf16>, vector<72x128xf32> -> vector<72x128xf32>
    %288 = arith.addf %284, %287 : vector<72x128xf32>
    %c0_395 = arith.constant 0 : index
    %c0_396 = arith.constant 0 : index
    %289 = vector.load %arg7[%c0_395, %c0_396] : memref<72x128xf32, #tpu.memory_space<vmem>>, vector<72x128xf32>
    tpu.vector_store %arg7[%c0_395, %c0_396], %288 {strides = array<i32>} : memref<72x128xf32, #tpu.memory_space<vmem>>, vector<72x128xf32>,
    %c0_397 = arith.constant 0 : index
    %c1_398 = arith.constant 1 : index
    %c10_399 = arith.constant 10 : index
    %c0_400 = arith.constant 0 : index
    %290 = vector.load %arg2[%c0_397, %c1_398, %c10_399, %c0_400] : memref<1x4x88x4xbf16, #tpu.memory_space<vmem>>, vector<1x1x72x4xbf16>
    %291 = vector.shape_cast %290 : vector<1x1x72x4xbf16> to vector<72x4xbf16>
    %c0_401 = arith.constant 0 : index
    %c0_402 = arith.constant 0 : index
    %292 = vector.load %arg7[%c0_401, %c0_402] : memref<72x128xf32, #tpu.memory_space<vmem>>, vector<72x128xf32>
    %c5_403 = arith.constant 5 : index
    %c0_404 = arith.constant 0 : index
    %c0_405 = arith.constant 0 : index
    %293 = vector.load %arg3[%c5_403, %c0_404, %c0_405] : memref<9x4x128xbf16, #tpu.memory_space<vmem>>, vector<1x4x128xbf16>
    %294 = vector.shape_cast %293 : vector<1x4x128xbf16> to vector<4x128xbf16>
    %cst_406 = arith.constant dense<0.000000e+00> : vector<72x128xf32>
    %295 = tpu.matmul %291, %294, %cst_406 {dimension_numbers = #tpu.dot_dimension_numbers<[1], [0], [0], [1], [0, 0, 1, 1], [], []>} : vector<72x4xbf16>, vector<4x128xbf16>, vector<72x128xf32> -> vector<72x128xf32>
    %296 = arith.addf %292, %295 : vector<72x128xf32>
    %c0_407 = arith.constant 0 : index
    %c0_408 = arith.constant 0 : index
    %297 = vector.load %arg7[%c0_407, %c0_408] : memref<72x128xf32, #tpu.memory_space<vmem>>, vector<72x128xf32>
    tpu.vector_store %arg7[%c0_407, %c0_408], %296 {strides = array<i32>} : memref<72x128xf32, #tpu.memory_space<vmem>>, vector<72x128xf32>,
    %c0_409 = arith.constant 0 : index
    %c3_410 = arith.constant 3 : index
    %c9_411 = arith.constant 9 : index
    %c0_412 = arith.constant 0 : index
    %298 = vector.load %arg2[%c0_409, %c3_410, %c9_411, %c0_412] : memref<1x4x88x4xbf16, #tpu.memory_space<vmem>>, vector<1x1x72x4xbf16>
    %299 = vector.shape_cast %298 : vector<1x1x72x4xbf16> to vector<72x4xbf16>
    %c0_413 = arith.constant 0 : index
    %c0_414 = arith.constant 0 : index
    %300 = vector.load %arg7[%c0_413, %c0_414] : memref<72x128xf32, #tpu.memory_space<vmem>>, vector<72x128xf32>
    %c6_415 = arith.constant 6 : index
    %c0_416 = arith.constant 0 : index
    %c0_417 = arith.constant 0 : index
    %301 = vector.load %arg3[%c6_415, %c0_416, %c0_417] : memref<9x4x128xbf16, #tpu.memory_space<vmem>>, vector<1x4x128xbf16>
    %302 = vector.shape_cast %301 : vector<1x4x128xbf16> to vector<4x128xbf16>
    %cst_418 = arith.constant dense<0.000000e+00> : vector<72x128xf32>
    %303 = tpu.matmul %299, %302, %cst_418 {dimension_numbers = #tpu.dot_dimension_numbers<[1], [0], [0], [1], [0, 0, 1, 1], [], []>} : vector<72x4xbf16>, vector<4x128xbf16>, vector<72x128xf32> -> vector<72x128xf32>
    %304 = arith.addf %300, %303 : vector<72x128xf32>
    %c0_419 = arith.constant 0 : index
    %c0_420 = arith.constant 0 : index
    %305 = vector.load %arg7[%c0_419, %c0_420] : memref<72x128xf32, #tpu.memory_space<vmem>>, vector<72x128xf32>
    tpu.vector_store %arg7[%c0_419, %c0_420], %304 {strides = array<i32>} : memref<72x128xf32, #tpu.memory_space<vmem>>, vector<72x128xf32>,
    %c0_421 = arith.constant 0 : index
    %c2_422 = arith.constant 2 : index
    %c10_423 = arith.constant 10 : index
    %c0_424 = arith.constant 0 : index
    %306 = vector.load %arg2[%c0_421, %c2_422, %c10_423, %c0_424] : memref<1x4x88x4xbf16, #tpu.memory_space<vmem>>, vector<1x1x72x4xbf16>
    %307 = vector.shape_cast %306 : vector<1x1x72x4xbf16> to vector<72x4xbf16>
    %c0_425 = arith.constant 0 : index
    %c0_426 = arith.constant 0 : index
    %308 = vector.load %arg7[%c0_425, %c0_426] : memref<72x128xf32, #tpu.memory_space<vmem>>, vector<72x128xf32>
    %c7_427 = arith.constant 7 : index
    %c0_428 = arith.constant 0 : index
    %c0_429 = arith.constant 0 : index
    %309 = vector.load %arg3[%c7_427, %c0_428, %c0_429] : memref<9x4x128xbf16, #tpu.memory_space<vmem>>, vector<1x4x128xbf16>
    %310 = vector.shape_cast %309 : vector<1x4x128xbf16> to vector<4x128xbf16>
    %cst_430 = arith.constant dense<0.000000e+00> : vector<72x128xf32>
    %311 = tpu.matmul %307, %310, %cst_430 {dimension_numbers = #tpu.dot_dimension_numbers<[1], [0], [0], [1], [0, 0, 1, 1], [], []>} : vector<72x4xbf16>, vector<4x128xbf16>, vector<72x128xf32> -> vector<72x128xf32>
    %312 = arith.addf %308, %311 : vector<72x128xf32>
    %c0_431 = arith.constant 0 : index
    %c0_432 = arith.constant 0 : index
    %313 = vector.load %arg7[%c0_431, %c0_432] : memref<72x128xf32, #tpu.memory_space<vmem>>, vector<72x128xf32>
    tpu.vector_store %arg7[%c0_431, %c0_432], %312 {strides = array<i32>} : memref<72x128xf32, #tpu.memory_space<vmem>>, vector<72x128xf32>,
    %c0_433 = arith.constant 0 : index
    %c3_434 = arith.constant 3 : index
    %c10_435 = arith.constant 10 : index
    %c0_436 = arith.constant 0 : index
    %314 = vector.load %arg2[%c0_433, %c3_434, %c10_435, %c0_436] : memref<1x4x88x4xbf16, #tpu.memory_space<vmem>>, vector<1x1x72x4xbf16>
    %315 = vector.shape_cast %314 : vector<1x1x72x4xbf16> to vector<72x4xbf16>
    %c0_437 = arith.constant 0 : index
    %c0_438 = arith.constant 0 : index
    %316 = vector.load %arg7[%c0_437, %c0_438] : memref<72x128xf32, #tpu.memory_space<vmem>>, vector<72x128xf32>
    %c8_439 = arith.constant 8 : index
    %c0_440 = arith.constant 0 : index
    %c0_441 = arith.constant 0 : index
    %317 = vector.load %arg3[%c8_439, %c0_440, %c0_441] : memref<9x4x128xbf16, #tpu.memory_space<vmem>>, vector<1x4x128xbf16>
    %318 = vector.shape_cast %317 : vector<1x4x128xbf16> to vector<4x128xbf16>
    %cst_442 = arith.constant dense<0.000000e+00> : vector<72x128xf32>
    %319 = tpu.matmul %315, %318, %cst_442 {dimension_numbers = #tpu.dot_dimension_numbers<[1], [0], [0], [1], [0, 0, 1, 1], [], []>} : vector<72x4xbf16>, vector<4x128xbf16>, vector<72x128xf32> -> vector<72x128xf32>
    %320 = arith.addf %316, %319 : vector<72x128xf32>
    %c0_443 = arith.constant 0 : index
    %c0_444 = arith.constant 0 : index
    %321 = vector.load %arg7[%c0_443, %c0_444] : memref<72x128xf32, #tpu.memory_space<vmem>>, vector<72x128xf32>
    tpu.vector_store %arg7[%c0_443, %c0_444], %320 {strides = array<i32>} : memref<72x128xf32, #tpu.memory_space<vmem>>, vector<72x128xf32>,
    %c0_445 = arith.constant 0 : index
    %c0_446 = arith.constant 0 : index
    %322 = vector.load %arg7[%c0_445, %c0_446] : memref<72x128xf32, #tpu.memory_space<vmem>>, vector<72x128xf32>
    %323 = arith.mulf %322, %2 : vector<72x128xf32>
    %324 = arith.addf %323, %5 : vector<72x128xf32>
    %cst_447 = arith.constant 0.00999999977 : f32
    %325 = vector.broadcast %cst_447 : f32 to vector<72x128xf32>
    %326 = arith.mulf %325, %324 : vector<72x128xf32>
    %327 = arith.maximumf %324, %326 : vector<72x128xf32>
    %328 = arith.maximumf %247, %327 : vector<72x128xf32>
    %c0_448 = arith.constant 0 : index
    %c0_449 = arith.constant 0 : index
    %c0_450 = arith.constant 0 : index
    %329 = vector.load %arg6[%c0_448, %c0_449, %c0_450] : memref<1x72x128xf32, #tpu.memory_space<vmem>>, vector<1x72x128xf32>
    %330 = vector.shape_cast %329 : vector<1x72x128xf32> to vector<72x128xf32>
    %331 = vector.shape_cast %328 : vector<72x128xf32> to vector<1x72x128xf32>
    tpu.vector_store %arg6[%c0_448, %c0_449, %c0_450], %331 {strides = array<i32>} : memref<1x72x128xf32, #tpu.memory_space<vmem>>, vector<1x72x128xf32>,
    return
  }
  func.func @transform_0(%arg0: i32, %arg1: i32) -> (i32, i32, i32, i32) {
    %c0_i32 = arith.constant 0 : i32
    %c0_i32_0 = arith.constant 0 : i32
    %c0_i32_1 = arith.constant 0 : i32
    %c0_i32_2 = arith.constant 0 : i32
    return %arg0, %c0_i32, %c0_i32_0, %c0_i32_1 : i32, i32, i32, i32
  }
  func.func @transform_1(%arg0: i32, %arg1: i32) -> (i32, i32, i32) {
    %c0_i32 = arith.constant 0 : i32
    %c0_i32_0 = arith.constant 0 : i32
    %c0_i32_1 = arith.constant 0 : i32
    return %c0_i32, %c0_i32_0, %arg1 : i32, i32, i32
  }
  func.func @transform_2(%arg0: i32, %arg1: i32) -> (i32, i32) {
    %c0_i32 = arith.constant 0 : i32
    %c0_i32_0 = arith.constant 0 : i32
    return %c0_i32, %arg1 : i32, i32
  }
  func.func @transform_3(%arg0: i32, %arg1: i32) -> (i32, i32) {
    %c0_i32 = arith.constant 0 : i32
    %c0_i32_0 = arith.constant 0 : i32
    return %c0_i32, %arg1 : i32, i32
  }
  func.func @transform_4(%arg0: i32, %arg1: i32) -> (i32, i32, i32) {
    %c0_i32 = arith.constant 0 : i32
    %c0_i32_0 = arith.constant 0 : i32
    return %arg0, %c0_i32, %arg1 : i32, i32, i32
  }
}

</mosaic_0001>

<bundles_post_ra>
// kernel: tpu_custom_call.1
= control target key start
LH: loop header
LB: loop body
LE: loop exit
PB: predicated region body
PF: predicated region fallthrough
CT: control target
= control target key end

     0   :  { %9 = vsyncpa [#allocation4], 0  ;;  %s10875_s0 = inlined_call_operand.vmem [shape: bf16[2,4,88,4], index: 0, kind: input, shape index: {}]   ;;  %s10876_s1 = inlined_call_operand.vmem [shape: bf16[9,4,128], index: 1, kind: input, shape index: {}]   ;;  %s10877_s2 = inlined_call_operand.vmem [shape: f32[1,128], index: 2, kind: input, shape index: {}]   ;;  %s10878_s3 = inlined_call_operand.vmem [shape: f32[1,128], index: 3, kind: input, shape index: {}]   ;;  %s10879_s4 = inlined_call_operand.hbm [shape: f32[2,72,128], index: 4, kind: output, shape index: {}]  }
   0x1   :  { %11 = vsyncpa [#allocation4 + $0x1], 0  ;;  %s9597_s15 = smov 0   ;;  %s9599_s16 = smov 0  }
   0x2   :  { %s9601_s17 = smov 0   ;;  %s9603_s18 = smov 0  }
   0x3   :  { %s9605_s19 = smov 0   ;;  %s9607_s20 = smov 0  }
   0x4 LB: > { %s6927_s21 = sadd.s32 4294967295, %s9565_s20   ;;  %s6928_s22 = sadd.s32 4294967294, %s9565_s20   ;;  %s9565_s20 = sphi %s9607_s20, %s17_s20   ;;  %s9561_s19 = sphi %s9605_s19, %s10886_s19   ;;  %s9557_s18 = sphi %s9603_s18, %s10885_s18   ;;  %s9553_s17 = sphi %s9601_s17, %s10884_s17   ;;  %s9549_s16 = sphi %s9599_s16, %s10883_s16   ;;  %s9545_s15 = sphi %s9597_s15, %s10882_s15  }
   0x5   : > { %s29_s23 = sadd.s32 1, %s9561_s19  ;;  %s142_s24 = sadd.s32 1, %s9553_s17 }
   0x6   : > { %p31_p0 = scmp.ge.s32.totalorder %s29_s23, 2  ;;  %p152_p1 = scmp.ne.s32.totalorder %s9553_s17, %s9549_s16 }
   0x7   : > { %p153_p2 = scmp.eq.s32.totalorder %s6927_s21, 1  ;;  %p158_p3 = scmp.ne.s32.totalorder %s9549_s16, %s9545_s15 }
   0x8   : > { %s10888_s23 = smov (%p31_p0, %s29_s23), 0  ;;  %p159_p5 = scmp.eq.s32.totalorder %s6928_s22, 1 }
   0x9   : > { %p9637_p4 = por %p153_p2, %p152_p1  ;;  %s137_s26 = ssub.s32 %s9561_s19, %s10888_s23 }
   0xa   : > { %p6934_p6 = scmp.ge.s32.totalorder %s9565_s20, 1  ;;  %p140_p7 = scmp.eq.s32.totalorder %s137_s26, 0 }
   0xb   : > { %p9644_p8 = por %p159_p5, %p158_p3  ;;  %p204_p9 = scmp.lt.s32.totalorder %s9565_s20, 3 }
   0xc   : > { %s9650_s28 = scalar_select %p140_p7, %s9553_s17, %s142_s24  }
   0xd   : > { %p205_p10 = pnand %p6934_p6, %p204_p9 }
   0xe   : > { %v297_v0 = vld [vmem:[%s10876_s1] sm:$0x3] (!%p205_p10)  ;;  %vm337_vm0 = vcmask (!%p205_p10), 1041408   ;;  %v9567_v2 = vmov (!%p205_p10), 0.0   ;;  %p240_p11 = scmp.lt.s32.totalorder (!%p205_p10), %s9557_s18, 1  ;;  %vm9568_vm1 = vmmov (!%p205_p10), 0  }
   0xf   : > { %208 = sbr.rel (%p205_p10) target bundleno = 979 (0x3d3), region = 36  ;;  %v1896_v1 = vld [vmem:[%s10876_s1] sm:$0x3] (!%p205_p10)  ;;  %7811 = vmatprep.subr.bf16.mxu0 (!%p205_p10), %v9567_v2  ;;  %v339_v3 = vsel (!%p205_p10), %vm337_vm0, %v297_v0, 0  ;;  %8009 = vmatprep.subr.bf16.mxu1 (!%p205_p10), %v9567_v2  ;;  %v6957_v5 = vld [vmem:[%s10876_s1 + $0x2] sm:$0x3] (!%p205_p10) }
  0x10   : > { %v1936_v4 = vsel (!%p205_p10), %vm337_vm0, %v1896_v1, 0  ;;  %7812 = vmatpush3.bf16.msra.mxu0 (!%p205_p10), %v339_v3  ;;  %7813 = vmatprep.mubr.msk.bf16.mxu0 (!%p205_p10), %vm9568_vm1, %v9567_v2  ;;  %v7102_v6 = vld [vmem:[%s10876_s1 + $0x2] sm:$0x3] (!%p205_p10)  ;;  %vm321_vm2 = vcmask (!%p205_p10), 31744   ;;  %v491_v8 = vsel (!%p205_p10), %vm337_vm0, %v6957_v5, 0  ;;  %vm1706_vm4 = vcmask (!%p205_p10), 1046528  }
  0x11   : > { %8010 = vmatpush3.bf16.msra.mxu1 (!%p205_p10), %v1936_v4  ;;  %7833 = vmatprep.subr.bf16.mxu0 (!%p205_p10), %v9567_v2  ;;  %v2128_v10 = vsel (!%p205_p10), %vm337_vm0, %v7102_v6, 0  ;;  %v6968_v25 = vld [vmem:[%s10876_s1 + $0x4] sm:$0x3] (!%p205_p10)  ;;  %vm629_vm3 = vsmask.f32 (!%p205_p10), 7424  ;;  %s9245_s14 = smul.u32 (!%p205_p10), 1152, %s9557_s18 }
  0x12   : > { %8011 = vmatprep.mubr.msk.bf16.mxu1 (!%p205_p10), %vm9568_vm1, %v9567_v2  ;;  %8031 = vmatprep.subr.bf16.mxu1 (!%p205_p10), %v9567_v2  ;;  %v7123_v29 = vld [vmem:[%s10876_s1 + $0x4] sm:$0x3] (!%p205_p10)  ;;  %v685_v31 = vsel (!%p205_p10), %vm337_vm0, %v6968_v25, 0  ;;  %s9569_s5 = smov (!%p205_p10), [#allocation3]  }
  0x13   : > { %v2320_v35 = vsel (!%p205_p10), %vm337_vm0, %v7123_v29, 0  ;;  %s10822_s29 = scalar_lea.hbm (!%p205_p10), %s10879_s4, %s9245_s14  ;;  %s9491_s6 = sshll.u32 (!%p205_p10), %s9569_s5, 4  ;;  %s9492_s6 = int_to_ptr.vmem [resolvable:$false] %s9491_s6 }
  0x16   : > { %s241_s7 = scalar_select %p240_p11, %s9557_s18, 1 }
  0x18   : > { %s9244_s8 = smul.u32 176, %s241_s7  ;;  %s9493_s7 = scalar_lea.vmem %s9492_s6, 2304 }
  0x1a   : > { %s9679_s21 = scalar_lea.vmem %s10875_s0, %s9244_s8 }
  0x1b   : > { %v9305_v7 = vld [vmem:[%s9679_s21] sm:$0xff]   ;;  %v9306_v9 = vld [vmem:[%s9679_s21 + $0x2c] sm:$0xff]   ;;  %v9308_v12 = vld [vmem:[%s9679_s21 + $0x34] sm:$0xff]  }
  0x1c   : > { %7814 = vmatmul.mubr.msk.bf16.vlgmr.msra.gmra.mrb[0].mxu0 %vm321_vm2, %v9305_v7  ;;  %8012 = vmatmul.mubr.msk.bf16.vlgmr.msra.gmra.mrb[0].mxu1 %vm321_vm2, %v9306_v9  ;;  %v9307_v11 = vld [vmem:[%s9679_s21 + $0x8] sm:$0xff]   ;;  %v9309_v13 = vld [vmem:[%s9679_s21 + $0x10] sm:$0xff]   ;;  %v9310_v14 = vld [vmem:[%s9679_s21 + $0x3c] sm:$0xff]  }
  0x1d   : > { %7834 = vmatpush3.bf16.msra.mxu0 %v491_v8  ;;  %8032 = vmatpush3.bf16.msra.mxu1 %v2128_v10  ;;  %v9311_v15 = vld [vmem:[%s9679_s21 + $0x18] sm:$0xff]   ;;  %v9312_v16 = vld [vmem:[%s9679_s21 + $0x44] sm:$0xff]   ;;  %v9313_v20 = vld [vmem:[%s9679_s21 + $0x20] ss:$0 sps:$4 sm:$0xff]  }
  0x1e   : > { %7817 = vmatprep.mubr.msk.bf16.mxu0 %vm9568_vm1, %v9567_v2  ;;  %8015 = vmatprep.mubr.msk.bf16.mxu1 %vm9568_vm1, %v9567_v2  ;;  %v9316_v17 = vld [vmem:[%s9679_s21] sm:$0xff]   ;;  %v9317_v18 = vld [vmem:[%s9679_s21 + $0x8] sm:$0xff]   ;;  %v9319_v28 = vld [vmem:[%s9679_s21 + $0x10] sm:$0xff]  }
  0x1f   : > { %7855 = vmatprep.subr.bf16.mxu0 %v9567_v2  ;;  %8053 = vmatprep.subr.bf16.mxu1 %v9567_v2  ;;  %v2076_v19 = vshll.u32 %v9316_v17, 16  ;;  %v9314_v21 = vld [vmem:[%s9679_s21 + $0x4c] ss:$0 sps:$4 sm:$0xff]   ;;  %v2074_v22 = vshrl.u32 %v9316_v17, 16  ;;  %v2081_v24 = vshll.u32 %v9317_v18, 16  ;;  %v2085_v33 = vshrl.u32 %v9317_v18, 16 }
  0x20   : > { %v9315_v30 = vld [vmem:[%s9679_s21 + $0x2c] sm:$0xff]   ;;  %v2089_v34 = vshll.u32 %v9319_v28, 16  ;;  %v9321_v38 = vld [vmem:[%s9679_s21 + $0x18] sm:$0xff]   ;;  %v2093_v41 = vshrl.u32 %v9319_v28, 16  ;;  %v9323_v43 = vld [vmem:[%s9679_s21 + $0x20] sm:$0x1f]  }
  0x21   : > { %v2078_v23 = vrot.slane %v2076_v19, 1  ;;  %v2083_v27 = vrot.slane %v2081_v24, 1  ;;  %v9318_v39 = vld [vmem:[%s9679_s21 + $0x34] sm:$0xff]   ;;  %v2097_v42 = vshll.u32 %v9321_v38, 16  ;;  %v9320_v46 = vld [vmem:[%s9679_s21 + $0x3c] sm:$0xff]   ;;  %v2101_v47 = vshrl.u32 %v9321_v38, 16 }
  0x22   : > { %v2091_v37 = vrot.slane %v2089_v34, 1  ;;  %v2105_v48 = vshll.u32 %v9323_v43, 16  ;;  %v9322_v50 = vld [vmem:[%s9679_s21 + $0x44] sm:$0xff]   ;;  %v9327_v54 = vld [vmem:[%s9679_s21 + $0x2c] sm:$0xff]   ;;  %v2109_v56 = vshrl.u32 %v9323_v43, 16  ;;  %v9328_v59 = vld [vmem:[%s9679_s21 + $0x34] sm:$0xff]  }
  0x23   : > { %v2079_v26 = vor.u32 %v2078_v23, %v2074_v22  ;;  %v2087_v36 = vor.u32 %v2085_v33, %v2083_v27  ;;  %v2099_v45 = vrot.slane %v2097_v42, 1  ;;  %v9325_v53 = vld [vmem:[%s9679_s21] sm:$0xff]   ;;  %v9326_v57 = vld [vmem:[%s9679_s21 + $0x8] sm:$0xff]   ;;  %v2268_v61 = vshll.u32 %v9327_v54, 16  ;;  %v9329_v6 = vld [vmem:[%s9679_s21 + $0x10] sm:$0xff]  }
  0x24   : > { %7818 = vmatmul.mubr.msk.bf16.gmra.mrb[4].mxu0 %vm321_vm2, %v9307_v11  ;;  %8016 = vmatmul.mubr.msk.bf16.gmra.mrb[4].mxu1 %vm321_vm2, %v9308_v12  ;;  %v2095_v44 = vor.u32 %v2093_v41, %v2091_v37  ;;  %v2107_v52 = vrot.slane %v2105_v48, 1  ;;  %v633_v58 = vshll.u32 %v9325_v53, 16  ;;  %v9324_v60 = vld [vmem:[%s9679_s21 + $0x4c] ss:$0 sps:$4 sm:$0xff]   ;;  %v631_v62 = vshrl.u32 %v9325_v53, 16  ;;  %v9330_v8 = vld [vmem:[%s9679_s21 + $0x3c] sm:$0xff]  }
  0x25   : > { %7821 = vmatprep.mubr.msk.bf16.mxu0 %vm9568_vm1, %v9567_v2  ;;  %8019 = vmatprep.mubr.msk.bf16.mxu1 %vm9568_vm1, %v9567_v2  ;;  %v2084_v32 = vsel %vm629_vm3, %v2079_v26, %v2083_v27  ;;  %v2092_v40 = vsel %vm629_vm3, %v2087_v36, %v2091_v37  ;;  %v2103_v51 = vor.u32 %v2101_v47, %v2099_v45  ;;  %v638_v0 = vshll.u32 %v9326_v57, 16  ;;  %v6988_v7 = vld [vmem:[%s10876_s1 + $0x6] sm:$0x3] }
  0x26   : > { %v2100_v49 = vsel %vm629_vm3, %v2095_v44, %v2099_v45  ;;  %v635_v63 = vrot.slane %v633_v58, 1  ;;  %v2111_v1 = vor.u32 %v2109_v56, %v2107_v52  ;;  %v2266_v3 = vshrl.u32 %v9327_v54, 16  ;;  %v7143_v11 = vld [vmem:[%s10876_s1 + $0x6] sm:$0x3]  ;;  %v7008_v56 = vld [vmem:[%s10876_s1 + $0x8] sm:$0x3] }
  0x27   : > { %v2108_v55 = vsel %vm629_vm3, %v2103_v51, %v2107_v52  ;;  %v2273_v4 = vshll.u32 %v9328_v59, 16  ;;  %v2270_v5 = vrot.slane %v2268_v61, 1  ;;  %v640_v10 = vrot.slane %v638_v0, 1  ;;  %v9332_v25 = vld [vmem:[%s9679_s21 + $0x44] sm:$0xff]   ;;  %v9335_v58 = vld [vmem:[%s9679_s21 + $0x58] sm:$0xff]  }
  0x28   : > { %v636_v9 = vor.u32 %v635_v63, %v631_v62  ;;  %v2470_v17 = vsel %vm337_vm0, %v7143_v11, 0  ;;  %v642_v18 = vshrl.u32 %v9326_v57, 16  ;;  %v2277_v19 = vshrl.u32 %v9328_v59, 16  ;;  %v7164_v57 = vld [vmem:[%s10876_s1 + $0x8] sm:$0x3]  ;;  %v9337_v62 = vld [vmem:[%s9679_s21 + $0x60] sm:$0xff]  }
  0x29   : > { %v2271_v12 = vor.u32 %v2270_v5, %v2266_v3  ;;  %v650_v29 = vshrl.u32 %v9329_v6, 16  ;;  %v2293_v42 = vshrl.u32 %v9332_v25, 16  ;;  %v9336_v59 = vld [vmem:[%s9679_s21 + $0x84] sm:$0xff]   ;;  %v2662_v61 = vsel %vm337_vm0, %v7164_v57, 0  ;;  %v9338_v63 = vld [vmem:[%s9679_s21 + $0x8c] sm:$0xff]   ;;  %v9346_v5 = vld [vmem:[%s9679_s21 + $0x58] sm:$0xff]  }
  0x2a   : > { %v644_v26 = vor.u32 %v642_v18, %v640_v10  ;;  %v9339_v0 = vld [vmem:[%s9679_s21 + $0x68] sm:$0xff]   ;;  %v9341_v3 = vld [vmem:[%s9679_s21 + $0x70] sm:$0xff]  }
  0x2b   : > { %v9345_v18 = vld [vmem:[%s9679_s21 + $0x84] sm:$0xff]  }
  0x2c   : > { %7822 = vmatmul.mubr.msk.bf16.gmra.mrb[8].mxu0 %vm321_vm2, %v9309_v13  ;;  %8020 = vmatmul.mubr.msk.bf16.gmra.mrb[8].mxu1 %vm321_vm2, %v9310_v14  ;;  %v2275_v13 = vrot.slane %v2273_v4, 1  ;;  %v646_v14 = vshll.u32 %v9329_v6, 16  ;;  %v9342_v4 = vld [vmem:[%s9679_s21 + $0x9c] sm:$0xff]  }
  0x2d   : > { %7825 = vmatprep.mubr.msk.bf16.mxu0 %vm9568_vm1, %v9567_v2  ;;  %8023 = vmatprep.mubr.msk.bf16.mxu1 %vm9568_vm1, %v9567_v2  ;;  %v9347_v6 = vld [vmem:[%s9679_s21 + $0x60] sm:$0xff]  }
  0x2e   : > { %v2276_v22 = vsel %vm629_vm3, %v2271_v12, %v2275_v13  ;;  %v648_v23 = vrot.slane %v646_v14, 1  ;;  %v2279_v27 = vor.u32 %v2277_v19, %v2275_v13  ;;  %v2615_v12 = vshll.u32 %v9347_v6, 16  ;;  %v7029_v13 = vld [vmem:[%s10876_s1 + $0xa] sm:$0x3] }
  0x2f   : > { %v7185_v14 = vld [vmem:[%s10876_s1 + $0xa] sm:$0x3]  ;;  %v1182_v19 = vsel %vm337_vm0, %v7029_v13, 0 }
  0x30   : > { %v649_v33 = vsel %vm629_vm3, %v644_v26, %v648_v23  ;;  %v652_v36 = vor.u32 %v650_v29, %v648_v23  ;;  %v9351_v26 = vld [vmem:[%s9679_s21 + $0x70] sm:$0xff]  }
  0x34   : > { %7826 = vmatmul.mubr.msk.bf16.gmra.mrb[12].mxu0 %vm321_vm2, %v9311_v15  ;;  %8024 = vmatmul.mubr.msk.bf16.gmra.mrb[12].mxu1 %vm321_vm2, %v9312_v16  ;;  %v9331_v15 = vld [vmem:[%s9679_s21 + $0x18] sm:$0xff]   ;;  %v837_v16 = vsel %vm337_vm0, %v6988_v7, 0  ;;  %v2610_v7 = vshll.u32 %v9346_v5, 16 }
  0x35   : > { %7829 = vmatprep.mubr.msk.bf16.mxu0 %vm9568_vm1, %v9567_v2  ;;  %8027 = vmatprep.mubr.msk.bf16.mxu1 %vm9568_vm1, %v9567_v2  ;;  %v654_v24 = vshll.u32 %v9331_v15, 16  ;;  %v658_v41 = vshrl.u32 %v9331_v15, 16 }
  0x36   : > { %v2612_v11 = vrot.slane %v2610_v7, 1 }
  0x3c   : > { %7830 = vmatmul.mubr.msk.bf16.gmra.mrb[16].mxu0 %vm321_vm2, %v9313_v20  ;;  %8028 = vmatmul.mubr.msk.bf16.gmra.mrb[16].mxu1 %vm321_vm2, %v9314_v21  ;;  %v2281_v20 = vshll.u32 %v9330_v8, 16  ;;  %v641_v21 = vsel %vm629_vm3, %v636_v9, %v640_v10  ;;  %v9344_v9 = vld [vmem:[%s9679_s21 + $0xa4] ss:$0 sps:$4 sm:$0xff]   ;;  %v2608_v10 = vshrl.u32 %v9346_v5, 16 }
  0x3d   : > { %7835 = vmatprep.mubr.msk.bf16.mxu0 %vm9568_vm1, %v9567_v2  ;;  %8033 = vmatprep.mubr.msk.bf16.mxu1 %vm9568_vm1, %v9567_v2 }
  0x3e   : > { %v2283_v28 = vrot.slane %v2281_v20, 1  ;;  %v2613_v15 = vor.u32 %v2612_v11, %v2608_v10  ;;  %v2854_v20 = vsel %vm337_vm0, %v7185_v14, 0 }
  0x40   : > { %v2284_v34 = vsel %vm629_vm3, %v2279_v27, %v2283_v28  ;;  %v9348_v27 = vld [vmem:[%s9679_s21 + $0x8c] sm:$0xff]  }
  0x44   : > { %7836 = vmatmul.mubr.msk.bf16.vlgmr.msra.gmra.mrb[0].mxu0 %vm321_vm2, %v9315_v30  ;;  %8034 = vmatmul.mubr.msk.bf16.vlgmr.msra.gmra.mrb[0].mxu1 %vm321_vm2, %v2084_v32  ;;  %v656_v30 = vrot.slane %v654_v24, 1  ;;  %v2289_v32 = vshll.u32 %v9332_v25, 16 }
  0x45   : > { %7856 = vmatpush3.bf16.msra.mxu0 %v685_v31  ;;  %8054 = vmatpush3.bf16.msra.mxu1 %v2320_v35  ;;  %v2285_v31 = vshrl.u32 %v9330_v8, 16  ;;  %v9333_v35 = vld [vmem:[%s9679_s21 + $0x20] sm:$0x1f]   ;;  %v9343_v8 = vld [vmem:[%s9679_s21 + $0x78] ss:$0 sps:$4 sm:$0xff]  }
  0x46   : > { %7839 = vmatprep.mubr.msk.bf16.mxu0 %vm9568_vm1, %v9567_v2  ;;  %8037 = vmatprep.mubr.msk.bf16.mxu1 %vm9568_vm1, %v9567_v2  ;;  %v2291_v38 = vrot.slane %v2289_v32, 1  ;;  %v657_v43 = vsel %vm629_vm3, %v652_v36, %v656_v30  ;;  %v660_v47 = vor.u32 %v658_v41, %v656_v30  ;;  %v666_v52 = vshrl.u32 %v9333_v35, 16  ;;  %v9355_v41 = vld [vmem:[%s9679_s21 + $0x58] sm:$0xff]  }
  0x47   : > { %7877 = vmatprep.subr.bf16.mxu0 %v9567_v2  ;;  %8075 = vmatprep.subr.bf16.mxu1 %v9567_v2  ;;  %v2287_v37 = vor.u32 %v2285_v31, %v2283_v28  ;;  %v2631_v30 = vshll.u32 %v9351_v26, 16  ;;  %v2635_v36 = vshrl.u32 %v9351_v26, 16 }
  0x48   : > { %v2295_v48 = vor.u32 %v2293_v42, %v2291_v38 }
  0x49   : > { %v2292_v44 = vsel %vm629_vm3, %v2287_v37, %v2291_v38  ;;  %v2633_v32 = vrot.slane %v2631_v30, 1 }
  0x4b   : > { %v2637_v38 = vor.u32 %v2635_v36, %v2633_v32 }
  0x4c   : > { %7840 = vmatmul.mubr.msk.bf16.gmra.mrb[4].mxu0 %vm321_vm2, %v9318_v39  ;;  %8038 = vmatmul.mubr.msk.bf16.gmra.mrb[4].mxu1 %vm321_vm2, %v2092_v40  ;;  %v662_v39 = vshll.u32 %v9333_v35, 16  ;;  %v9334_v40 = vld [vmem:[%s9679_s21 + $0x4c] sm:$0x1f]  }
  0x4d   : > { %7843 = vmatprep.mubr.msk.bf16.mxu0 %vm9568_vm1, %v9567_v2  ;;  %8041 = vmatprep.mubr.msk.bf16.mxu1 %vm9568_vm1, %v9567_v2  ;;  %v2301_v53 = vshrl.u32 %v9334_v40, 16 }
  0x4e   : > { %v664_v45 = vrot.slane %v662_v39, 1 }
  0x50   : > { %v668_v54 = vor.u32 %v666_v52, %v664_v45 }
  0x54   : > { %7844 = vmatmul.mubr.msk.bf16.gmra.mrb[8].mxu0 %vm321_vm2, %v9320_v46  ;;  %8042 = vmatmul.mubr.msk.bf16.gmra.mrb[8].mxu1 %vm321_vm2, %v2100_v49  ;;  %v2297_v46 = vshll.u32 %v9334_v40, 16  ;;  %v9352_v40 = vld [vmem:[%s9679_s21 + $0x9c] sm:$0xff]  }
  0x55   : > { %7847 = vmatprep.mubr.msk.bf16.mxu0 %vm9568_vm1, %v9567_v2  ;;  %8045 = vmatprep.mubr.msk.bf16.mxu1 %vm9568_vm1, %v9567_v2 }
  0x56   : > { %v2299_v49 = vrot.slane %v2297_v46, 1  ;;  %v1130_v46 = vshll.u32 %v9355_v41, 16 }
  0x58   : > { %v2300_v51 = vsel %vm629_vm3, %v2295_v48, %v2299_v49  ;;  %v1132_v52 = vrot.slane %v1130_v46, 1  ;;  %v9368_v46 = vld [vmem:[%s9679_s21 + $0x38] sm:$0xff]  }
  0x5c   : > { %7848 = vmatmul.mubr.msk.bf16.gmra.mrb[12].mxu0 %vm321_vm2, %v9322_v50  ;;  %8046 = vmatmul.mubr.msk.bf16.gmra.mrb[12].mxu1 %vm321_vm2, %v2108_v55  ;;  %v665_v50 = vsel %vm629_vm3, %v660_v47, %v664_v45  ;;  %v2303_v55 = vor.u32 %v2301_v53, %v2299_v49  ;;  %v9356_v45 = vld [vmem:[%s9679_s21 + $0x60] sm:$0xff]   ;;  %v9358_v47 = vld [vmem:[%s9679_s21 + $0x8c] sm:$0xff]  }
  0x5d   : > { %7851 = vmatprep.mubr.msk.bf16.mxu0 %vm9568_vm1, %v9567_v2  ;;  %8049 = vmatprep.mubr.msk.bf16.mxu1 %vm9568_vm1, %v9567_v2  ;;  %v9354_v49 = vld [vmem:[%s9679_s21 + $0xa4] ss:$0 sps:$4 sm:$0xff]   ;;  %v1135_v53 = vshll.u32 %v9356_v45, 16  ;;  %v2811_v7 = vshrl.u32 %v9358_v47, 16 }
  0x64   : > { %7852 = vmatmul.mubr.msk.bf16.gmra.mrb[16].mxu0 %vm321_vm2, %v9324_v60  ;;  %8050 = vmatmul.mubr.msk.bf16.gmra.mrb[16].mxu1 %vm321_vm2, %v2111_v1  ;;  %v989_v60 = vsel %vm337_vm0, %v7008_v56, 0  ;;  %v9340_v1 = vld [vmem:[%s9679_s21 + $0x94] sm:$0xff]   ;;  %v2807_v56 = vshll.u32 %v9358_v47, 16 }
  0x65   : > { %7857 = vmatprep.mubr.msk.bf16.mxu0 %vm9568_vm1, %v9567_v2  ;;  %8055 = vmatprep.mubr.msk.bf16.mxu1 %vm9568_vm1, %v9567_v2 }
  0x6c   : > { %7858 = vmatmul.mubr.msk.bf16.vlgmr.msra.gmra.mrb[0].mxu0 %vm321_vm2, %v641_v21  ;;  %8056 = vmatmul.mubr.msk.bf16.vlgmr.msra.gmra.mrb[0].mxu1 %vm321_vm2, %v2276_v22  ;;  %v2619_v22 = vshrl.u32 %v9347_v6, 16 }
  0x6d   : > { %7878 = vmatpush3.bf16.msra.mxu0 %v837_v16  ;;  %8076 = vmatpush3.bf16.msra.mxu1 %v2470_v17  ;;  %v2617_v16 = vrot.slane %v2615_v12, 1  ;;  %v9349_v17 = vld [vmem:[%s9679_s21 + $0x68] sm:$0xff]   ;;  %v9361_v12 = vld [vmem:[%s9679_s21 + $0x70] sm:$0xff]  }
  0x6e   : > { %7861 = vmatprep.mubr.msk.bf16.mxu0 %vm9568_vm1, %v9567_v2  ;;  %8059 = vmatprep.mubr.msk.bf16.mxu1 %vm9568_vm1, %v9567_v2  ;;  %v2623_v23 = vshll.u32 %v9349_v17, 16  ;;  %v2627_v29 = vshrl.u32 %v9349_v17, 16 }
  0x6f   : > { %7899 = vmatprep.subr.bf16.mxu0 %v9567_v2  ;;  %8097 = vmatprep.subr.bf16.mxu1 %v9567_v2  ;;  %v2618_v21 = vsel %vm629_vm3, %v2613_v15, %v2617_v16  ;;  %v2621_v24 = vor.u32 %v2619_v22, %v2617_v16  ;;  %v9362_v15 = vld [vmem:[%s9679_s21 + $0x9c] sm:$0xff]  }
  0x70   : > { %v2625_v25 = vrot.slane %v2623_v23, 1 }
  0x72   : > { %v2626_v28 = vsel %vm629_vm3, %v2621_v24, %v2625_v25  ;;  %v2629_v31 = vor.u32 %v2627_v29, %v2625_v25  ;;  %v9363_v24 = vld [vmem:[%s9679_s21 + $0x78] sm:$0x1f]   ;;  %v1155_v29 = vshrl.u32 %v9361_v12, 16 }
  0x73   : > { %v1159_v30 = vshll.u32 %v9363_v24, 16 }
  0x74   : > { %7862 = vmatmul.mubr.msk.bf16.gmra.mrb[4].mxu0 %vm321_vm2, %v649_v33  ;;  %8060 = vmatmul.mubr.msk.bf16.gmra.mrb[4].mxu1 %vm321_vm2, %v2284_v34  ;;  %v9353_v33 = vld [vmem:[%s9679_s21 + $0x78] sm:$0x1f]   ;;  %v2634_v35 = vsel %vm629_vm3, %v2629_v31, %v2633_v32  ;;  %v2827_v32 = vshrl.u32 %v9362_v15, 16 }
  0x75   : > { %7865 = vmatprep.mubr.msk.bf16.mxu0 %vm9568_vm1, %v9567_v2  ;;  %8063 = vmatprep.mubr.msk.bf16.mxu1 %vm9568_vm1, %v9567_v2  ;;  %v9350_v34 = vld [vmem:[%s9679_s21 + $0x94] sm:$0xff]   ;;  %v2639_v37 = vshll.u32 %v9353_v33, 16 }
  0x77   : > { %v2641_v39 = vrot.slane %v2639_v37, 1 }
  0x79   : > { %v2642_v42 = vsel %vm629_vm3, %v2637_v38, %v2641_v39 }
  0x7c   : > { %7866 = vmatmul.mubr.msk.bf16.gmra.mrb[8].mxu0 %vm321_vm2, %v657_v43  ;;  %8064 = vmatmul.mubr.msk.bf16.gmra.mrb[8].mxu1 %vm321_vm2, %v2292_v44  ;;  %v9357_v43 = vld [vmem:[%s9679_s21 + $0x84] sm:$0xff]   ;;  %v2643_v44 = vshrl.u32 %v9353_v33, 16 }
  0x7d   : > { %7869 = vmatprep.mubr.msk.bf16.mxu0 %vm9568_vm1, %v9567_v2  ;;  %8067 = vmatprep.mubr.msk.bf16.mxu1 %vm9568_vm1, %v9567_v2  ;;  %v2802_v48 = vshll.u32 %v9357_v43, 16 }
  0x84   : > { %7870 = vmatmul.mubr.msk.bf16.gmra.mrb[12].mxu0 %vm321_vm2, %v665_v50  ;;  %8068 = vmatmul.mubr.msk.bf16.gmra.mrb[12].mxu1 %vm321_vm2, %v2300_v51  ;;  %v2645_v50 = vor.u32 %v2643_v44, %v2641_v39  ;;  %v1128_v51 = vshrl.u32 %v9355_v41, 16  ;;  %v9365_v39 = vld [vmem:[%s9679_s21 + $0x4] sm:$0xff]   ;;  %v9367_v41 = vld [vmem:[%s9679_s21 + $0x30] sm:$0xff]  }
  0x85   : > { %7873 = vmatprep.mubr.msk.bf16.mxu0 %vm9568_vm1, %v9567_v2  ;;  %8071 = vmatprep.mubr.msk.bf16.mxu1 %vm9568_vm1, %v9567_v2  ;;  %v9366_v44 = vld [vmem:[%s9679_s21 + $0xc] sm:$0xff]   ;;  %v2994_v47 = vshll.u32 %v9367_v41, 16 }
  0x86   : > { %v1133_v57 = vor.u32 %v1132_v52, %v1128_v51  ;;  %v1328_v52 = vshll.u32 %v9366_v44, 16 }
  0x8c   : > { %7874 = vmatmul.mubr.msk.bf16.gmra.mrb[16].mxu0 %vm321_vm2, %v668_v54  ;;  %8072 = vmatmul.mubr.msk.bf16.gmra.mrb[16].mxu1 %vm321_vm2, %v2303_v55  ;;  %v2800_v54 = vshrl.u32 %v9357_v43, 16  ;;  %v2804_v55 = vrot.slane %v2802_v48, 1 }
  0x8d   : > { %7879 = vmatprep.mubr.msk.bf16.mxu0 %vm9568_vm1, %v9567_v2  ;;  %8077 = vmatprep.mubr.msk.bf16.mxu1 %vm9568_vm1, %v9567_v2 }
  0x94   : > { %7880 = vmatmul.mubr.msk.bf16.vlgmr.msra.gmra.mrb[0].mxu0 %vm321_vm2, %v9335_v58  ;;  %8078 = vmatmul.mubr.msk.bf16.vlgmr.msra.gmra.mrb[0].mxu1 %vm321_vm2, %v9336_v59  ;;  %v1137_v58 = vrot.slane %v1135_v53, 1  ;;  %v9359_v59 = vld [vmem:[%s9679_s21 + $0x68] sm:$0xff]   ;;  %v2992_v53 = vshrl.u32 %v9367_v41, 16 }
  0x95   : > { %7900 = vmatpush3.bf16.msra.mxu0 %v989_v60  ;;  %8098 = vmatpush3.bf16.msra.mxu1 %v2662_v61  ;;  %v2805_v60 = vor.u32 %v2804_v55, %v2800_v54  ;;  %v2809_v61 = vrot.slane %v2807_v56, 1  ;;  %v1147_v17 = vshrl.u32 %v9359_v59, 16  ;;  %v2996_v54 = vrot.slane %v2994_v47, 1 }
  0x96   : > { %7883 = vmatprep.mubr.msk.bf16.mxu0 %vm9568_vm1, %v9567_v2  ;;  %8081 = vmatprep.mubr.msk.bf16.mxu1 %vm9568_vm1, %v9567_v2  ;;  %v2999_v55 = vshll.u32 %v9368_v46, 16 }
  0x97   : > { %7921 = vmatprep.subr.bf16.mxu0 %v9567_v2  ;;  %8119 = vmatprep.subr.bf16.mxu1 %v9567_v2  ;;  %v2810_v6 = vsel %vm629_vm3, %v2805_v60, %v2809_v61  ;;  %v2813_v13 = vor.u32 %v2811_v7, %v2809_v61  ;;  %v9370_v61 = vld [vmem:[%s9679_s21 + $0x40] sm:$0xff]  }
  0x98   : > { %v3001_v60 = vrot.slane %v2999_v55, 1  ;;  %v3007_v7 = vshll.u32 %v9370_v61, 16 }
  0x9c   : > { %7884 = vmatmul.mubr.msk.bf16.gmra.mrb[4].mxu0 %vm321_vm2, %v9337_v62  ;;  %8082 = vmatmul.mubr.msk.bf16.gmra.mrb[4].mxu1 %vm321_vm2, %v9338_v63  ;;  %v9360_v62 = vld [vmem:[%s9679_s21 + $0x94] sm:$0xff]   ;;  %v7040_v63 = vld [vmem:[%s10876_s1 + $0xc] sm:$0x3] }
  0x9d   : > { %7887 = vmatprep.mubr.msk.bf16.mxu0 %vm9568_vm1, %v9567_v2  ;;  %8085 = vmatprep.mubr.msk.bf16.mxu1 %vm9568_vm1, %v9567_v2  ;;  %v1375_v5 = vsel %vm337_vm0, %v7040_v63, 0  ;;  %v7217_v63 = vld [vmem:[%s10876_s1 + $0xe] sm:$0x3] }
  0xa4   : > { %7888 = vmatmul.mubr.msk.bf16.gmra.mrb[8].mxu0 %vm321_vm2, %v9339_v0  ;;  %8086 = vmatmul.mubr.msk.bf16.gmra.mrb[8].mxu1 %vm321_vm2, %v9340_v1  ;;  %v7206_v0 = vld [vmem:[%s10876_s1 + $0xc] sm:$0x3]  ;;  %v1138_v1 = vsel %vm629_vm3, %v1133_v57, %v1137_v58  ;;  %v1330_v57 = vrot.slane %v1328_v52, 1 }
  0xa5   : > { %7891 = vmatprep.mubr.msk.bf16.mxu0 %vm9568_vm1, %v9567_v2  ;;  %8089 = vmatprep.mubr.msk.bf16.mxu1 %vm9568_vm1, %v9567_v2 }
  0xac   : > { %7892 = vmatmul.mubr.msk.bf16.gmra.mrb[12].mxu0 %vm321_vm2, %v9341_v3  ;;  %8090 = vmatmul.mubr.msk.bf16.gmra.mrb[12].mxu1 %vm321_vm2, %v9342_v4  ;;  %v1139_v3 = vshrl.u32 %v9356_v45, 16  ;;  %v1143_v4 = vshll.u32 %v9359_v59, 16  ;;  %v1323_v45 = vshll.u32 %v9365_v39, 16  ;;  %v2997_v59 = vor.u32 %v2996_v54, %v2992_v53  ;;  %v9379_v53 = vld [vmem:[%s9679_s21 + $0x40] sm:$0xff]  }
  0xad   : > { %7895 = vmatprep.mubr.msk.bf16.mxu0 %vm9568_vm1, %v9567_v2  ;;  %8093 = vmatprep.mubr.msk.bf16.mxu1 %vm9568_vm1, %v9567_v2 }
  0xae   : > { %v1141_v10 = vor.u32 %v1139_v3, %v1137_v58  ;;  %v1145_v11 = vrot.slane %v1143_v4, 1  ;;  %v1325_v51 = vrot.slane %v1323_v45, 1  ;;  %v9369_v58 = vld [vmem:[%s9679_s21 + $0x14] sm:$0xff]  }
  0xaf   : > { %v1336_v3 = vshll.u32 %v9369_v58, 16 }
  0xb0   : > { %v1146_v16 = vsel %vm629_vm3, %v1141_v10, %v1145_v11  ;;  %v1149_v22 = vor.u32 %v1147_v17, %v1145_v11  ;;  %v9371_v11 = vld [vmem:[%s9679_s21 + $0x1c] sm:$0xff]  }
  0xb1   : > { %v1338_v10 = vrot.slane %v1336_v3, 1  ;;  %v1344_v17 = vshll.u32 %v9371_v11, 16 }
  0xb4   : > { %7896 = vmatmul.mubr.msk.bf16.gmra.mrb[16].mxu0 %vm321_vm2, %v9343_v8  ;;  %8094 = vmatmul.mubr.msk.bf16.gmra.mrb[16].mxu1 %vm321_vm2, %v9344_v9  ;;  %v2815_v8 = vshll.u32 %v9360_v62, 16  ;;  %v3046_v9 = vsel %vm337_vm0, %v7206_v0, 0 }
  0xb5   : > { %7901 = vmatprep.mubr.msk.bf16.mxu0 %vm9568_vm1, %v9567_v2  ;;  %8099 = vmatprep.mubr.msk.bf16.mxu1 %vm9568_vm1, %v9567_v2 }
  0xb6   : > { %v2817_v14 = vrot.slane %v2815_v8, 1  ;;  %v3208_v8 = vsel %vm337_vm0, %v7217_v63, 0  ;;  %v9380_v63 = vld [vmem:[%s9679_s21 + $0x14] sm:$0xff]  }
  0xbc   : > { %7902 = vmatmul.mubr.msk.bf16.vlgmr.msra.gmra.mrb[0].mxu0 %vm321_vm2, %v9345_v18  ;;  %8100 = vmatmul.mubr.msk.bf16.vlgmr.msra.gmra.mrb[0].mxu1 %vm321_vm2, %v2618_v21  ;;  %v1151_v18 = vshll.u32 %v9361_v12, 16  ;;  %v2823_v21 = vshll.u32 %v9362_v15, 16 }
  0xbd   : > { %7922 = vmatpush3.bf16.msra.mxu0 %v1182_v19  ;;  %8120 = vmatpush3.bf16.msra.mxu1 %v2854_v20  ;;  %v2818_v19 = vsel %vm629_vm3, %v2813_v13, %v2817_v14  ;;  %v2819_v20 = vshrl.u32 %v9360_v62, 16  ;;  %v7061_v62 = vld [vmem:[%s10876_s1 + $0xe] sm:$0x3]  ;;  %v3009_v13 = vrot.slane %v3007_v7, 1  ;;  %v1533_v7 = vshrl.u32 %v9379_v53, 16 }
  0xbe   : > { %7905 = vmatprep.mubr.msk.bf16.mxu0 %vm9568_vm1, %v9567_v2  ;;  %8103 = vmatprep.mubr.msk.bf16.mxu1 %vm9568_vm1, %v9567_v2  ;;  %v1153_v23 = vrot.slane %v1151_v18, 1  ;;  %v2825_v26 = vrot.slane %v2823_v21, 1  ;;  %v1568_v4 = vsel %vm337_vm0, %v7061_v62, 0 }
  0xbf   : > { %7943 = vmatprep.subr.bf16.mxu0 %v9567_v2  ;;  %8141 = vmatprep.subr.bf16.mxu1 %v9567_v2  ;;  %v2821_v25 = vor.u32 %v2819_v20, %v2817_v14  ;;  %v9372_v14 = vld [vmem:[%s9679_s21 + $0x48] sm:$0xff]  }
  0xc0   : > { %v2829_v36 = vor.u32 %v2827_v32, %v2825_v26  ;;  %v3015_v20 = vshll.u32 %v9372_v14, 16 }
  0xc1   : > { %v2826_v31 = vsel %vm629_vm3, %v2821_v25, %v2825_v26  ;;  %v9374_v26 = vld [vmem:[%s9679_s21 + $0x50] sm:$0x1f]  }
  0xc2   : > { %v3017_v25 = vrot.slane %v3015_v20, 1  ;;  %v3023_v32 = vshll.u32 %v9374_v26, 16  ;;  %v3027_v41 = vshrl.u32 %v9374_v26, 16 }
  0xc4   : > { %7906 = vmatmul.mubr.msk.bf16.gmra.mrb[4].mxu0 %vm321_vm2, %v9348_v27  ;;  %8104 = vmatmul.mubr.msk.bf16.gmra.mrb[4].mxu1 %vm321_vm2, %v2626_v28  ;;  %v9364_v27 = vld [vmem:[%s9679_s21 + $0xa4] sm:$0x1f]   ;;  %v1154_v28 = vsel %vm629_vm3, %v1149_v22, %v1153_v23  ;;  %v1346_v22 = vrot.slane %v1344_v17, 1 }
  0xc5   : > { %7909 = vmatprep.mubr.msk.bf16.mxu0 %vm9568_vm1, %v9567_v2  ;;  %8107 = vmatprep.mubr.msk.bf16.mxu1 %vm9568_vm1, %v9567_v2  ;;  %v2831_v33 = vshll.u32 %v9364_v27, 16  ;;  %v2835_v43 = vshrl.u32 %v9364_v27, 16 }
  0xc7   : > { %v2833_v37 = vrot.slane %v2831_v33, 1 }
  0xcc   : > { %7910 = vmatmul.mubr.msk.bf16.gmra.mrb[8].mxu0 %vm321_vm2, %v9350_v34  ;;  %8108 = vmatmul.mubr.msk.bf16.gmra.mrb[8].mxu1 %vm321_vm2, %v2634_v35  ;;  %v1157_v34 = vor.u32 %v1155_v29, %v1153_v23  ;;  %v1161_v35 = vrot.slane %v1159_v30, 1  ;;  %v9373_v23 = vld [vmem:[%s9679_s21 + $0x24] sm:$0x1f]  }
  0xcd   : > { %7913 = vmatprep.mubr.msk.bf16.mxu0 %vm9568_vm1, %v9567_v2  ;;  %8111 = vmatprep.mubr.msk.bf16.mxu1 %vm9568_vm1, %v9567_v2  ;;  %v1352_v29 = vshll.u32 %v9373_v23, 16 }
  0xce   : > { %v1162_v38 = vsel %vm629_vm3, %v1157_v34, %v1161_v35 }
  0xcf   : > { %v1354_v34 = vrot.slane %v1352_v29, 1  ;;  %v9387_v29 = vld [vmem:[%s9679_s21 + $0x30] sm:$0xfe]  }
  0xd4   : > { %7914 = vmatmul.mubr.msk.bf16.gmra.mrb[12].mxu0 %vm321_vm2, %v9352_v40  ;;  %8112 = vmatmul.mubr.msk.bf16.gmra.mrb[12].mxu1 %vm321_vm2, %v2642_v42  ;;  %v2834_v40 = vsel %vm629_vm3, %v2829_v36, %v2833_v37  ;;  %v1163_v42 = vshrl.u32 %v9363_v24, 16  ;;  %v3025_v36 = vrot.slane %v3023_v32, 1 }
  0xd5   : > { %7917 = vmatprep.mubr.msk.bf16.mxu0 %vm9568_vm1, %v9567_v2  ;;  %8115 = vmatprep.mubr.msk.bf16.mxu1 %vm9568_vm1, %v9567_v2 }
  0xd6   : > { %v1165_v48 = vor.u32 %v1163_v42, %v1161_v35  ;;  %v9376_v42 = vld [vmem:[%s9679_s21 + $0x38] sm:$0xff]   ;;  %v3029_v45 = vor.u32 %v3027_v41, %v3025_v36  ;;  %v9390_v41 = vld [vmem:[%s9679_s21 + $0x40] sm:$0xff]  }
  0xdc   : > { %7918 = vmatmul.mubr.msk.bf16.gmra.mrb[16].mxu0 %vm321_vm2, %v9354_v49  ;;  %8116 = vmatmul.mubr.msk.bf16.gmra.mrb[16].mxu1 %vm321_vm2, %v2645_v50  ;;  %v2837_v49 = vor.u32 %v2835_v43, %v2833_v37  ;;  %v1321_v50 = vshrl.u32 %v9365_v39, 16 }
  0xdd   : > { %7923 = vmatprep.mubr.msk.bf16.mxu0 %vm9568_vm1, %v9567_v2  ;;  %8121 = vmatprep.mubr.msk.bf16.mxu1 %vm9568_vm1, %v9567_v2 }
  0xde   : > { %v1326_v56 = vor.u32 %v1325_v51, %v1321_v50  ;;  %v9378_v50 = vld [vmem:[%s9679_s21 + $0xc] sm:$0xff]  }
  0xdf   : > { %v3184_v55 = vrot.slane %v9378_v50, 1 }
  0xe0   : > { %v1331_v0 = vsel %vm629_vm3, %v1326_v56, %v1330_v57  ;;  %v7072_v56 = vld [vmem:[%s10876_s1 + $0x10] sm:$0x3] }
  0xe4   : > { %7924 = vmatmul.mubr.msk.bf16.vlgmr.msra.gmra.mrb[0].mxu0 %vm321_vm2, %v1138_v1  ;;  %8122 = vmatmul.mubr.msk.bf16.vlgmr.msra.gmra.mrb[0].mxu1 %vm321_vm2, %v2810_v6  ;;  %v1332_v1 = vshrl.u32 %v9366_v44, 16  ;;  %v3003_v6 = vshrl.u32 %v9368_v46, 16 }
  0xe5   : > { %7944 = vmatpush3.bf16.msra.mxu0 %v1375_v5  ;;  %8142 = vmatpush3.bf16.msra.mxu1 %v3046_v9  ;;  %v3002_v5 = vsel %vm629_vm3, %v2997_v59, %v3001_v60  ;;  %v1525_v59 = vshrl.u32 %v9376_v42, 16 }
  0xe6   : > { %7927 = vmatprep.mubr.msk.bf16.mxu0 %vm9568_vm1, %v9567_v2  ;;  %8125 = vmatprep.mubr.msk.bf16.mxu1 %vm9568_vm1, %v9567_v2  ;;  %v1334_v9 = vor.u32 %v1332_v1, %v1330_v57  ;;  %v3005_v12 = vor.u32 %v3003_v6, %v3001_v60  ;;  %v7238_v57 = vld [vmem:[%s10876_s1 + $0x10] sm:$0x3]  ;;  %v1529_v60 = vshll.u32 %v9379_v53, 16 }
  0xe7   : > { %7965 = vmatprep.subr.bf16.mxu0 %v9567_v2  ;;  %8163 = vmatprep.subr.bf16.mxu1 %v9567_v2 }
  0xe8   : > { %v1339_v15 = vsel %vm629_vm3, %v1334_v9, %v1338_v10  ;;  %v3010_v18 = vsel %vm629_vm3, %v3005_v12, %v3009_v13  ;;  %v1531_v3 = vrot.slane %v1529_v60, 1  ;;  %v9395_v60 = vld [vmem:[%s9679_s21 + $0x58] sm:$0xff]  }
  0xec   : > { %7928 = vmatmul.mubr.msk.bf16.gmra.mrb[4].mxu0 %vm321_vm2, %v1146_v16  ;;  %8126 = vmatmul.mubr.msk.bf16.gmra.mrb[4].mxu1 %vm321_vm2, %v2818_v19  ;;  %v1340_v16 = vshrl.u32 %v9369_v58, 16  ;;  %v3011_v19 = vshrl.u32 %v9370_v61, 16  ;;  %v1732_v61 = vsel %vm337_vm0, %v7072_v56, 0 }
  0xed   : > { %7931 = vmatprep.mubr.msk.bf16.mxu0 %vm9568_vm1, %v9567_v2  ;;  %8129 = vmatprep.mubr.msk.bf16.mxu1 %vm9568_vm1, %v9567_v2 }
  0xee   : > { %v1342_v21 = vor.u32 %v1340_v16, %v1338_v10  ;;  %v3013_v24 = vor.u32 %v3011_v19, %v3009_v13  ;;  %v9382_v10 = vld [vmem:[%s9679_s21 + $0x1c] sm:$0xff]   ;;  %v9383_v13 = vld [vmem:[%s9679_s21 + $0x50] sm:$0x1f]   ;;  %v9384_v19 = vld [vmem:[%s9679_s21 + $0x24] sm:$0x1f]  }
  0xef   : > { %v1545_v17 = vshll.u32 %v9383_v13, 16 }
  0xf0   : > { %v1347_v27 = vsel %vm629_vm3, %v1342_v21, %v1346_v22  ;;  %v3018_v30 = vsel %vm629_vm3, %v3013_v24, %v3017_v25 }
  0xf1   : > { %v1547_v21 = vrot.slane %v1545_v17, 1 }
  0xf4   : > { %7932 = vmatmul.mubr.msk.bf16.gmra.mrb[8].mxu0 %vm321_vm2, %v1154_v28  ;;  %8130 = vmatmul.mubr.msk.bf16.gmra.mrb[8].mxu1 %vm321_vm2, %v2826_v31  ;;  %v1348_v28 = vshrl.u32 %v9371_v11, 16  ;;  %v3019_v31 = vshrl.u32 %v9372_v14, 16  ;;  %v1535_v11 = vor.u32 %v1533_v7, %v1531_v3  ;;  %v3188_v14 = vrot.slane %v9382_v10, 1  ;;  %v9402_v7 = vld [vmem:[%s9679_s21 + $0x9c] sm:$0xff]  }
  0xf5   : > { %7935 = vmatprep.mubr.msk.bf16.mxu0 %vm9568_vm1, %v9567_v2  ;;  %8133 = vmatprep.mubr.msk.bf16.mxu1 %vm9568_vm1, %v9567_v2 }
  0xf6   : > { %v1350_v33 = vor.u32 %v1348_v28, %v1346_v22  ;;  %v3021_v35 = vor.u32 %v3019_v31, %v3017_v25  ;;  %v3190_v22 = vrot.slane %v9384_v19, 1  ;;  %v1549_v25 = vshrl.u32 %v9383_v13, 16  ;;  %v9386_v28 = vld [vmem:[%s9679_s21 + $0xc] sm:$0xff]   ;;  %v7298_v19 = vld [vmem:[%s10876_s1 + $0x4] sm:$0x3] }
  0xf7   : > { %v1708_v32 = vrot.slane %v9386_v28, 1 }
  0xf8   : > { %v1355_v37 = vsel %vm629_vm3, %v1350_v33, %v1354_v34  ;;  %v3026_v39 = vsel %vm629_vm3, %v3021_v35, %v3025_v36  ;;  %v3191_v24 = vsel %vm1706_vm4, %v3188_v14, %v3190_v22  ;;  %v1551_v26 = vor.u32 %v1549_v25, %v1547_v21  ;;  %v3543_v35 = vld [vmem:[%s10876_s1] sm:$0x3] }
  0xf9   : > { %v3345_v33 = vrot.slane %v9387_v29, 1  ;;  %v5190_v36 = vld [vmem:[%s10876_s1] sm:$0x3]  ;;  %v9411_v29 = vld [vmem:[%s9679_s21 + $0x70] sm:$0xff]  }
  0xfc   : > { %7936 = vmatmul.mubr.msk.bf16.gmra.mrb[12].mxu0 %vm321_vm2, %v1162_v38  ;;  %8134 = vmatmul.mubr.msk.bf16.gmra.mrb[12].mxu1 %vm321_vm2, %v2834_v40  ;;  %v9375_v38 = vld [vmem:[%s9679_s21 + $0x30] sm:$0xff]   ;;  %v1356_v40 = vshrl.u32 %v9373_v23, 16 }
  0xfd   : > { %7939 = vmatprep.mubr.msk.bf16.mxu0 %vm9568_vm1, %v9567_v2  ;;  %8137 = vmatprep.mubr.msk.bf16.mxu1 %vm9568_vm1, %v9567_v2  ;;  %v1516_v43 = vshll.u32 %v9375_v38, 16  ;;  %v1514_v46 = vshrl.u32 %v9375_v38, 16  ;;  %v9389_v38 = vld [vmem:[%s9679_s21 + $0x14] sm:$0xff]  }
  0xfe   : > { %v1358_v44 = vor.u32 %v1356_v40, %v1354_v34  ;;  %v3583_v40 = vsel %vm337_vm0, %v3543_v35, 0 }
  0xff   : > { %v1518_v47 = vrot.slane %v1516_v43, 1  ;;  %v1710_v43 = vrot.slane %v9389_v38, 1 }
 0x101   : > { %v1519_v51 = vor.u32 %v1518_v47, %v1514_v46  ;;  %v9391_v46 = vld [vmem:[%s9679_s21 + $0x1c] sm:$0xff]  }
 0x104   : > { %7940 = vmatmul.mubr.msk.bf16.gmra.mrb[16].mxu0 %vm321_vm2, %v1165_v48  ;;  %8138 = vmatmul.mubr.msk.bf16.gmra.mrb[16].mxu1 %vm321_vm2, %v2837_v49  ;;  %v1521_v48 = vshll.u32 %v9376_v42, 16  ;;  %v9377_v49 = vld [vmem:[%s9679_s21 + $0x4] sm:$0xfe]   ;;  %v5230_v42 = vsel %vm337_vm0, %v5190_v36, 0  ;;  %v9413_v36 = vld [vmem:[%s9679_s21 + $0x78] sm:$0x1f]  }
 0x105   : > { %7945 = vmatprep.mubr.msk.bf16.mxu0 %vm9568_vm1, %v9567_v2  ;;  %8143 = vmatprep.mubr.msk.bf16.mxu1 %vm9568_vm1, %v9567_v2  ;;  %v3183_v54 = vrot.slane %v9377_v49, 1  ;;  %v1712_v49 = vrot.slane %v9391_v46, 1  ;;  %v9417_v46 = vld [vmem:[%s9679_s21 + $0x84] sm:$0xff]  }
 0x106   : > { %v1523_v52 = vrot.slane %v1521_v48, 1  ;;  %v9392_v48 = vld [vmem:[%s9679_s21 + $0x48] sm:$0xff]  }
 0x107   : > { %v3185_v62 = vsel %vm1706_vm4, %v3183_v54, %v3184_v55  ;;  %v3350_v50 = vrot.slane %v9392_v48, 1  ;;  %v9394_v54 = vld [vmem:[%s9679_s21 + $0x50] sm:$0x1f]   ;;  %v9416_v48 = vld [vmem:[%s9679_s21 + $0x60] sm:$0xff]  }
 0x108   : > { %v1524_v58 = vsel %vm629_vm3, %v1519_v51, %v1523_v52  ;;  %v1527_v1 = vor.u32 %v1525_v59, %v1523_v52  ;;  %v1713_v51 = vsel %vm1706_vm4, %v1710_v43, %v1712_v49  ;;  %v9393_v52 = vld [vmem:[%s9679_s21 + $0x24] sm:$0x1f]   ;;  %v3352_v56 = vrot.slane %v9394_v54, 1  ;;  %v7277_v59 = vld [vmem:[%s10876_s1 + $0x2] sm:$0x3] }
 0x10a   : > { %v1532_v6 = vsel %vm629_vm3, %v1527_v1, %v1531_v3  ;;  %v9397_v1 = vld [vmem:[%s9679_s21 + $0x60] sm:$0xff]   ;;  %v9398_v3 = vld [vmem:[%s9679_s21 + $0x8c] sm:$0xff]  }
 0x10c   : > { %7946 = vmatmul.mubr.msk.bf16.vlgmr.msra.gmra.mrb[0].mxu0 %vm321_vm2, %v1331_v0  ;;  %8144 = vmatmul.mubr.msk.bf16.vlgmr.msra.gmra.mrb[0].mxu1 %vm321_vm2, %v3002_v5  ;;  %v3370_v0 = vsel %vm337_vm0, %v7238_v57, 0  ;;  %v3186_v5 = vrot.slane %v9380_v63, 1  ;;  %v3733_v63 = vsel %vm337_vm0, %v7277_v59, 0 }
 0x10d   : > { %7966 = vmatpush3.bf16.msra.mxu0 %v1568_v4  ;;  %8164 = vmatpush3.bf16.msra.mxu1 %v3208_v8  ;;  %v9381_v4 = vld [vmem:[%s9679_s21 + $0x48] sm:$0xff]  }
 0x10e   : > { %7949 = vmatprep.mubr.msk.bf16.mxu0 %vm9568_vm1, %v9567_v2  ;;  %8147 = vmatprep.mubr.msk.bf16.mxu1 %vm9568_vm1, %v9567_v2  ;;  %v1537_v8 = vshll.u32 %v9381_v4, 16  ;;  %v3187_v9 = vsel %vm1706_vm4, %v3184_v55, %v3186_v5  ;;  %v1541_v16 = vshrl.u32 %v9381_v4, 16  ;;  %v1714_v55 = vrot.slane %v9393_v52, 1  ;;  %v9399_v4 = vld [vmem:[%s9679_s21 + $0x68] sm:$0xff]   ;;  %v9414_v52 = vld [vmem:[%s9679_s21 + $0xa4] ss:$0 sps:$4 sm:$0xff]  }
 0x10f   : > { %7987 = vmatprep.subr.bf16.mxu0 %v9567_v2  ;;  %8185 = vmatprep.subr.bf16.mxu1 %v9567_v2 }
 0x110   : > { %v1539_v12 = vrot.slane %v1537_v8, 1  ;;  %v1715_v57 = vsel %vm1706_vm4, %v1712_v49, %v1714_v55  ;;  %v9406_v8 = vld [vmem:[%s9679_s21 + $0x58] sm:$0xff]  }
 0x111   : > { %v5370_v10 = vshll.u32 %v9406_v8, 16  ;;  %v5368_v13 = vshrl.u32 %v9406_v8, 16 }
 0x112   : > { %v1543_v20 = vor.u32 %v1541_v16, %v1539_v12 }
 0x114   : > { %7950 = vmatmul.mubr.msk.bf16.gmra.mrb[4].mxu0 %vm321_vm2, %v1339_v15  ;;  %8148 = vmatmul.mubr.msk.bf16.gmra.mrb[4].mxu1 %vm321_vm2, %v3010_v18  ;;  %v1540_v15 = vsel %vm629_vm3, %v1535_v11, %v1539_v12  ;;  %v3189_v18 = vsel %vm1706_vm4, %v3186_v5, %v3188_v14  ;;  %v1548_v23 = vsel %vm629_vm3, %v1543_v20, %v1547_v21  ;;  %v9400_v5 = vld [vmem:[%s9679_s21 + $0x94] sm:$0xff]   ;;  %v9404_v12 = vld [vmem:[%s9679_s21 + $0xa4] ss:$0 sps:$4 sm:$0xff]   ;;  %v5372_v14 = vrot.slane %v5370_v10, 1 }
 0x115   : > { %7953 = vmatprep.mubr.msk.bf16.mxu0 %vm9568_vm1, %v9567_v2  ;;  %8151 = vmatprep.mubr.msk.bf16.mxu1 %vm9568_vm1, %v9567_v2  ;;  %v9403_v11 = vld [vmem:[%s9679_s21 + $0x78] ss:$0 sps:$4 sm:$0xff]   ;;  %v9405_v20 = vld [vmem:[%s9679_s21 + $0x84] sm:$0xff]  }
 0x116   : > { %v5373_v16 = vor.u32 %v5372_v14, %v5368_v13  ;;  %v7465_v21 = vld [vmem:[%s10876_s1 + $0x4] sm:$0x3] }
 0x11c   : > { %7954 = vmatmul.mubr.msk.bf16.gmra.mrb[8].mxu0 %vm321_vm2, %v1347_v27  ;;  %8152 = vmatmul.mubr.msk.bf16.gmra.mrb[8].mxu1 %vm321_vm2, %v3018_v30  ;;  %v9385_v27 = vld [vmem:[%s9679_s21 + $0x4] sm:$0xfe]   ;;  %v9388_v30 = vld [vmem:[%s9679_s21 + $0x38] sm:$0xff]  }
 0x11d   : > { %7957 = vmatprep.mubr.msk.bf16.mxu0 %vm9568_vm1, %v9567_v2  ;;  %8155 = vmatprep.mubr.msk.bf16.mxu1 %vm9568_vm1, %v9567_v2  ;;  %v1707_v31 = vrot.slane %v9385_v27, 1  ;;  %v3346_v34 = vrot.slane %v9388_v30, 1  ;;  %v9408_v30 = vld [vmem:[%s9679_s21 + $0x8c] sm:$0xff]  }
 0x124   : > { %7958 = vmatmul.mubr.msk.bf16.gmra.mrb[12].mxu0 %vm321_vm2, %v1355_v37  ;;  %8156 = vmatmul.mubr.msk.bf16.gmra.mrb[12].mxu1 %vm321_vm2, %v3026_v39  ;;  %v1709_v37 = vsel %vm1706_vm4, %v1707_v31, %v1708_v32  ;;  %v3347_v39 = vsel %vm1706_vm4, %v3345_v33, %v3346_v34  ;;  %v5391_v33 = vshll.u32 %v9411_v29, 16 }
 0x125   : > { %7961 = vmatprep.mubr.msk.bf16.mxu0 %vm9568_vm1, %v9567_v2  ;;  %8159 = vmatprep.mubr.msk.bf16.mxu1 %vm9568_vm1, %v9567_v2 }
 0x126   : > { %v5393_v35 = vrot.slane %v5391_v33, 1 }
 0x12c   : > { %7962 = vmatmul.mubr.msk.bf16.gmra.mrb[16].mxu0 %vm321_vm2, %v1358_v44  ;;  %8160 = vmatmul.mubr.msk.bf16.gmra.mrb[16].mxu1 %vm321_vm2, %v3029_v45  ;;  %v3348_v44 = vrot.slane %v9390_v41, 1  ;;  %v1711_v45 = vsel %vm1706_vm4, %v1708_v32, %v1710_v43  ;;  %v9412_v43 = vld [vmem:[%s9679_s21 + $0x9c] sm:$0xff]  }
 0x12d   : > { %7967 = vmatprep.mubr.msk.bf16.mxu0 %vm9568_vm1, %v9567_v2  ;;  %8165 = vmatprep.mubr.msk.bf16.mxu1 %vm9568_vm1, %v9567_v2 }
 0x12e   : > { %v3349_v47 = vsel %vm1706_vm4, %v3346_v34, %v3348_v44  ;;  %v3351_v53 = vsel %vm1706_vm4, %v3348_v44, %v3350_v50  ;;  %v9415_v44 = vld [vmem:[%s9679_s21 + $0x58] sm:$0xff]  }
 0x12f   : > { %v3873_v49 = vshll.u32 %v9415_v44, 16  ;;  %v3871_v54 = vshrl.u32 %v9415_v44, 16  ;;  %v9427_v44 = vld [vmem:[%s9679_s21 + $0x30] sm:$0xff]  }
 0x134   : > { %7968 = vmatmul.mubr.msk.bf16.vlgmr.msra.gmra.mrb[0].mxu0 %vm321_vm2, %v1524_v58  ;;  %8166 = vmatmul.mubr.msk.bf16.vlgmr.msra.gmra.mrb[0].mxu1 %vm321_vm2, %v3185_v62  ;;  %v3353_v58 = vsel %vm1706_vm4, %v3350_v50, %v3352_v56  ;;  %v9396_v62 = vld [vmem:[%s9679_s21 + $0x84] sm:$0xff]   ;;  %v9418_v50 = vld [vmem:[%s9679_s21 + $0x8c] sm:$0xff]  }
 0x135   : > { %7988 = vmatpush3.bf16.msra.mxu0 %v1732_v61  ;;  %8186 = vmatpush3.bf16.msra.mxu1 %v3370_v0  ;;  %v7444_v61 = vld [vmem:[%s10876_s1 + $0x2] sm:$0x3]  ;;  %v5567_v59 = vshll.u32 %v9418_v50, 16  ;;  %v5571_v10 = vshrl.u32 %v9418_v50, 16  ;;  %v5754_v50 = vshll.u32 %v9427_v44, 16 }
 0x136   : > { %7971 = vmatprep.mubr.msk.bf16.mxu0 %vm9568_vm1, %v9567_v2  ;;  %8169 = vmatprep.mubr.msk.bf16.mxu1 %vm9568_vm1, %v9567_v2  ;;  %v5422_v0 = vsel %vm337_vm0, %v7444_v61, 0 }
 0x137   : > { %8207 = vmatprep.subr.bf16.mxu0 %v9567_v2  ;;  %8405 = vmatprep.subr.bf16.mxu1 %v9567_v2 }
 0x13c   : > { %7972 = vmatmul.mubr.msk.bf16.gmra.mrb[4].mxu0 %vm321_vm2, %v1532_v6  ;;  %8170 = vmatmul.mubr.msk.bf16.gmra.mrb[4].mxu1 %vm321_vm2, %v3187_v9  ;;  %v9401_v6 = vld [vmem:[%s9679_s21 + $0x70] sm:$0xff]   ;;  %v9407_v9 = vld [vmem:[%s9679_s21 + $0x60] sm:$0xff]  }
 0x13d   : > { %7975 = vmatprep.mubr.msk.bf16.mxu0 %vm9568_vm1, %v9567_v2  ;;  %8173 = vmatprep.mubr.msk.bf16.mxu1 %vm9568_vm1, %v9567_v2 }
 0x144   : > { %7976 = vmatmul.mubr.msk.bf16.gmra.mrb[8].mxu0 %vm321_vm2, %v1540_v15  ;;  %8174 = vmatmul.mubr.msk.bf16.gmra.mrb[8].mxu1 %vm321_vm2, %v3189_v18  ;;  %v5375_v15 = vshll.u32 %v9407_v9, 16  ;;  %v9409_v18 = vld [vmem:[%s9679_s21 + $0x68] sm:$0xff]  }
 0x145   : > { %7979 = vmatprep.mubr.msk.bf16.mxu0 %vm9568_vm1, %v9567_v2  ;;  %8177 = vmatprep.mubr.msk.bf16.mxu1 %vm9568_vm1, %v9567_v2  ;;  %v5383_v25 = vshll.u32 %v9409_v18, 16  ;;  %v5387_v32 = vshrl.u32 %v9409_v18, 16  ;;  %v9422_v18 = vld [vmem:[%s9679_s21 + $0x9c] sm:$0xff]  }
 0x146   : > { %v5377_v17 = vrot.slane %v5375_v15, 1  ;;  %v9421_v15 = vld [vmem:[%s9679_s21 + $0x70] sm:$0xff]  }
 0x147   : > { %v5385_v28 = vrot.slane %v5383_v25, 1 }
 0x149   : > { %v5389_v34 = vor.u32 %v5387_v32, %v5385_v28  ;;  %v3898_v32 = vshrl.u32 %v9421_v15, 16 }
 0x14b   : > { %v5394_v38 = vsel %vm629_vm3, %v5389_v34, %v5393_v35 }
 0x14c   : > { %7980 = vmatmul.mubr.msk.bf16.gmra.mrb[12].mxu0 %vm321_vm2, %v1548_v23  ;;  %8178 = vmatmul.mubr.msk.bf16.gmra.mrb[12].mxu1 %vm321_vm2, %v3191_v24  ;;  %v5378_v23 = vsel %vm629_vm3, %v5373_v16, %v5377_v17  ;;  %v5379_v24 = vshrl.u32 %v9407_v9, 16 }
 0x14d   : > { %7983 = vmatprep.mubr.msk.bf16.mxu0 %vm9568_vm1, %v9567_v2  ;;  %8181 = vmatprep.mubr.msk.bf16.mxu1 %vm9568_vm1, %v9567_v2 }
 0x14e   : > { %v5381_v27 = vor.u32 %v5379_v24, %v5377_v17  ;;  %v5583_v24 = vshll.u32 %v9422_v18, 16 }
 0x150   : > { %v5386_v31 = vsel %vm629_vm3, %v5381_v27, %v5385_v28  ;;  %v9423_v27 = vld [vmem:[%s9679_s21 + $0x78] sm:$0x1f]  }
 0x151   : > { %v3902_v33 = vshll.u32 %v9423_v27, 16 }
 0x154   : > { %7984 = vmatmul.mubr.msk.bf16.gmra.mrb[16].mxu0 %vm321_vm2, %v1551_v26  ;;  %8182 = vmatmul.mubr.msk.bf16.gmra.mrb[16].mxu1 %vm321_vm2, %v3190_v22  ;;  %v3925_v22 = vsel %vm337_vm0, %v7298_v19, 0  ;;  %v5614_v26 = vsel %vm337_vm0, %v7465_v21, 0  ;;  %v3894_v21 = vshll.u32 %v9421_v15, 16 }
 0x155   : > { %7989 = vmatprep.mubr.msk.bf16.mxu0 %vm9568_vm1, %v9567_v2  ;;  %8187 = vmatprep.mubr.msk.bf16.mxu1 %vm9568_vm1, %v9567_v2 }
 0x15c   : > { %7990 = vmatmul.mubr.msk.bf16.vlgmr.msra.gmra.mrb[0].mxu0 %vm321_vm2, %v1709_v37  ;;  %8188 = vmatmul.mubr.msk.bf16.vlgmr.msra.gmra.mrb[0].mxu1 %vm321_vm2, %v3347_v39  ;;  %v9410_v37 = vld [vmem:[%s9679_s21 + $0x94] sm:$0xff]   ;;  %v5395_v39 = vshrl.u32 %v9411_v29, 16  ;;  %v5585_v29 = vrot.slane %v5583_v24, 1 }
 0x15d   : > { %8208 = vmatpush3.bf16.msra.mxu0 %v3583_v40  ;;  %8406 = vmatpush3.bf16.msra.mxu1 %v5230_v42  ;;  %v5399_v40 = vshll.u32 %v9413_v36, 16 }
 0x15e   : > { %7993 = vmatprep.mubr.msk.bf16.mxu0 %vm9568_vm1, %v9567_v2  ;;  %8191 = vmatprep.mubr.msk.bf16.mxu1 %vm9568_vm1, %v9567_v2  ;;  %v5397_v41 = vor.u32 %v5395_v39, %v5393_v35  ;;  %v5587_v35 = vshrl.u32 %v9422_v18, 16 }
 0x15f   : > { %8229 = vmatprep.subr.bf16.mxu0 %v9567_v2  ;;  %8427 = vmatprep.subr.bf16.mxu1 %v9567_v2  ;;  %v5401_v42 = vrot.slane %v5399_v40, 1 }
 0x160   : > { %v5589_v39 = vor.u32 %v5587_v35, %v5585_v29 }
 0x164   : > { %7994 = vmatmul.mubr.msk.bf16.gmra.mrb[4].mxu0 %vm321_vm2, %v1711_v45  ;;  %8192 = vmatmul.mubr.msk.bf16.gmra.mrb[4].mxu1 %vm321_vm2, %v3349_v47  ;;  %v5402_v45 = vsel %vm629_vm3, %v5397_v41, %v5401_v42  ;;  %v5403_v47 = vshrl.u32 %v9413_v36, 16 }
 0x165   : > { %7997 = vmatprep.mubr.msk.bf16.mxu0 %vm9568_vm1, %v9567_v2  ;;  %8195 = vmatprep.mubr.msk.bf16.mxu1 %vm9568_vm1, %v9567_v2 }
 0x16c   : > { %7998 = vmatmul.mubr.msk.bf16.gmra.mrb[8].mxu0 %vm321_vm2, %v1713_v51  ;;  %8196 = vmatmul.mubr.msk.bf16.gmra.mrb[8].mxu1 %vm321_vm2, %v3351_v53  ;;  %v5562_v51 = vshll.u32 %v9417_v46, 16  ;;  %v5405_v53 = vor.u32 %v5403_v47, %v5401_v42  ;;  %v9425_v42 = vld [vmem:[%s9679_s21 + $0x4] sm:$0xff]   ;;  %v9426_v47 = vld [vmem:[%s9679_s21 + $0xc] sm:$0xff]  }
 0x16d   : > { %8001 = vmatprep.mubr.msk.bf16.mxu0 %vm9568_vm1, %v9567_v2  ;;  %8199 = vmatprep.mubr.msk.bf16.mxu1 %vm9568_vm1, %v9567_v2 }
 0x174   : > { %8002 = vmatmul.mubr.msk.bf16.gmra.mrb[12].mxu0 %vm321_vm2, %v1715_v57  ;;  %8200 = vmatmul.mubr.msk.bf16.gmra.mrb[12].mxu1 %vm321_vm2, %v3353_v58  ;;  %v5560_v57 = vshrl.u32 %v9417_v46, 16  ;;  %v5564_v58 = vrot.slane %v5562_v51, 1 }
 0x175   : > { %8005 = vmatprep.mubr.msk.bf16.mxu0 %vm9568_vm1, %v9567_v2  ;;  %8203 = vmatprep.mubr.msk.bf16.mxu1 %vm9568_vm1, %v9567_v2 }
 0x17c   : > { %8006 = vmatmul.mubr.msk.bf16.gmra.mrb[16].mxu0 %vm321_vm2, %v1714_v55  ;;  %8204 = vmatmul.mubr.msk.bf16.gmra.mrb[16].mxu1 %vm321_vm2, %v3352_v56  ;;  %v3875_v55 = vrot.slane %v3873_v49, 1  ;;  %v3878_v56 = vshll.u32 %v9416_v48, 16  ;;  %v9428_v49 = vld [vmem:[%s9679_s21 + $0x38] sm:$0xff]  }
 0x17d   : > { %8209 = vmatprep.mubr.msk.bf16.mxu0 %vm9568_vm1, %v9567_v2  ;;  %8407 = vmatprep.mubr.msk.bf16.mxu1 %vm9568_vm1, %v9567_v2 }
 0x17e   : > { %v3880_v61 = vrot.slane %v3878_v56, 1  ;;  %v5752_v56 = vshrl.u32 %v9427_v44, 16 }
 0x184   : > { %8210 = vmatmul.mubr.msk.bf16.vlgmr.msra.gmra.mrb[20].mxu0 %vm321_vm2, %v9395_v60  ;;  %8408 = vmatmul.mubr.msk.bf16.vlgmr.msra.gmra.mrb[20].mxu1 %vm321_vm2, %v9396_v62  ;;  %v3876_v60 = vor.u32 %v3875_v55, %v3871_v54  ;;  %v9419_v62 = vld [vmem:[%s9679_s21 + $0x68] sm:$0xff]   ;;  %v4070_v55 = vshll.u32 %v9426_v47, 16 }
 0x185   : > { %8230 = vmatpush3.bf16.msra.mxu0 %v3733_v63  ;;  %8428 = vmatpush3.bf16.msra.mxu1 %v5422_v0  ;;  %v5565_v63 = vor.u32 %v5564_v58, %v5560_v57  ;;  %v5569_v0 = vrot.slane %v5567_v59, 1  ;;  %v5756_v57 = vrot.slane %v5754_v50, 1  ;;  %v5759_v58 = vshll.u32 %v9428_v49, 16 }
 0x186   : > { %8213 = vmatprep.mubr.msk.bf16.mxu0 %vm9568_vm1, %v9567_v2  ;;  %8411 = vmatprep.mubr.msk.bf16.mxu1 %vm9568_vm1, %v9567_v2 }
 0x187   : > { %8251 = vmatprep.subr.bf16.mxu0 %v9567_v2  ;;  %8449 = vmatprep.subr.bf16.mxu1 %v9567_v2  ;;  %v5570_v9 = vsel %vm629_vm3, %v5565_v63, %v5569_v0  ;;  %v5573_v16 = vor.u32 %v5571_v10, %v5569_v0  ;;  %v5761_v63 = vrot.slane %v5759_v58, 1  ;;  %v9430_v0 = vld [vmem:[%s9679_s21 + $0x40] sm:$0xff]  }
 0x188   : > { %v5767_v10 = vshll.u32 %v9430_v0, 16 }
 0x18c   : > { %8214 = vmatmul.mubr.msk.bf16.gmra.mrb[24].mxu0 %vm321_vm2, %v9397_v1  ;;  %8412 = vmatmul.mubr.msk.bf16.gmra.mrb[24].mxu1 %vm321_vm2, %v9398_v3  ;;  %v9420_v1 = vld [vmem:[%s9679_s21 + $0x94] sm:$0xff]   ;;  %v7309_v3 = vld [vmem:[%s10876_s1 + $0x6] sm:$0x3] }
 0x18d   : > { %8217 = vmatprep.mubr.msk.bf16.mxu0 %vm9568_vm1, %v9567_v2  ;;  %8415 = vmatprep.mubr.msk.bf16.mxu1 %vm9568_vm1, %v9567_v2  ;;  %v4117_v8 = vsel %vm337_vm0, %v7309_v3, 0  ;;  %v7497_v3 = vld [vmem:[%s10876_s1 + $0x8] sm:$0x3] }
 0x194   : > { %8218 = vmatmul.mubr.msk.bf16.gmra.mrb[28].mxu0 %vm321_vm2, %v9399_v4  ;;  %8416 = vmatmul.mubr.msk.bf16.gmra.mrb[28].mxu1 %vm321_vm2, %v9400_v5  ;;  %v7486_v4 = vld [vmem:[%s10876_s1 + $0x6] sm:$0x3]  ;;  %v3881_v5 = vsel %vm629_vm3, %v3876_v60, %v3880_v61  ;;  %v4072_v60 = vrot.slane %v4070_v55, 1 }
 0x195   : > { %8221 = vmatprep.mubr.msk.bf16.mxu0 %vm9568_vm1, %v9567_v2  ;;  %8419 = vmatprep.mubr.msk.bf16.mxu1 %vm9568_vm1, %v9567_v2 }
 0x19c   : > { %8222 = vmatmul.mubr.msk.bf16.gmra.mrb[32].mxu0 %vm321_vm2, %v9401_v6  ;;  %8420 = vmatmul.mubr.msk.bf16.gmra.mrb[32].mxu1 %vm321_vm2, %v9402_v7  ;;  %v3882_v6 = vshrl.u32 %v9416_v48, 16  ;;  %v3886_v7 = vshll.u32 %v9419_v62, 16  ;;  %v4065_v48 = vshll.u32 %v9425_v42, 16 }
 0x19d   : > { %8225 = vmatprep.mubr.msk.bf16.mxu0 %vm9568_vm1, %v9567_v2  ;;  %8423 = vmatprep.mubr.msk.bf16.mxu1 %vm9568_vm1, %v9567_v2 }
 0x19e   : > { %v3884_v13 = vor.u32 %v3882_v6, %v3880_v61  ;;  %v3888_v14 = vrot.slane %v3886_v7, 1  ;;  %v4067_v54 = vrot.slane %v4065_v48, 1  ;;  %v9429_v61 = vld [vmem:[%s9679_s21 + $0x14] sm:$0xff]  }
 0x19f   : > { %v4078_v6 = vshll.u32 %v9429_v61, 16 }
 0x1a0   : > { %v3889_v19 = vsel %vm629_vm3, %v3884_v13, %v3888_v14 }
 0x1a1   : > { %v4080_v13 = vrot.slane %v4078_v6, 1 }
 0x1a4   : > { %8226 = vmatmul.mubr.msk.bf16.gmra.mrb[36].mxu0 %vm321_vm2, %v9403_v11  ;;  %8424 = vmatmul.mubr.msk.bf16.gmra.mrb[36].mxu1 %vm321_vm2, %v9404_v12  ;;  %v5575_v11 = vshll.u32 %v9420_v1, 16  ;;  %v5806_v12 = vsel %vm337_vm0, %v7486_v4, 0 }
 0x1a5   : > { %8231 = vmatprep.mubr.msk.bf16.mxu0 %vm9568_vm1, %v9567_v2  ;;  %8429 = vmatprep.mubr.msk.bf16.mxu1 %vm9568_vm1, %v9567_v2 }
 0x1a6   : > { %v5577_v17 = vrot.slane %v5575_v11, 1  ;;  %v5968_v11 = vsel %vm337_vm0, %v7497_v3, 0  ;;  %v9440_v3 = vld [vmem:[%s9679_s21 + $0x14] sm:$0xff]  }
 0x1ac   : > { %8232 = vmatmul.mubr.msk.bf16.vlgmr.msra.gmra.mrb[20].mxu0 %vm321_vm2, %v9405_v20  ;;  %8430 = vmatmul.mubr.msk.bf16.vlgmr.msra.gmra.mrb[20].mxu1 %vm321_vm2, %v5378_v23  ;;  %v3890_v20 = vshrl.u32 %v9419_v62, 16  ;;  %v5579_v23 = vshrl.u32 %v9420_v1, 16  ;;  %v5757_v62 = vor.u32 %v5756_v57, %v5752_v56  ;;  %v7330_v1 = vld [vmem:[%s10876_s1 + $0x8] sm:$0x3]  ;;  %v9439_v56 = vld [vmem:[%s9679_s21 + $0x40] sm:$0xff]  }
 0x1ad   : > { %8252 = vmatpush3.bf16.msra.mxu0 %v3925_v22  ;;  %8450 = vmatpush3.bf16.msra.mxu1 %v5614_v26  ;;  %v5578_v22 = vsel %vm629_vm3, %v5573_v16, %v5577_v17  ;;  %v3896_v26 = vrot.slane %v3894_v21, 1  ;;  %v4309_v7 = vsel %vm337_vm0, %v7330_v1, 0  ;;  %v5769_v16 = vrot.slane %v5767_v10, 1 }
 0x1ae   : > { %8235 = vmatprep.mubr.msk.bf16.mxu0 %vm9568_vm1, %v9567_v2  ;;  %8433 = vmatprep.mubr.msk.bf16.mxu1 %vm9568_vm1, %v9567_v2  ;;  %v3892_v25 = vor.u32 %v3890_v20, %v3888_v14  ;;  %v5581_v28 = vor.u32 %v5579_v23, %v5577_v17  ;;  %v9431_v14 = vld [vmem:[%s9679_s21 + $0x1c] sm:$0xff]   ;;  %v9432_v17 = vld [vmem:[%s9679_s21 + $0x48] sm:$0xff]   ;;  %v4274_v10 = vshrl.u32 %v9439_v56, 16 }
 0x1af   : > { %8273 = vmatprep.subr.bf16.mxu0 %v9567_v2  ;;  %8471 = vmatprep.subr.bf16.mxu1 %v9567_v2  ;;  %v4086_v20 = vshll.u32 %v9431_v14, 16  ;;  %v5775_v23 = vshll.u32 %v9432_v17, 16 }
 0x1b0   : > { %v5586_v34 = vsel %vm629_vm3, %v5581_v28, %v5585_v29  ;;  %v9434_v29 = vld [vmem:[%s9679_s21 + $0x50] sm:$0x1f]  }
 0x1b1   : > { %v5777_v28 = vrot.slane %v5775_v23, 1  ;;  %v5783_v35 = vshll.u32 %v9434_v29, 16  ;;  %v5787_v44 = vshrl.u32 %v9434_v29, 16 }
 0x1b4   : > { %8236 = vmatmul.mubr.msk.bf16.gmra.mrb[24].mxu0 %vm321_vm2, %v9408_v30  ;;  %8434 = vmatmul.mubr.msk.bf16.gmra.mrb[24].mxu1 %vm321_vm2, %v5386_v31  ;;  %v9424_v30 = vld [vmem:[%s9679_s21 + $0xa4] sm:$0x1f]   ;;  %v3897_v31 = vsel %vm629_vm3, %v3892_v25, %v3896_v26  ;;  %v4088_v25 = vrot.slane %v4086_v20, 1 }
 0x1b5   : > { %8239 = vmatprep.mubr.msk.bf16.mxu0 %vm9568_vm1, %v9567_v2  ;;  %8437 = vmatprep.mubr.msk.bf16.mxu1 %vm9568_vm1, %v9567_v2  ;;  %v5591_v36 = vshll.u32 %v9424_v30, 16  ;;  %v5595_v46 = vshrl.u32 %v9424_v30, 16 }
 0x1b7   : > { %v5593_v40 = vrot.slane %v5591_v36, 1 }
 0x1bc   : > { %8240 = vmatmul.mubr.msk.bf16.gmra.mrb[28].mxu0 %vm321_vm2, %v9410_v37  ;;  %8438 = vmatmul.mubr.msk.bf16.gmra.mrb[28].mxu1 %vm321_vm2, %v5394_v38  ;;  %v3900_v37 = vor.u32 %v3898_v32, %v3896_v26  ;;  %v3904_v38 = vrot.slane %v3902_v33, 1  ;;  %v9433_v26 = vld [vmem:[%s9679_s21 + $0x24] sm:$0x1f]  }
 0x1bd   : > { %8243 = vmatprep.mubr.msk.bf16.mxu0 %vm9568_vm1, %v9567_v2  ;;  %8441 = vmatprep.mubr.msk.bf16.mxu1 %vm9568_vm1, %v9567_v2  ;;  %v4094_v32 = vshll.u32 %v9433_v26, 16 }
 0x1be   : > { %v3905_v41 = vsel %vm629_vm3, %v3900_v37, %v3904_v38 }
 0x1bf   : > { %v4096_v37 = vrot.slane %v4094_v32, 1 }
 0x1c4   : > { %8244 = vmatmul.mubr.msk.bf16.gmra.mrb[32].mxu0 %vm321_vm2, %v9412_v43  ;;  %8442 = vmatmul.mubr.msk.bf16.gmra.mrb[32].mxu1 %vm321_vm2, %v5402_v45  ;;  %v5594_v43 = vsel %vm629_vm3, %v5589_v39, %v5593_v40  ;;  %v3906_v45 = vshrl.u32 %v9423_v27, 16  ;;  %v5785_v39 = vrot.slane %v5783_v35, 1  ;;  %v10448_v35 = vld [vmem:[%s9679_s21 + $0x24] sm:$0x1f]  }
 0x1c5   : > { %8247 = vmatprep.mubr.msk.bf16.mxu0 %vm9568_vm1, %v9567_v2  ;;  %8445 = vmatprep.mubr.msk.bf16.mxu1 %vm9568_vm1, %v9567_v2 }
 0x1c6   : > { %v3908_v51 = vor.u32 %v3906_v45, %v3904_v38  ;;  %v9436_v45 = vld [vmem:[%s9679_s21 + $0x38] sm:$0xff]   ;;  %v5789_v48 = vor.u32 %v5787_v44, %v5785_v39 }
 0x1cc   : > { %8248 = vmatmul.mubr.msk.bf16.gmra.mrb[36].mxu0 %vm321_vm2, %v9414_v52  ;;  %8446 = vmatmul.mubr.msk.bf16.gmra.mrb[36].mxu1 %vm321_vm2, %v5405_v53  ;;  %v5597_v52 = vor.u32 %v5595_v46, %v5593_v40  ;;  %v4063_v53 = vshrl.u32 %v9425_v42, 16 }
 0x1cd   : > { %8253 = vmatprep.mubr.msk.bf16.mxu0 %vm9568_vm1, %v9567_v2  ;;  %8451 = vmatprep.mubr.msk.bf16.mxu1 %vm9568_vm1, %v9567_v2 }
 0x1ce   : > { %v4068_v59 = vor.u32 %v4067_v54, %v4063_v53  ;;  %v9438_v53 = vld [vmem:[%s9679_s21 + $0xc] sm:$0xff]  }
 0x1cf   : > { %v5944_v58 = vrot.slane %v9438_v53, 1 }
 0x1d0   : > { %v4073_v4 = vsel %vm629_vm3, %v4068_v59, %v4072_v60  ;;  %v7341_v59 = vld [vmem:[%s10876_s1 + $0xa] sm:$0x3] }
 0x1d4   : > { %8254 = vmatmul.mubr.msk.bf16.vlgmr.msra.gmra.mrb[20].mxu0 %vm321_vm2, %v3881_v5  ;;  %8452 = vmatmul.mubr.msk.bf16.vlgmr.msra.gmra.mrb[20].mxu1 %vm321_vm2, %v5570_v9  ;;  %v4074_v5 = vshrl.u32 %v9426_v47, 16  ;;  %v5763_v9 = vshrl.u32 %v9428_v49, 16 }
 0x1d5   : > { %8274 = vmatpush3.bf16.msra.mxu0 %v4117_v8  ;;  %8472 = vmatpush3.bf16.msra.mxu1 %v5806_v12  ;;  %v5762_v8 = vsel %vm629_vm3, %v5757_v62, %v5761_v63  ;;  %v4266_v62 = vshrl.u32 %v9436_v45, 16 }
 0x1d6   : > { %8257 = vmatprep.mubr.msk.bf16.mxu0 %vm9568_vm1, %v9567_v2  ;;  %8455 = vmatprep.mubr.msk.bf16.mxu1 %vm9568_vm1, %v9567_v2  ;;  %v4076_v12 = vor.u32 %v4074_v5, %v4072_v60  ;;  %v5765_v15 = vor.u32 %v5763_v9, %v5761_v63  ;;  %v7518_v60 = vld [vmem:[%s10876_s1 + $0xa] sm:$0x3]  ;;  %v4270_v63 = vshll.u32 %v9439_v56, 16 }
 0x1d7   : > { %8295 = vmatprep.subr.bf16.mxu0 %v9567_v2  ;;  %8493 = vmatprep.subr.bf16.mxu1 %v9567_v2 }
 0x1d8   : > { %v4081_v18 = vsel %vm629_vm3, %v4076_v12, %v4080_v13  ;;  %v5770_v21 = vsel %vm629_vm3, %v5765_v15, %v5769_v16  ;;  %v4272_v6 = vrot.slane %v4270_v63, 1 }
 0x1da   : > { %v4276_v15 = vor.u32 %v4274_v10, %v4272_v6 }
 0x1dc   : > { %8258 = vmatmul.mubr.msk.bf16.gmra.mrb[24].mxu0 %vm321_vm2, %v3889_v19  ;;  %8456 = vmatmul.mubr.msk.bf16.gmra.mrb[24].mxu1 %vm321_vm2, %v5578_v22  ;;  %v4082_v19 = vshrl.u32 %v9429_v61, 16  ;;  %v5771_v22 = vshrl.u32 %v9430_v0, 16  ;;  %v4471_v0 = vsel %vm337_vm0, %v7341_v59, 0 }
 0x1dd   : > { %8261 = vmatprep.mubr.msk.bf16.mxu0 %vm9568_vm1, %v9567_v2  ;;  %8459 = vmatprep.mubr.msk.bf16.mxu1 %vm9568_vm1, %v9567_v2 }
 0x1de   : > { %v4084_v24 = vor.u32 %v4082_v19, %v4080_v13  ;;  %v5773_v27 = vor.u32 %v5771_v22, %v5769_v16  ;;  %v9442_v13 = vld [vmem:[%s9679_s21 + $0x1c] sm:$0xff]  }
 0x1df   : > { %v10438_v19 = vld [vmem:[%s10878_s3] ss:$0 sm:$0xff] }
 0x1e0   : > { %v4089_v30 = vsel %vm629_vm3, %v4084_v24, %v4088_v25  ;;  %v5778_v33 = vsel %vm629_vm3, %v5773_v27, %v5777_v28 }
 0x1e4   : > { %8262 = vmatmul.mubr.msk.bf16.gmra.mrb[28].mxu0 %vm321_vm2, %v3897_v31  ;;  %8460 = vmatmul.mubr.msk.bf16.gmra.mrb[28].mxu1 %vm321_vm2, %v5586_v34  ;;  %v4090_v31 = vshrl.u32 %v9431_v14, 16  ;;  %v5779_v34 = vshrl.u32 %v9432_v17, 16  ;;  %v10426_v14 = vld [vmem:[%s10877_s2] ss:$0 sm:$0xff]  ;;  %v10431_v17 = vld [vmem:[%s9679_s21 + $0x50] sm:$0x1f]  }
 0x1e5   : > { %8265 = vmatprep.mubr.msk.bf16.mxu0 %vm9568_vm1, %v9567_v2  ;;  %8463 = vmatprep.mubr.msk.bf16.mxu1 %vm9568_vm1, %v9567_v2  ;;  %v4286_v29 = vshll.u32 %v10431_v17, 16 }
 0x1e6   : > { %v4092_v36 = vor.u32 %v4090_v31, %v4088_v25  ;;  %v5781_v38 = vor.u32 %v5779_v34, %v5777_v28 }
 0x1e7   : > { %v4288_v44 = vrot.slane %v4286_v29, 1  ;;  %v9445_v29 = vld [vmem:[%s9679_s21 + $0x4] sm:$0xfe]  }
 0x1e8   : > { %v4097_v40 = vsel %vm629_vm3, %v4092_v36, %v4096_v37  ;;  %v5786_v42 = vsel %vm629_vm3, %v5781_v38, %v5785_v39 }
 0x1ec   : > { %8266 = vmatmul.mubr.msk.bf16.gmra.mrb[32].mxu0 %vm321_vm2, %v3905_v41  ;;  %8464 = vmatmul.mubr.msk.bf16.gmra.mrb[32].mxu1 %vm321_vm2, %v5594_v43  ;;  %v9435_v41 = vld [vmem:[%s9679_s21 + $0x30] sm:$0xff]   ;;  %v4098_v43 = vshrl.u32 %v9433_v26, 16 }
 0x1ed   : > { %8269 = vmatprep.mubr.msk.bf16.mxu0 %vm9568_vm1, %v9567_v2  ;;  %8467 = vmatprep.mubr.msk.bf16.mxu1 %vm9568_vm1, %v9567_v2  ;;  %v4257_v46 = vshll.u32 %v9435_v41, 16  ;;  %v4255_v49 = vshrl.u32 %v9435_v41, 16 }
 0x1ee   : > { %v4100_v47 = vor.u32 %v4098_v43, %v4096_v37 }
 0x1ef   : > { %v4259_v50 = vrot.slane %v4257_v46, 1 }
 0x1f1   : > { %v4260_v54 = vor.u32 %v4259_v50, %v4255_v49 }
 0x1f4   : > { %8270 = vmatmul.mubr.msk.bf16.gmra.mrb[36].mxu0 %vm321_vm2, %v3908_v51  ;;  %8468 = vmatmul.mubr.msk.bf16.gmra.mrb[36].mxu1 %vm321_vm2, %v5597_v52  ;;  %v4262_v51 = vshll.u32 %v9436_v45, 16  ;;  %v9437_v52 = vld [vmem:[%s9679_s21 + $0x4] sm:$0xfe]  }
 0x1f5   : > { %8275 = vmatprep.mubr.msk.bf16.mxu0 %vm9568_vm1, %v9567_v2  ;;  %8473 = vmatprep.mubr.msk.bf16.mxu1 %vm9568_vm1, %v9567_v2  ;;  %v5943_v57 = vrot.slane %v9437_v52, 1 }
 0x1f6   : > { %v4264_v55 = vrot.slane %v4262_v51, 1 }
 0x1f7   : > { %v5945_v1 = vsel %vm1706_vm4, %v5943_v57, %v5944_v58 }
 0x1f8   : > { %v4265_v61 = vsel %vm629_vm3, %v4260_v54, %v4264_v55  ;;  %v4268_v5 = vor.u32 %v4266_v62, %v4264_v55 }
 0x1fa   : > { %v4273_v9 = vsel %vm629_vm3, %v4268_v5, %v4272_v6 }
 0x1fc   : > { %8276 = vmatmul.mubr.msk.bf16.vlgmr.msra.gmra.mrb[20].mxu0 %vm321_vm2, %v4073_v4  ;;  %8474 = vmatmul.mubr.msk.bf16.vlgmr.msra.gmra.mrb[20].mxu1 %vm321_vm2, %v5762_v8  ;;  %v6130_v4 = vsel %vm337_vm0, %v7518_v60, 0  ;;  %v5946_v8 = vrot.slane %v9440_v3, 1 }
 0x1fd   : > { %8296 = vmatpush3.bf16.msra.mxu0 %v4309_v7  ;;  %8494 = vmatpush3.bf16.msra.mxu1 %v5968_v11  ;;  %v9441_v7 = vld [vmem:[%s9679_s21 + $0x48] sm:$0xff]  }
 0x1fe   : > { %8279 = vmatprep.mubr.msk.bf16.mxu0 %vm9568_vm1, %v9567_v2  ;;  %8477 = vmatprep.mubr.msk.bf16.mxu1 %vm9568_vm1, %v9567_v2  ;;  %v4278_v11 = vshll.u32 %v9441_v7, 16  ;;  %v5947_v12 = vsel %vm1706_vm4, %v5944_v58, %v5946_v8  ;;  %v4282_v28 = vshrl.u32 %v9441_v7, 16 }
 0x1ff   : > { %8317 = vmatprep.subr.bf16.mxu0 %v9567_v2  ;;  %8515 = vmatprep.subr.bf16.mxu1 %v9567_v2 }
 0x200   : > { %v4280_v16 = vrot.slane %v4278_v11, 1 }
 0x202   : > { %v4281_v27 = vsel %vm629_vm3, %v4276_v15, %v4280_v16  ;;  %v4284_v43 = vor.u32 %v4282_v28, %v4280_v16 }
 0x204   : > { %8280 = vmatmul.mubr.msk.bf16.gmra.mrb[24].mxu0 %vm321_vm2, %v4081_v18  ;;  %8478 = vmatmul.mubr.msk.bf16.gmra.mrb[24].mxu1 %vm321_vm2, %v5770_v21  ;;  %v5948_v18 = vrot.slane %v9442_v13, 1  ;;  %v4289_v60 = vsel %vm629_vm3, %v4284_v43, %v4288_v44 }
 0x205   : > { %8283 = vmatprep.mubr.msk.bf16.mxu0 %vm9568_vm1, %v9567_v2  ;;  %8481 = vmatprep.mubr.msk.bf16.mxu1 %vm9568_vm1, %v9567_v2 }
 0x206   : > { %v5949_v34 = vsel %vm1706_vm4, %v5946_v8, %v5948_v18 }
 0x20c   : > { %8284 = vmatmul.mubr.msk.bf16.gmra.mrb[28].mxu0 %vm321_vm2, %v4089_v30  ;;  %8482 = vmatmul.mubr.msk.bf16.gmra.mrb[28].mxu1 %vm321_vm2, %v5778_v33 }
 0x20d   : > { %8287 = vmatprep.mubr.msk.bf16.mxu0 %vm9568_vm1, %v9567_v2  ;;  %8485 = vmatprep.mubr.msk.bf16.mxu1 %vm9568_vm1, %v9567_v2 }
 0x214   : > { %8288 = vmatmul.mubr.msk.bf16.gmra.mrb[32].mxu0 %vm321_vm2, %v4097_v40  ;;  %8486 = vmatmul.mubr.msk.bf16.gmra.mrb[32].mxu1 %vm321_vm2, %v5786_v42 }
 0x215   : > { %8291 = vmatprep.mubr.msk.bf16.mxu0 %vm9568_vm1, %v9567_v2  ;;  %8489 = vmatprep.mubr.msk.bf16.mxu1 %vm9568_vm1, %v9567_v2 }
 0x21c   : > { %8292 = vmatmul.mubr.msk.bf16.gmra.mrb[36].mxu0 %vm321_vm2, %v4100_v47  ;;  %8490 = vmatmul.mubr.msk.bf16.gmra.mrb[36].mxu1 %vm321_vm2, %v5789_v48  ;;  %v5950_v47 = vrot.slane %v10448_v35, 1 }
 0x21d   : > { %8297 = vmatprep.mubr.msk.bf16.mxu0 %vm9568_vm1, %v9567_v2  ;;  %8495 = vmatprep.mubr.msk.bf16.mxu1 %vm9568_vm1, %v9567_v2 }
 0x224   : > { %8298 = vmatmul.mubr.msk.bf16.vlgmr.msra.gmra.mrb[20].mxu0 %vm321_vm2, %v4265_v61  ;;  %8496 = vmatmul.mubr.msk.bf16.vlgmr.msra.gmra.mrb[20].mxu1 %vm321_vm2, %v5945_v1  ;;  %v5951_v1 = vsel %vm1706_vm4, %v5948_v18, %v5950_v47 }
 0x225   : > { %8318 = vmatpush3.bf16.msra.mxu0 %v4471_v0  ;;  %8516 = vmatpush3.bf16.msra.mxu1 %v6130_v4 }
 0x226   : > { %8301 = vmatprep.mubr.msk.bf16.mxu0 %vm9568_vm1, %v9567_v2  ;;  %8499 = vmatprep.mubr.msk.bf16.mxu1 %vm9568_vm1, %v9567_v2 }
 0x227   : > { %8339 = vmatprep.subr.bf16.mxu0 %v9567_v2  ;;  %8537 = vmatprep.subr.bf16.mxu1 %v9567_v2 }
 0x22c   : > { %8302 = vmatmul.mubr.msk.bf16.gmra.mrb[24].mxu0 %vm321_vm2, %v4273_v9  ;;  %8500 = vmatmul.mubr.msk.bf16.gmra.mrb[24].mxu1 %vm321_vm2, %v5947_v12  ;;  %v4290_v9 = vshrl.u32 %v10431_v17, 16 }
 0x22d   : > { %8305 = vmatprep.mubr.msk.bf16.mxu0 %vm9568_vm1, %v9567_v2  ;;  %8503 = vmatprep.mubr.msk.bf16.mxu1 %vm9568_vm1, %v9567_v2 }
 0x22f   : > { %v1768_v20 = vpop.f32.mrb[0].mxu0  ;;  %v3406_v22 = vpop.f32.mrb[0].mxu1 }
 0x230   : > { %v1833_v21 = vmul.f32 %v10426_v14, %v1768_v20  ;;  %v7991_v23 = vpop.f32.mrb[1].mxu0  ;;  %v3471_v24 = vmul.f32 %v10426_v14, %v3406_v22  ;;  %v8189_v25 = vpop.f32.mrb[1].mxu1 }
 0x231   : > { %v1771_v26 = vpop.f32.mrb[2].mxu0  ;;  %v3409_v32 = vpop.f32.mrb[2].mxu1  ;;  %v4292_v23 = vor.u32 %v4290_v9, %v4288_v44 }
 0x232   : > { %v1842_v30 = vadd.f32 %v10438_v19, %v1833_v21  ;;  %v1834_v31 = vmul.f32 %v10426_v14, %v1771_v26  ;;  %v7992_v33 = vpop.f32.mrb[3].mxu0  ;;  %v3480_v36 = vadd.f32 %v10438_v19, %v3471_v24  ;;  %v3472_v37 = vmul.f32 %v10426_v14, %v3409_v32  ;;  %v8190_v38 = vpop.f32.mrb[3].mxu1 }
 0x234   : > { %v1851_v39 = vmul.f32 0.01, %v1842_v30  ;;  %v1843_v40 = vadd.f32 %v10438_v19, %v1834_v31  ;;  %8306 = vmatmul.mubr.msk.bf16.gmra.mrb[28].mxu0 %vm321_vm2, %v4281_v27  ;;  %v3489_v41 = vmul.f32 0.01, %v3480_v36  ;;  %v3481_v42 = vadd.f32 %v10438_v19, %v3472_v37  ;;  %8504 = vmatmul.mubr.msk.bf16.gmra.mrb[28].mxu1 %vm321_vm2, %v5949_v34  ;;  %v10496_v37 = vld [vmem:[%s9679_s21 + $0x38] sm:$0xff]  }
 0x235   : > { %8309 = vmatprep.mubr.msk.bf16.mxu0 %vm9568_vm1, %v9567_v2  ;;  %8507 = vmatprep.mubr.msk.bf16.mxu1 %vm9568_vm1, %v9567_v2 }
 0x236   : > { %v1860_v45 = vmax.f32 %v1842_v30, %v1851_v39  ;;  %v1852_v46 = vmul.f32 0.01, %v1843_v40  ;;  %v3498_v48 = vmax.f32 %v3480_v36, %v3489_v41  ;;  %v3490_v49 = vmul.f32 0.01, %v3481_v42  ;;  %v10490_v30 = vld [vmem:[%s9679_s21 + $0xc] sm:$0xff]  }
 0x237   : > { %v1776_v50 = vpop.f32.mrb[4].mxu0  ;;  %v3414_v53 = vpop.f32.mrb[4].mxu1  ;;  %v9447_v36 = vld [vmem:[%s9679_s21 + $0x30] sm:$0xfe]  }
 0x238   : > { %v1861_v51 = vmax.f32 %v1843_v40, %v1852_v46  ;;  %v1835_v52 = vmul.f32 %v10426_v14, %v1776_v50  ;;  %v7995_v54 = vpop.f32.mrb[5].mxu0  ;;  %v10462_v55 = vmax.f32 %v1860_v45, %v3498_v48  ;;  %v3499_v56 = vmax.f32 %v3481_v42, %v3490_v49  ;;  %v8193_v58 = vpop.f32.mrb[5].mxu1 }
 0x239   : > { %v3473_v57 = vmul.f32 %v10426_v14, %v3414_v53  ;;  %v1779_v59 = vpop.f32.mrb[6].mxu0  ;;  %v3417_v63 = vpop.f32.mrb[6].mxu1  ;;  %v4446_v46 = vrot.slane %v9445_v29, 1  ;;  %v4447_v48 = vrot.slane %v10490_v30, 1 }
 0x23a   : > { %v1844_v61 = vadd.f32 %v10438_v19, %v1835_v52  ;;  %v1836_v62 = vmul.f32 %v10426_v14, %v1779_v59  ;;  %v7996_v0 = vpop.f32.mrb[7].mxu0  ;;  %v10471_v3 = vmax.f32 %v1861_v51, %v3499_v56  ;;  %v3474_v5 = vmul.f32 %v10426_v14, %v3417_v63  ;;  %v8194_v6 = vpop.f32.mrb[7].mxu1 }
 0x23b   : > { %v3482_v4 = vadd.f32 %v10438_v19, %v3473_v57  ;;  %v6105_v51 = vrot.slane %v9447_v36, 1  ;;  %v6106_v52 = vrot.slane %v10496_v37, 1 }
 0x23c   : > { %v1853_v7 = vmul.f32 0.01, %v1844_v61  ;;  %v1845_v8 = vadd.f32 %v10438_v19, %v1836_v62  ;;  %8310 = vmatmul.mubr.msk.bf16.gmra.mrb[32].mxu0 %vm321_vm2, %v4289_v60  ;;  %v3483_v11 = vadd.f32 %v10438_v19, %v3474_v5  ;;  %8508 = vmatmul.mubr.msk.bf16.gmra.mrb[32].mxu1 %vm321_vm2, %v5951_v1  ;;  %v7539_v60 = vld [vmem:[%s10876_s1 + $0xc] sm:$0x3]  ;;  %v10528_v5 = vld [vmem:[%s9679_s21 + $0x14] sm:$0xff]  }
 0x23d   : > { %v3491_v10 = vmul.f32 0.01, %v3482_v4  ;;  %8313 = vmatprep.mubr.msk.bf16.mxu0 %vm9568_vm1, %v9567_v2  ;;  %8511 = vmatprep.mubr.msk.bf16.mxu1 %vm9568_vm1, %v9567_v2 }
 0x23e   : > { %v1862_v12 = vmax.f32 %v1844_v61, %v1853_v7  ;;  %v1854_v13 = vmul.f32 0.01, %v1845_v8  ;;  %v3492_v16 = vmul.f32 0.01, %v3483_v11 }
 0x23f   : > { %v3500_v15 = vmax.f32 %v3482_v4, %v3491_v10  ;;  %v1784_v18 = vpop.f32.mrb[8].mxu0  ;;  %v3422_v21 = vpop.f32.mrb[8].mxu1  ;;  %v4448_v4 = vsel %vm1706_vm4, %v4446_v46, %v4447_v48  ;;  %v9451_v46 = vld [vmem:[%s9679_s21 + $0x1c] sm:$0xff]  }
 0x240   : > { %v1863_v20 = vmax.f32 %v1845_v8, %v1854_v13  ;;  %v1837_v17 = vmul.f32 %v10426_v14, %v1784_v18  ;;  %v7999_v22 = vpop.f32.mrb[9].mxu0  ;;  %v3501_v25 = vmax.f32 %v3483_v11, %v3492_v16  ;;  %v3475_v26 = vmul.f32 %v10426_v14, %v3422_v21  ;;  %v8197_v27 = vpop.f32.mrb[9].mxu1 }
 0x241   : > { %v10485_v24 = vmax.f32 %v1862_v12, %v3500_v15  ;;  %v1787_v28 = vpop.f32.mrb[10].mxu0  ;;  %v3425_v33 = vpop.f32.mrb[10].mxu1  ;;  %v6107_v11 = vsel %vm1706_vm4, %v6105_v51, %v6106_v52  ;;  %v9450_v12 = vld [vmem:[%s9679_s21 + $0x40] sm:$0xff]   ;;  %v4451_v37 = vrot.slane %v9451_v46, 1  ;;  %v9461_v46 = vld [vmem:[%s9679_s21 + $0x74] sm:$0xff]  }
 0x242   : > { %v1846_v31 = vadd.f32 %v10438_v19, %v1837_v17  ;;  %v1838_v32 = vmul.f32 %v10426_v14, %v1787_v28  ;;  %v8000_v34 = vpop.f32.mrb[11].mxu0  ;;  %v10498_v38 = vmax.f32 %v1863_v20, %v3501_v25  ;;  %v3484_v39 = vadd.f32 %v10438_v19, %v3475_v26  ;;  %v8198_v41 = vpop.f32.mrb[11].mxu1 }
 0x243   : > { %v3476_v40 = vmul.f32 %v10426_v14, %v3425_v33  ;;  %v6322_v20 = vsel %vm337_vm0, %v7539_v60, 0  ;;  %v4449_v25 = vrot.slane %v10528_v5, 1  ;;  %v6108_v28 = vrot.slane %v9450_v12, 1 }
 0x244   : > { %v1855_v42 = vmul.f32 0.01, %v1846_v31  ;;  %v1847_v43 = vadd.f32 %v10438_v19, %v1838_v32  ;;  %8314 = vmatmul.mubr.msk.bf16.gmra.mrb[36].mxu0 %vm321_vm2, %v4292_v23  ;;  %v3493_v44 = vmul.f32 0.01, %v3484_v39  ;;  %8512 = vmatmul.mubr.msk.bf16.gmra.mrb[36].mxu1 %vm321_vm2, %v5950_v47  ;;  %v7362_v47 = vld [vmem:[%s10876_s1 + $0xc] sm:$0x3] }
 0x245   : > { %v3485_v45 = vadd.f32 %v10438_v19, %v3476_v40  ;;  %8319 = vmatprep.mubr.msk.bf16.mxu0 %vm9568_vm1, %v9567_v2  ;;  %8517 = vmatprep.mubr.msk.bf16.mxu1 %vm9568_vm1, %v9567_v2  ;;  %v4663_v10 = vsel %vm337_vm0, %v7362_v47, 0  ;;  %v4452_v60 = vsel %vm1706_vm4, %v4449_v25, %v4451_v37 }
 0x246   : > { %v1864_v49 = vmax.f32 %v1846_v31, %v1855_v42  ;;  %v1856_v50 = vmul.f32 0.01, %v1847_v43  ;;  %v3502_v53 = vmax.f32 %v3484_v39, %v3493_v44 }
 0x247   : > { %v3494_v54 = vmul.f32 0.01, %v3485_v45  ;;  %v1792_v35 = vpop.f32.mrb[12].mxu0  ;;  %v3430_v58 = vpop.f32.mrb[12].mxu1 }
 0x248   : > { %v1865_v56 = vmax.f32 %v1847_v43, %v1856_v50  ;;  %v1839_v57 = vmul.f32 %v10426_v14, %v1792_v35  ;;  %v8003_v59 = vpop.f32.mrb[13].mxu0  ;;  %v10521_v61 = vmax.f32 %v1864_v49, %v3502_v53  ;;  %v3477_v63 = vmul.f32 %v10426_v14, %v3430_v58  ;;  %v8201_v0 = vpop.f32.mrb[13].mxu1 }
 0x249   : > { %v3503_v62 = vmax.f32 %v3485_v45, %v3494_v54  ;;  %v1795_v1 = vpop.f32.mrb[14].mxu0  ;;  %v3433_v8 = vpop.f32.mrb[14].mxu1  ;;  %v4450_v45 = vsel %vm1706_vm4, %v4447_v48, %v4449_v25  ;;  %v6109_v53 = vsel %vm1706_vm4, %v6106_v52, %v6108_v28  ;;  %v9452_v54 = vld [vmem:[%s9679_s21 + $0x48] sm:$0xff]   ;;  %v9454_v0 = vld [vmem:[%s9679_s21 + $0x50] sm:$0x1f]  }
 0x24a   : > { %v1848_v6 = vadd.f32 %v10438_v19, %v1839_v57  ;;  %v1840_v7 = vmul.f32 %v10426_v14, %v1795_v1  ;;  %v8004_v9 = vpop.f32.mrb[15].mxu0  ;;  %v3486_v15 = vadd.f32 %v10438_v19, %v3477_v63  ;;  %v3478_v16 = vmul.f32 %v10426_v14, %v3433_v8  ;;  %v8202_v18 = vpop.f32.mrb[15].mxu1  ;;  %v9457_v8 = vld [vmem:[%s9679_s21 + $0x88] sm:$0xff]  }
 0x24b   : > { %v10537_v13 = vmax.f32 %v1865_v56, %v3503_v62  ;;  %v6110_v52 = vrot.slane %v9452_v54, 1  ;;  %v9453_v62 = vld [vmem:[%s9679_s21 + $0x24] sm:$0x1f]   ;;  %v6270_v12 = vshll.u32 %v9457_v8, 16  ;;  %v9459_v25 = vld [vmem:[%s9679_s21 + $0x6c] sm:$0xff]  }
 0x24c   : > { %v1857_v17 = vmul.f32 0.01, %v1848_v6  ;;  %v1849_v21 = vadd.f32 %v10438_v19, %v1840_v7  ;;  %8320 = vmatmul.mubr.msk.bf16.vlgmr.msra.gmra.mrb[20].mxu0 %vm321_vm2, %v4448_v4  ;;  %v3495_v22 = vmul.f32 0.01, %v3486_v15  ;;  %v3487_v23 = vadd.f32 %v10438_v19, %v3478_v16  ;;  %8518 = vmatmul.mubr.msk.bf16.vlgmr.msra.gmra.mrb[20].mxu1 %vm321_vm2, %v6107_v11  ;;  %v9456_v9 = vld [vmem:[%s9679_s21 + $0x64] sm:$0xff]   ;;  %v9458_v11 = vld [vmem:[%s9679_s21 + $0x90] sm:$0xff]  }
 0x24d   : > { %8340 = vmatpush3.bf16.msra.mxu0 %v4663_v10  ;;  %8538 = vmatpush3.bf16.msra.mxu1 %v6322_v20  ;;  %v6111_v63 = vsel %vm1706_vm4, %v6108_v28, %v6110_v52  ;;  %v4453_v1 = vrot.slane %v9453_v62, 1  ;;  %v6112_v4 = vrot.slane %v9454_v0, 1  ;;  %v4616_v18 = vshll.u32 %v9456_v9, 16  ;;  %v9460_v28 = vld [vmem:[%s9679_s21 + $0x98] sm:$0xff]   ;;  %v9464_v62 = vld [vmem:[%s9679_s21 + $0xa8] sm:$0x1f]  }
 0x24e   : > { %v1866_v26 = vmax.f32 %v1848_v6, %v1857_v17  ;;  %v1858_v27 = vmul.f32 0.01, %v1849_v21  ;;  %8323 = vmatprep.mubr.msk.bf16.mxu0 %vm9568_vm1, %v9567_v2  ;;  %v3504_v29 = vmax.f32 %v3486_v15, %v3495_v22  ;;  %v3496_v31 = vmul.f32 0.01, %v3487_v23  ;;  %8521 = vmatprep.mubr.msk.bf16.mxu1 %vm9568_vm1, %v9567_v2  ;;  %v9455_v6 = vld [vmem:[%s9679_s21 + $0x5c] sm:$0xff]  }
 0x24f   : > { %v1800_v32 = vpop.f32.mrb[16].mxu0  ;;  %8361 = vmatprep.subr.bf16.mxu0 %v9567_v2  ;;  %v3438_v36 = vpop.f32.mrb[16].mxu1  ;;  %8559 = vmatprep.subr.bf16.mxu1 %v9567_v2  ;;  %v4454_v5 = vsel %vm1706_vm4, %v4451_v37, %v4453_v1  ;;  %v6113_v7 = vsel %vm1706_vm4, %v6110_v52, %v6112_v4  ;;  %v4611_v10 = vshll.u32 %v9455_v6, 16  ;;  %v4609_v15 = vshrl.u32 %v9455_v6, 16  ;;  %v9463_v52 = vld [vmem:[%s9679_s21 + $0x7c] sm:$0x1f]  }
 0x250   : > { %v1867_v33 = vmax.f32 %v1849_v21, %v1858_v27  ;;  %v1841_v34 = vmul.f32 %v10426_v14, %v1800_v32  ;;  %v8007_v39 = vpop.f32.mrb[17].mxu0  ;;  %v10554_v40 = vmax.f32 %v1866_v26, %v3504_v29  ;;  %v3505_v41 = vmax.f32 %v3487_v23, %v3496_v31  ;;  %v8205_v43 = vpop.f32.mrb[17].mxu1  ;;  %v7383_v29 = vld [vmem:[%s10876_s1 + $0xe] sm:$0x3] }
 0x251   : > { %v3479_v42 = vmul.f32 %v10426_v14, %v3438_v36  ;;  %v1803_v44 = vpop.f32.mrb[18].mxu0  ;;  %v3441_v50 = vpop.f32.mrb[18].mxu1  ;;  %v4613_v16 = vrot.slane %v4611_v10, 1  ;;  %v6268_v20 = vshrl.u32 %v9457_v8, 16  ;;  %v6272_v17 = vrot.slane %v6270_v12, 1  ;;  %v9465_v12 = vld [vmem:[%s9679_s21 + $0x88] sm:$0xff]  }
 0x252   : > { %v1850_v49 = vadd.f32 %v10438_v19, %v1841_v34  ;;  %v8008_v51 = vpop.f32.mrb[19].mxu0  ;;  %v10566_v35 = vmax.f32 %v1867_v33, %v3505_v41  ;;  %v8206_v56 = vpop.f32.mrb[19].mxu1  ;;  %v6275_v21 = vshll.u32 %v9458_v11, 16  ;;  %v4618_v23 = vrot.slane %v4616_v18, 1  ;;  %v7560_v31 = vld [vmem:[%s10876_s1 + $0xe] sm:$0x3] }
 0x253   : > { %v3488_v47 = vadd.f32 %v10438_v19, %v3479_v42  ;;  %v4614_v22 = vor.u32 %v4613_v16, %v4609_v15  ;;  %v6273_v26 = vor.u32 %v6272_v17, %v6268_v20  ;;  %v4620_v33 = vshrl.u32 %v9456_v9, 16  ;;  %v9462_v51 = vld [vmem:[%s9679_s21 + $0xa0] sm:$0xff]   ;;  %v9466_v20 = vld [vmem:[%s9679_s21 + $0x90] sm:$0xff]  }
 0x254   : > { %v1859_v30 = vmul.f32 0.01, %v1850_v49  ;;  %8324 = vmatmul.mubr.msk.bf16.gmra.mrb[24].mxu0 %vm321_vm2, %v4450_v45  ;;  %8522 = vmatmul.mubr.msk.bf16.gmra.mrb[24].mxu1 %vm321_vm2, %v6109_v53  ;;  %v6277_v27 = vrot.slane %v6275_v21, 1  ;;  %v4624_v34 = vshll.u32 %v9459_v25, 16  ;;  %v4855_v36 = vsel %vm337_vm0, %v7383_v29, 0 }
 0x255   : > { %v3497_v48 = vmul.f32 0.01, %v3488_v47  ;;  %8327 = vmatprep.mubr.msk.bf16.mxu0 %vm9568_vm1, %v9567_v2  ;;  %8525 = vmatprep.mubr.msk.bf16.mxu1 %vm9568_vm1, %v9567_v2  ;;  %v4619_v32 = vsel %vm629_vm3, %v4614_v22, %v4618_v23  ;;  %v6279_v41 = vshrl.u32 %v9458_v11, 16  ;;  %v6283_v42 = vshll.u32 %v9460_v28, 16 }
 0x256   : > { %v1868_v57 = vmax.f32 %v1850_v49, %v1859_v30  ;;  %v6278_v39 = vsel %vm629_vm3, %v6273_v26, %v6277_v27  ;;  %v6484_v43 = vsel %vm337_vm0, %v7560_v31, 0  ;;  %v4622_v44 = vor.u32 %v4620_v33, %v4618_v23 }
 0x257   : > { %v3506_v58 = vmax.f32 %v3488_v47, %v3497_v48  ;;  %v4626_v45 = vrot.slane %v4624_v34, 1  ;;  %v6281_v49 = vor.u32 %v6279_v41, %v6277_v27  ;;  %v6285_v50 = vrot.slane %v6283_v42, 1  ;;  %v9467_v27 = vld [vmem:[%s9679_s21 + $0x5c] sm:$0xfe]  }
 0x258   : > { %v4628_v54 = vshrl.u32 %v9459_v25, 16  ;;  %v4632_v47 = vshll.u32 %v9461_v46, 16  ;;  %v6287_v30 = vshrl.u32 %v9460_v28, 16  ;;  %v6291_v48 = vshll.u32 %v9462_v51, 16  ;;  %v9468_v28 = vld [vmem:[%s9679_s21 + $0x64] sm:$0xff]  }
 0x259   : > { %v10575_v59 = vmax.f32 %v1868_v57, %v3506_v58  ;;  %v4627_v53 = vsel %vm629_vm3, %v4622_v44, %v4626_v45  ;;  %v6286_v56 = vsel %vm629_vm3, %v6281_v49, %v6285_v50  ;;  %v4636_v0 = vshrl.u32 %v9461_v46, 16  ;;  %v9470_v46 = vld [vmem:[%s9679_s21 + $0x6c] sm:$0xff]  }
 0x25a   : > { %v4630_v37 = vor.u32 %v4628_v54, %v4626_v45  ;;  %v4634_v57 = vrot.slane %v4632_v47, 1  ;;  %v6289_v58 = vor.u32 %v6287_v30, %v6285_v50  ;;  %v6299_v6 = vshll.u32 %v9464_v62, 16 }
 0x25b   : > { %v4644_v16 = vshrl.u32 %v9463_v52, 16  ;;  %v6303_v18 = vshrl.u32 %v9464_v62, 16  ;;  %v4803_v17 = vshll.u32 %v9465_v12, 16  ;;  %v4801_v23 = vshrl.u32 %v9465_v12, 16  ;;  %v9475_v12 = vld [vmem:[%s9679_s21 + $0x5c] sm:$0xfe]  }
 0x25c   : > { %8328 = vmatmul.mubr.msk.bf16.gmra.mrb[28].mxu0 %vm321_vm2, %v4452_v60  ;;  %8526 = vmatmul.mubr.msk.bf16.gmra.mrb[28].mxu1 %vm321_vm2, %v6111_v63  ;;  %v6293_v60 = vrot.slane %v6291_v48, 1  ;;  %v4635_v63 = vsel %vm629_vm3, %v4630_v37, %v4634_v57  ;;  %v6301_v10 = vrot.slane %v6299_v6, 1  ;;  %v4808_v26 = vshll.u32 %v9466_v20, 16  ;;  %v9472_v37 = vld [vmem:[%s9679_s21 + $0x74] sm:$0xff]  }
 0x25d   : > { %8331 = vmatprep.mubr.msk.bf16.mxu0 %vm9568_vm1, %v9567_v2  ;;  %8529 = vmatprep.mubr.msk.bf16.mxu1 %vm9568_vm1, %v9567_v2  ;;  %v4805_v25 = vrot.slane %v4803_v17, 1  ;;  %v6459_v33 = vrot.slane %v9467_v27, 1  ;;  %v6460_v34 = vrot.slane %v9468_v28, 1  ;;  %v4812_v42 = vshrl.u32 %v9466_v20, 16  ;;  %v9480_v27 = vld [vmem:[%s9679_s21 + $0x98] sm:$0xff]  }
 0x25e   : > { %v6305_v22 = vor.u32 %v6303_v18, %v6301_v10  ;;  %v4810_v31 = vrot.slane %v4808_v26, 1  ;;  %v6462_v54 = vrot.slane %v9470_v46, 1  ;;  %v9478_v18 = vld [vmem:[%s9679_s21 + $0x90] sm:$0xff]   ;;  %v4992_v20 = vrot.slane %v9475_v12, 1 }
 0x25f   : > { %v4806_v29 = vor.u32 %v4805_v25, %v4801_v23  ;;  %v6461_v45 = vsel %vm1706_vm4, %v6459_v33, %v6460_v34  ;;  %v9479_v25 = vld [vmem:[%s9679_s21 + $0x6c] sm:$0xff]  }
 0x260   : > { %v4814_v50 = vor.u32 %v4812_v42, %v4810_v31  ;;  %v6463_v48 = vsel %vm1706_vm4, %v6460_v34, %v6462_v54  ;;  %v4995_v28 = vrot.slane %v9479_v25, 1  ;;  %v9482_v34 = vld [vmem:[%s9679_s21 + $0xa0] sm:$0xff]  }
 0x261   : > { %v4811_v41 = vsel %vm629_vm3, %v4806_v29, %v4810_v31  ;;  %v6624_v29 = vrot.slane %v9480_v27, 1  ;;  %v9483_v42 = vld [vmem:[%s9679_s21 + $0x7c] sm:$0x1f]  }
 0x264   : > { %8332 = vmatmul.mubr.msk.bf16.gmra.mrb[32].mxu0 %vm321_vm2, %v4454_v5  ;;  %8530 = vmatmul.mubr.msk.bf16.gmra.mrb[32].mxu1 %vm321_vm2, %v6113_v7  ;;  %v6295_v5 = vshrl.u32 %v9462_v51, 16  ;;  %v4638_v7 = vor.u32 %v4636_v0, %v4634_v57 }
 0x265   : > { %8335 = vmatprep.mubr.msk.bf16.mxu0 %vm9568_vm1, %v9567_v2  ;;  %8533 = vmatprep.mubr.msk.bf16.mxu1 %vm9568_vm1, %v9567_v2 }
 0x266   : > { %v6297_v9 = vor.u32 %v6295_v5, %v6293_v60 }
 0x268   : > { %v6302_v15 = vsel %vm629_vm3, %v6297_v9, %v6301_v10 }
 0x26c   : > { %8336 = vmatmul.mubr.msk.bf16.gmra.mrb[36].mxu0 %vm321_vm2, %v4453_v1  ;;  %8534 = vmatmul.mubr.msk.bf16.gmra.mrb[36].mxu1 %vm321_vm2, %v6112_v4  ;;  %v4640_v1 = vshll.u32 %v9463_v52, 16  ;;  %v6294_v4 = vsel %vm629_vm3, %v6289_v58, %v6293_v60  ;;  %v9473_v58 = vld [vmem:[%s9679_s21 + $0xa8] sm:$0x1f]   ;;  %v6464_v60 = vrot.slane %v9472_v37, 1 }
 0x26d   : > { %8341 = vmatprep.mubr.msk.bf16.mxu0 %vm9568_vm1, %v9567_v2  ;;  %8539 = vmatprep.mubr.msk.bf16.mxu1 %vm9568_vm1, %v9567_v2  ;;  %v4832_v0 = vshll.u32 %v9473_v58, 16  ;;  %v4836_v10 = vshrl.u32 %v9473_v58, 16 }
 0x26e   : > { %v4642_v8 = vrot.slane %v4640_v1, 1  ;;  %v6465_v1 = vsel %vm1706_vm4, %v6462_v54, %v6464_v60 }
 0x26f   : > { %v4834_v6 = vrot.slane %v4832_v0, 1 }
 0x270   : > { %v4643_v11 = vsel %vm629_vm3, %v4638_v7, %v4642_v8  ;;  %v4646_v21 = vor.u32 %v4644_v16, %v4642_v8  ;;  %v9477_v16 = vld [vmem:[%s9679_s21 + $0x88] sm:$0xfe]  }
 0x274   : > { %8342 = vmatmul.mubr.msk.bf16.vlgmr.msra.gmra.mrb[20].mxu0 %vm321_vm2, %v4619_v32  ;;  %8540 = vmatmul.mubr.msk.bf16.vlgmr.msra.gmra.mrb[20].mxu1 %vm321_vm2, %v6278_v39  ;;  %v9469_v32 = vld [vmem:[%s9679_s21 + $0x98] sm:$0xff]   ;;  %v7581_v39 = vld [vmem:[%s10876_s1 + $0x10] sm:$0x3] }
 0x275   : > { %8362 = vmatpush3.bf16.msra.mxu0 %v4855_v36  ;;  %8560 = vmatpush3.bf16.msra.mxu1 %v6484_v43  ;;  %v7404_v36 = vld [vmem:[%s10876_s1 + $0x10] sm:$0x3]  ;;  %v4816_v43 = vshll.u32 %v9469_v32, 16  ;;  %v6646_v49 = vsel %vm337_vm0, %v7581_v39, 0  ;;  %v6626_v39 = vrot.slane %v9482_v34, 1 }
 0x276   : > { %8345 = vmatprep.mubr.msk.bf16.mxu0 %vm9568_vm1, %v9567_v2  ;;  %8543 = vmatprep.mubr.msk.bf16.mxu1 %vm9568_vm1, %v9567_v2  ;;  %v5017_v44 = vsel %vm337_vm0, %v7404_v36, 0 }
 0x277   : > { %8383 = vmatprep.subr.bf16.mxu0 %v9567_v2  ;;  %8581 = vmatprep.subr.bf16.mxu1 %v9567_v2  ;;  %v4818_v51 = vrot.slane %v4816_v43, 1  ;;  %v6627_v43 = vsel %vm1706_vm4, %v6624_v29, %v6626_v39 }
 0x279   : > { %v4819_v47 = vsel %vm629_vm3, %v4814_v50, %v4818_v51 }
 0x27c   : > { %8346 = vmatmul.mubr.msk.bf16.gmra.mrb[24].mxu0 %vm321_vm2, %v4627_v53  ;;  %8544 = vmatmul.mubr.msk.bf16.gmra.mrb[24].mxu1 %vm321_vm2, %v6286_v56  ;;  %v9471_v53 = vld [vmem:[%s9679_s21 + $0xa0] sm:$0xff]   ;;  %v4820_v56 = vshrl.u32 %v9469_v32, 16  ;;  %v9481_v32 = vld [vmem:[%s9679_s21 + $0x74] sm:$0xff]  }
 0x27d   : > { %8349 = vmatprep.mubr.msk.bf16.mxu0 %vm9568_vm1, %v9567_v2  ;;  %8547 = vmatprep.mubr.msk.bf16.mxu1 %vm9568_vm1, %v9567_v2  ;;  %v4824_v30 = vshll.u32 %v9471_v53, 16  ;;  %v4997_v36 = vrot.slane %v9481_v32, 1 }
 0x27e   : > { %v4822_v57 = vor.u32 %v4820_v56, %v4818_v51 }
 0x27f   : > { %v4826_v52 = vrot.slane %v4824_v30, 1 }
 0x281   : > { %v4827_v62 = vsel %vm629_vm3, %v4822_v57, %v4826_v52 }
 0x284   : > { %8350 = vmatmul.mubr.msk.bf16.gmra.mrb[28].mxu0 %vm321_vm2, %v4635_v63  ;;  %8548 = vmatmul.mubr.msk.bf16.gmra.mrb[28].mxu1 %vm321_vm2, %v6294_v4  ;;  %v4828_v63 = vshrl.u32 %v9471_v53, 16  ;;  %v9474_v4 = vld [vmem:[%s9679_s21 + $0x7c] sm:$0x1f]  }
 0x285   : > { %8353 = vmatprep.mubr.msk.bf16.mxu0 %vm9568_vm1, %v9567_v2  ;;  %8551 = vmatprep.mubr.msk.bf16.mxu1 %vm9568_vm1, %v9567_v2  ;;  %v6466_v7 = vrot.slane %v9474_v4, 1 }
 0x286   : > { %v4830_v5 = vor.u32 %v4828_v63, %v4826_v52 }
 0x287   : > { %v6467_v9 = vsel %vm1706_vm4, %v6464_v60, %v6466_v7 }
 0x288   : > { %v4835_v8 = vsel %vm629_vm3, %v4830_v5, %v4834_v6 }
 0x28c   : > { %8354 = vmatmul.mubr.msk.bf16.gmra.mrb[32].mxu0 %vm321_vm2, %v4643_v11  ;;  %8552 = vmatmul.mubr.msk.bf16.gmra.mrb[32].mxu1 %vm321_vm2, %v6302_v15  ;;  %v4838_v11 = vor.u32 %v4836_v10, %v4834_v6  ;;  %v9476_v15 = vld [vmem:[%s9679_s21 + $0x64] sm:$0xff]  }
 0x28d   : > { %8357 = vmatprep.mubr.msk.bf16.mxu0 %vm9568_vm1, %v9567_v2  ;;  %8555 = vmatprep.mubr.msk.bf16.mxu1 %vm9568_vm1, %v9567_v2  ;;  %v4993_v17 = vrot.slane %v9476_v15, 1 }
 0x28f   : > { %v4994_v23 = vsel %vm1706_vm4, %v4992_v20, %v4993_v17  ;;  %v4996_v31 = vsel %vm1706_vm4, %v4993_v17, %v4995_v28 }
 0x294   : > { %8358 = vmatmul.mubr.msk.bf16.gmra.mrb[36].mxu0 %vm321_vm2, %v4646_v21  ;;  %8556 = vmatmul.mubr.msk.bf16.gmra.mrb[36].mxu1 %vm321_vm2, %v6305_v22  ;;  %v6621_v21 = vrot.slane %v9477_v16, 1  ;;  %v6622_v22 = vrot.slane %v9478_v18, 1 }
 0x295   : > { %8363 = vmatprep.mubr.msk.bf16.mxu0 %vm9568_vm1, %v9567_v2  ;;  %8561 = vmatprep.mubr.msk.bf16.mxu1 %vm9568_vm1, %v9567_v2 }
 0x296   : > { %v6623_v26 = vsel %vm1706_vm4, %v6621_v21, %v6622_v22  ;;  %v6625_v33 = vsel %vm1706_vm4, %v6622_v22, %v6624_v29 }
 0x29c   : > { %8364 = vmatmul.mubr.msk.bf16.vlgmr.msra.gmra.mrb[20].mxu0 %vm321_vm2, %v4811_v41  ;;  %8562 = vmatmul.mubr.msk.bf16.vlgmr.msra.gmra.mrb[20].mxu1 %vm321_vm2, %v6461_v45  ;;  %v4998_v41 = vsel %vm1706_vm4, %v4995_v28, %v4997_v36  ;;  %v4999_v45 = vrot.slane %v9483_v42, 1 }
 0x29d   : > { %8384 = vmatpush3.bf16.msra.mxu0 %v5017_v44  ;;  %8582 = vmatpush3.bf16.msra.mxu1 %v6646_v49  ;;  %v9484_v44 = vld [vmem:[%s9679_s21 + $0xa8] sm:$0x1f]   ;;  %s237_s21 = sand.u32 1, %s9549_s16  }
 0x29e   : > { %8367 = vmatprep.mubr.msk.bf16.mxu0 %vm9568_vm1, %v9567_v2  ;;  %8565 = vmatprep.mubr.msk.bf16.mxu1 %vm9568_vm1, %v9567_v2  ;;  %v6628_v46 = vrot.slane %v9484_v44, 1  ;;  %v5000_v49 = vsel %vm1706_vm4, %v4997_v36, %v4999_v45  ;;  %s9243_s8 = smul.u32 72, %s237_s21  ;;  %s10829_s18 = scalar_lea.sflag [#allocation4], %s237_s21 }
 0x2a0   : > { %v6629_v50 = vsel %vm1706_vm4, %v6626_v39, %v6628_v46  ;;  %s10778_s9 = scalar_lea.vmem [#allocation3], %s9243_s8 }
 0x2a1   : > { %s6816_s22 = sshll.u32 %s10778_s9, 4  ;;  %s10824_s22 = int_to_ptr.vmem [resolvable:$true] %s6816_s22 }
 0x2a2   : > { %s9487_s30 = scalar_lea.vmem %s10824_s22, 1152  ;;  %p9494_p1 = scmp.lt.s32.totalorder %s10824_s22, %s9492_s6 }
 0x2a3   : > { %p9488_p12 = scmp.ne.s32.totalorder %s10824_s22, %s9487_s30  ;;  %p9495_p2 = scmp.lt.s32.totalorder %s9493_s7, %s9487_s30 }
 0x2a4   : > { %8368 = vmatmul.mubr.msk.bf16.gmra.mrb[24].mxu0 %vm321_vm2, %v4819_v47  ;;  %8566 = vmatmul.mubr.msk.bf16.gmra.mrb[24].mxu1 %vm321_vm2, %v6463_v48 }
 0x2a5   : > { %8371 = vmatprep.mubr.msk.bf16.mxu0 %vm9568_vm1, %v9567_v2  ;;  %8569 = vmatprep.mubr.msk.bf16.mxu1 %vm9568_vm1, %v9567_v2  ;;  %p9489_p13 = pnand %p9488_p12, %p9637_p4  ;;  %p9496_p3 = por %p9495_p2, %p9494_p1 }
 0x2a7   : > { %p9490_p0 = pneg %p9489_p13 }
 0x2a9   : > { %p9497_p5 = pnand %p9496_p3, %p9490_p0 }
 0x2ac   : > { %8372 = vmatmul.mubr.msk.bf16.gmra.mrb[28].mxu0 %vm321_vm2, %v4827_v62  ;;  %8570 = vmatmul.mubr.msk.bf16.gmra.mrb[28].mxu1 %vm321_vm2, %v6465_v1 }
 0x2ad   : > { %8375 = vmatprep.mubr.msk.bf16.mxu0 %vm9568_vm1, %v9567_v2  ;;  %8573 = vmatprep.mubr.msk.bf16.mxu1 %vm9568_vm1, %v9567_v2 }
 0x2b4   : > { %8376 = vmatmul.mubr.msk.bf16.gmra.mrb[32].mxu0 %vm321_vm2, %v4835_v8  ;;  %8574 = vmatmul.mubr.msk.bf16.gmra.mrb[32].mxu1 %vm321_vm2, %v6467_v9 }
 0x2b5   : > { %8379 = vmatprep.mubr.msk.bf16.mxu0 %vm9568_vm1, %v9567_v2  ;;  %8577 = vmatprep.mubr.msk.bf16.mxu1 %vm9568_vm1, %v9567_v2 }
 0x2bc   : > { %8380 = vmatmul.mubr.msk.bf16.gmra.mrb[36].mxu0 %vm321_vm2, %v4838_v11  ;;  %8578 = vmatmul.mubr.msk.bf16.gmra.mrb[36].mxu1 %vm321_vm2, %v6466_v7 }
 0x2bd   : > { %8385 = vmatprep.mubr.msk.bf16.mxu0 %vm9568_vm1, %v9567_v2  ;;  %8583 = vmatprep.mubr.msk.bf16.mxu1 %vm9568_vm1, %v9567_v2 }
 0x2c4   : > { %8386 = vmatmul.mubr.msk.bf16.vlgmr.msra.gmra.mrb[20].mxu0 %vm321_vm2, %v4994_v23  ;;  %8584 = vmatmul.mubr.msk.bf16.vlgmr.msra.gmra.mrb[20].mxu1 %vm321_vm2, %v6623_v26 }
 0x2c5   : > { %8389 = vmatprep.mubr.msk.bf16.mxu0 %vm9568_vm1, %v9567_v2  ;;  %8587 = vmatprep.mubr.msk.bf16.mxu1 %vm9568_vm1, %v9567_v2 }
 0x2cc   : > { %8390 = vmatmul.mubr.msk.bf16.gmra.mrb[24].mxu0 %vm321_vm2, %v4996_v31  ;;  %8588 = vmatmul.mubr.msk.bf16.gmra.mrb[24].mxu1 %vm321_vm2, %v6625_v33 }
 0x2cd   : > { %8393 = vmatprep.mubr.msk.bf16.mxu0 %vm9568_vm1, %v9567_v2  ;;  %8591 = vmatprep.mubr.msk.bf16.mxu1 %vm9568_vm1, %v9567_v2 }
 0x2d4   : > { %8394 = vmatmul.mubr.msk.bf16.gmra.mrb[28].mxu0 %vm321_vm2, %v4998_v41  ;;  %8592 = vmatmul.mubr.msk.bf16.gmra.mrb[28].mxu1 %vm321_vm2, %v6627_v43 }
 0x2d5   : > { %8397 = vmatprep.mubr.msk.bf16.mxu0 %vm9568_vm1, %v9567_v2  ;;  %8595 = vmatprep.mubr.msk.bf16.mxu1 %vm9568_vm1, %v9567_v2 }
 0x2dc   : > { %8398 = vmatmul.mubr.msk.bf16.gmra.mrb[32].mxu0 %vm321_vm2, %v5000_v49  ;;  %8596 = vmatmul.mubr.msk.bf16.gmra.mrb[32].mxu1 %vm321_vm2, %v6629_v50 }
 0x2dd   : > { %8401 = vmatprep.mubr.msk.bf16.mxu0 %vm9568_vm1, %v9567_v2  ;;  %8599 = vmatprep.mubr.msk.bf16.mxu1 %vm9568_vm1, %v9567_v2 }
 0x2e4   : > { %8402 = vmatmul.mubr.msk.bf16.gmra.mrb[36].mxu0 %vm321_vm2, %v4999_v45  ;;  %8600 = vmatmul.mubr.msk.bf16.gmra.mrb[36].mxu1 %vm321_vm2, %v6628_v46 }
 0x397   : > { %v5053_v51 = vpop.f32.mrb[20].mxu0  ;;  %v6682_v54 = vpop.f32.mrb[20].mxu1 }
 0x398   : > { %v5118_v53 = vmul.f32 %v10426_v14, %v5053_v51  ;;  %v8387_v47 = vpop.f32.mrb[21].mxu0  ;;  %v6747_v56 = vmul.f32 %v10426_v14, %v6682_v54  ;;  %v8585_v30 = vpop.f32.mrb[21].mxu1 }
 0x399   : > { %v5056_v48 = vpop.f32.mrb[22].mxu0  ;;  %v6685_v2 = vpop.f32.mrb[22].mxu1 }
 0x39a   : > { %v5127_v37 = vadd.f32 %v10438_v19, %v5118_v53  ;;  %v5119_v57 = vmul.f32 %v10426_v14, %v5056_v48  ;;  %v8388_v52 = vpop.f32.mrb[23].mxu0  ;;  %v6756_v58 = vadd.f32 %v10438_v19, %v6747_v56  ;;  %v6748_v60 = vmul.f32 %v10426_v14, %v6685_v2  ;;  %v8586_v62 = vpop.f32.mrb[23].mxu1 }
 0x39c   : > { %v5136_v63 = vmul.f32 0.01, %v5127_v37  ;;  %v5128_v0 = vadd.f32 %v10438_v19, %v5119_v57  ;;  %v6765_v1 = vmul.f32 0.01, %v6756_v58  ;;  %v6757_v4 = vadd.f32 %v10438_v19, %v6748_v60 }
 0x39e   : > { %v5145_v5 = vmax.f32 %v5127_v37, %v5136_v63  ;;  %v5137_v6 = vmul.f32 0.01, %v5128_v0  ;;  %v6766_v7 = vmul.f32 0.01, %v6757_v4  ;;  %v6774_v10 = vmax.f32 %v6756_v58, %v6765_v1 }
 0x39f   : > { %v5061_v8 = vpop.f32.mrb[24].mxu0  ;;  %v6690_v15 = vpop.f32.mrb[24].mxu1 }
 0x3a0   : > { %v5154_v9 = vmax.f32 %v10462_v55, %v5145_v5  ;;  %v5146_v11 = vmax.f32 %v5128_v0, %v5137_v6  ;;  %v5120_v12 = vmul.f32 %v10426_v14, %v5061_v8  ;;  %v8391_v16 = vpop.f32.mrb[25].mxu0  ;;  %v6775_v18 = vmax.f32 %v6757_v4, %v6766_v7  ;;  %v8589_v17 = vpop.f32.mrb[25].mxu1 }
 0x3a1   : > { %v6749_v20 = vmul.f32 %v10426_v14, %v6690_v15  ;;  %v5064_v21 = vpop.f32.mrb[26].mxu0  ;;  %v6693_v27 = vpop.f32.mrb[26].mxu1 }
 0x3a2   : > { %v6783_v22 = vmax.f32 %v5154_v9, %v6774_v10  ;;  %v5155_v23 = vmax.f32 %v10471_v3, %v5146_v11  ;;  %v5129_v25 = vadd.f32 %v10438_v19, %v5120_v12  ;;  %v5121_v26 = vmul.f32 %v10426_v14, %v5064_v21  ;;  %v8392_v55 = vpop.f32.mrb[27].mxu0  ;;  %v8590_v31 = vpop.f32.mrb[27].mxu1 }
 0x3a3   : > { %v6758_v28 = vadd.f32 %v10438_v19, %v6749_v20  ;;  %v6750_v29 = vmul.f32 %v10426_v14, %v6693_v27  ;;  %v9485_v55 = vld [vmem:[%s10877_s2] ss:$0 sm:$0xff] }
 0x3a4   : > { %6792 = vst [vmem:[%s10778_s9] sm:$0xff] %v6783_v22  ;;  %v6784_v32 = vmax.f32 %v5155_v23, %v6775_v18  ;;  %v5138_v33 = vmul.f32 0.01, %v5129_v25  ;;  %v5130_v3 = vadd.f32 %v10438_v19, %v5121_v26 }
 0x3a5   : > { %v6767_v34 = vmul.f32 0.01, %v6758_v28  ;;  %v6759_v36 = vadd.f32 %v10438_v19, %v6750_v29 }
 0x3a6   : > { %6793 = vst [vmem:[%s10778_s9 + $0x8] sm:$0xff] %v6784_v32  ;;  %v5147_v39 = vmax.f32 %v5129_v25, %v5138_v33  ;;  %v5139_v41 = vmul.f32 0.01, %v5130_v3 }
 0x3a7   : > { %v6768_v42 = vmul.f32 0.01, %v6759_v36  ;;  %v5069_v43 = vpop.f32.mrb[28].mxu0  ;;  %v6776_v45 = vmax.f32 %v6758_v28, %v6767_v34  ;;  %v6698_v50 = vpop.f32.mrb[28].mxu1 }
 0x3a8   : > { %v5156_v44 = vmax.f32 %v10485_v24, %v5147_v39  ;;  %v5148_v46 = vmax.f32 %v5130_v3, %v5139_v41  ;;  %v5122_v49 = vmul.f32 %v10426_v14, %v5069_v43  ;;  %v8395_v51 = vpop.f32.mrb[29].mxu0  ;;  %v6751_v54 = vmul.f32 %v10426_v14, %v6698_v50  ;;  %v8593_v47 = vpop.f32.mrb[29].mxu1 }
 0x3a9   : > { %v6777_v53 = vmax.f32 %v6759_v36, %v6768_v42  ;;  %v5072_v56 = vpop.f32.mrb[30].mxu0  ;;  %v6701_v57 = vpop.f32.mrb[30].mxu1 }
 0x3aa   : > { %v6785_v30 = vmax.f32 %v5156_v44, %v6776_v45  ;;  %v5157_v48 = vmax.f32 %v10498_v38, %v5148_v46  ;;  %v5131_v37 = vadd.f32 %v10438_v19, %v5122_v49  ;;  %v5123_v24 = vmul.f32 %v10426_v14, %v5072_v56  ;;  %v8396_v2 = vpop.f32.mrb[31].mxu0  ;;  %v8594_v60 = vpop.f32.mrb[31].mxu1 }
 0x3ab   : > { %v6760_v52 = vadd.f32 %v10438_v19, %v6751_v54  ;;  %v6752_v58 = vmul.f32 %v10426_v14, %v6701_v57 }
 0x3ac   : > { %6794 = vst [vmem:[%s10778_s9 + $0x10] sm:$0xff] %v6785_v30  ;;  %v6786_v62 = vmax.f32 %v5157_v48, %v6777_v53  ;;  %v5140_v63 = vmul.f32 0.01, %v5131_v37  ;;  %v5132_v0 = vadd.f32 %v10438_v19, %v5123_v24 }
 0x3ad   : > { %v6769_v1 = vmul.f32 0.01, %v6760_v52  ;;  %v6761_v4 = vadd.f32 %v10438_v19, %v6752_v58 }
 0x3ae   : > { %6795 = vst [vmem:[%s10778_s9 + $0x18] sm:$0xff] %v6786_v62  ;;  %v5149_v38 = vmax.f32 %v5131_v37, %v5140_v63  ;;  %v5141_v5 = vmul.f32 0.01, %v5132_v0 }
 0x3af   : > { %v6770_v6 = vmul.f32 0.01, %v6761_v4  ;;  %v5077_v7 = vpop.f32.mrb[32].mxu0  ;;  %v6778_v9 = vmax.f32 %v6760_v52, %v6769_v1  ;;  %v6706_v12 = vpop.f32.mrb[32].mxu1 }
 0x3b0   : > { %v5158_v8 = vmax.f32 %v10521_v61, %v5149_v38  ;;  %v5150_v10 = vmax.f32 %v5132_v0, %v5141_v5  ;;  %v5124_v11 = vmul.f32 %v10426_v14, %v5077_v7  ;;  %v8399_v15 = vpop.f32.mrb[33].mxu0  ;;  %v6753_v18 = vmul.f32 %v10426_v14, %v6706_v12  ;;  %v8597_v20 = vpop.f32.mrb[33].mxu1 }
 0x3b1   : > { %v6779_v16 = vmax.f32 %v6761_v4, %v6770_v6  ;;  %v5080_v17 = vpop.f32.mrb[34].mxu0  ;;  %v6709_v25 = vpop.f32.mrb[34].mxu1 }
 0x3b2   : > { %v6787_v21 = vmax.f32 %v5158_v8, %v6778_v9  ;;  %v5159_v22 = vmax.f32 %v10537_v13, %v5150_v10  ;;  %v5133_v23 = vadd.f32 %v10438_v19, %v5124_v11  ;;  %v5125_v61 = vmul.f32 %v10426_v14, %v5080_v17  ;;  %v8400_v26 = vpop.f32.mrb[35].mxu0  ;;  %v8598_v29 = vpop.f32.mrb[35].mxu1  ;;  %v9486_v14 = vld [vmem:[%s10878_s3] ss:$0 sm:$0xff] }
 0x3b3   : > { %v6762_v27 = vadd.f32 %v10438_v19, %v6753_v18  ;;  %v6754_v28 = vmul.f32 %v9485_v55, %v6709_v25 }
 0x3b4   : > { %6796 = vst [vmem:[%s10778_s9 + $0x20] sm:$0xff] %v6787_v21  ;;  %v6788_v31 = vmax.f32 %v5159_v22, %v6779_v16  ;;  %v5142_v32 = vmul.f32 0.01, %v5133_v23  ;;  %v5134_v13 = vadd.f32 %v10438_v19, %v5125_v61 }
 0x3b5   : > { %v6771_v33 = vmul.f32 0.01, %v6762_v27  ;;  %v6763_v3 = vadd.f32 %v9486_v14, %v6754_v28 }
 0x3b6   : > { %6797 = vst [vmem:[%s10778_s9 + $0x28] sm:$0xff] %v6788_v31  ;;  %v5151_v34 = vmax.f32 %v5133_v23, %v5142_v32  ;;  %v5143_v36 = vmul.f32 0.01, %v5134_v13 }
 0x3b7   : > { %v6772_v39 = vmul.f32 0.01, %v6763_v3  ;;  %v5085_v41 = vpop.f32.mrb[36].mxu0  ;;  %v6780_v43 = vmax.f32 %v6762_v27, %v6771_v33  ;;  %v6714_v46 = vpop.f32.mrb[36].mxu1 }
 0x3b8   : > { %v5160_v42 = vmax.f32 %v10554_v40, %v5151_v34  ;;  %v5152_v44 = vmax.f32 %v5134_v13, %v5143_v36  ;;  %v5126_v45 = vmul.f32 %v9485_v55, %v5085_v41  ;;  %v8403_v49 = vpop.f32.mrb[37].mxu0  ;;  %v6755_v19 = vmul.f32 %v9485_v55, %v6714_v46  ;;  %v8601_v50 = vpop.f32.mrb[37].mxu1 }
 0x3b9   : > { %v5088_v51 = vpop.f32.mrb[38].mxu0  ;;  %v6781_v47 = vmax.f32 %v6763_v3, %v6772_v39  ;;  %v6717_v30 = vpop.f32.mrb[38].mxu1 }
 0x3ba   : > { %v6789_v53 = vmax.f32 %v5160_v42, %v6780_v43  ;;  %v5161_v54 = vmax.f32 %v10566_v35, %v5152_v44  ;;  %v5135_v56 = vadd.f32 %v9486_v14, %v5126_v45  ;;  %v8404_v48 = vpop.f32.mrb[39].mxu0  ;;  %v6764_v40 = vadd.f32 %v9486_v14, %v6755_v19  ;;  %v8602_v37 = vpop.f32.mrb[39].mxu1 }
 0x3bc   : > { %6798 = vst [vmem:[%s10778_s9 + $0x30] sm:$0xff] %v6789_v53  ;;  %v6790_v24 = vmax.f32 %v5161_v54, %v6781_v47  ;;  %v5144_v57 = vmul.f32 0.01, %v5135_v56  ;;  %v6773_v2 = vmul.f32 0.01, %v6764_v40 }
 0x3be   : > { %6799 = vst [vmem:[%s10778_s9 + $0x38] sm:$0xff] %v6790_v24  ;;  %v5153_v52 = vmax.f32 %v5135_v56, %v5144_v57  ;;  %v6782_v35 = vmax.f32 %v6764_v40, %v6773_v2 }
 0x3c0   : > { %v5162_v58 = vmax.f32 %v10575_v59, %v5153_v52 }
 0x3c2   : > { %v6791_v60 = vmax.f32 %v5162_v58, %v6782_v35 }
 0x3c4   : > { %6800 = vst [vmem:[%s10778_s9 + $0x40] sm:$0xff] %v6791_v60 }
 0x3c5   : > { %9500 = shalt.err (!%p9497_p5)
}
 0x3c6   : > { %s9501_s21 = scalar_lea.hbm %s10822_s29, 1152  ;;  %s9505_s10 = scalar_lea.hbm %s10879_s4, 2304 }
 0x3c7   : > { %p9502_p6 = scmp.ne.s32.totalorder %s10822_s29, %s9501_s21  ;;  %p9506_p10 = scmp.lt.u32.totalorder %s10822_s29, %s10879_s4 }
 0x3c8   : > { %p9507_p11 = scmp.lt.u32.totalorder %s9505_s10, %s9501_s21  ;;  %p9509_p13 = scmp.lt.u32.totalorder %s9501_s21, %s10822_s29 }
 0x3c9   : > { %p9503_p7 = pnand %p9502_p6, %p9637_p4 }
 0x3ca   : > { %p9508_p12 = por %p9507_p11, %p9506_p10 }
 0x3cb   : > { %p9504_p9 = pneg %p9503_p7 }
 0x3cc   : > { %p9510_p0 = por %p9509_p13, %p9508_p12 }
 0x3ce   : > { %p9511_p1 = pnand %p9510_p0, %p9504_p9 }
 0x3d0   : > { %9514 = shalt.err (!%p9511_p1)
}
 0x3d1   : > { %s9570_s13 = smov 128   ;;  %s9571_s14 = smov 8  }
 0x3d2   : > { %9246 = dma.vmem_to_hbm [thread:$0]  (%p9637_p4), %s10824_s22, 1152, %s10822_s29, %s10829_s18, %s9570_s13, %s9570_s13, %s9571_s14  }
 0x3d3 PF: > { %p9252_p2 = scmp.ge.s32.totalorder %s9565_s20, 2  ;;  %s6831_s24 = sand.u32 1, %s9545_s15  }
 0x3d4   : > { %s6832_s26 = scalar_lea.sflag [#allocation4], %s6831_s24 }
 0x3d5   : > { %p9249_p3 = pnand %p9252_p2, %p9644_p8 }
 0x3d7   : > { %9540 = dma.done.wait (!%p9249_p3), %s6832_s26, 1152  }
 0x3d8   : > { %9542 = vsyncadd (!%p9249_p3), %s6832_s26, 4294966144  ;;  %s17_s20 = sadd.s32 1, %s9565_s20   ;;  %s10882_s15 = smov %s9549_s16 }
 0x3d9   : > { %p14_p5 = scmp.ge.s32.totalorder %s17_s20, 4   ;;  %s10883_s16 = smov %s9553_s17 }
 0x3da   : > { %s10884_s17 = smov %s9650_s28  ;;  %s10885_s18 = smov %s9561_s19 }
 0x3db   : > { %s10886_s19 = smov %s10888_s23  ;;  %16 = sbr.rel (!%p14_p5) target bundleno = 4 (0x4), region = 91 }
 0x3e2   :  { %6837 = vsyncpa [#allocation4], 1 }
 0x3e3   :  { %6839 = vsyncpa [#allocation4 + $0x1], 1 }

</bundles_post_ra>
